<compile_context>
chip_gen: v7x
topology: tpu7x:2x2x1
jax: 0.10.0
libtpu: 0.0.40
codegen_flags: <defaults>
</compile_context>

<pallas_src>
import jax
import jax.numpy as jnp
from jax.experimental import pallas as pl
from jax.experimental.pallas import tpu as pltpu

EPS = 1e-5


# --------------------------------------------------------------------------- #
# Stage 1: per-batch-element — InstanceNorm, conv1+ReLU, SE, fused gamma|beta
#          conv, t = normalized*(1+gamma), and per-batch BatchNorm partial sums.
# --------------------------------------------------------------------------- #
def stage1_kernel(x_ref, seg_ref, ws_ref, bs_ref, w1_ref, w2_ref, wgb_ref,
                  bgb_ref, t_ref, beta_ref, sums_ref, pad_ref, p1_ref, p2_ref):
    Hp2, Wp2, Cl = seg_ref.shape
    H, W = Hp2 - 2, Wp2 - 2
    HW, Cn = x_ref.shape
    nh = ws_ref.shape[1]

    # ---- mlp_shared: im2col (9 shifted taps -> one bf16 patch matrix) + 1 matmul
    seg = seg_ref[...]                                           # (H+2, W+2, Cl) f32
    for ky in range(3):
        for kx in range(3):
            tap = ky * 3 + kx
            p1_ref[:, tap * Cl:(tap + 1) * Cl] = (
                seg[ky:ky + H, kx:kx + W, :].reshape(HW, Cl).astype(jnp.bfloat16))
    acc1 = jnp.dot(p1_ref[...], ws_ref[...],
                   preferred_element_type=jnp.float32)           # (HW, nh)
    actv = jnp.maximum(acc1 + bs_ref[...], 0.0)                  # ReLU

    # ---- SELayer: adaptive_avg_pool2d -> fc1 -> ReLU -> fc2 -> sigmoid -> scale
    sq = jnp.mean(actv, axis=0, keepdims=True)                   # (1, nh)
    exc = jnp.maximum(jnp.dot(sq, w1_ref[...],
                              preferred_element_type=jnp.float32), 0.0)
    exc = jax.nn.sigmoid(jnp.dot(exc, w2_ref[...],
                                 preferred_element_type=jnp.float32))  # (1, nh)
    actv = actv * exc                                            # (HW, nh)

    # ---- zero only the 1-pixel halo; write SE output straight into the interior
    pad_ref[0:1, :, :] = jnp.zeros((1, Wp2, nh), jnp.float32)
    pad_ref[H + 1:H + 2, :, :] = jnp.zeros((1, Wp2, nh), jnp.float32)
    pad_ref[:, 0:1, :] = jnp.zeros((Hp2, 1, nh), jnp.float32)
    pad_ref[:, W + 1:W + 2, :] = jnp.zeros((Hp2, 1, nh), jnp.float32)
    pad_ref[1:H + 1, 1:W + 1, :] = actv.reshape(H, W, nh)

    # ---- fused mlp_gamma|mlp_beta: im2col + ONE bf16 matmul (K=9*nh, N=2*Cn)
    ap = pad_ref[...]
    for ky in range(3):
        for kx in range(3):
            tap = ky * 3 + kx
            p2_ref[:, tap * nh:(tap + 1) * nh] = (
                ap[ky:ky + H, kx:kx + W, :].reshape(HW, nh).astype(jnp.bfloat16))
    accgb = jnp.dot(p2_ref[...], wgb_ref[...],
                    preferred_element_type=jnp.float32) + bgb_ref[...]
    gamma = jax.nn.sigmoid(accgb[:, :Cn])                        # (HW, Cn)
    beta = accgb[:, Cn:]                                         # (HW, Cn)

    # ---- param_free_norm: InstanceNorm2d(affine=False) on this batch element
    x = x_ref[...]                                               # (HW, Cn)
    mu = jnp.mean(x, axis=0, keepdims=True)
    var = jnp.mean((x - mu) ** 2, axis=0, keepdims=True)
    t = (x - mu) * jax.lax.rsqrt(var + EPS) * (1.0 + gamma)

    t_ref[...] = t
    beta_ref[...] = beta
    # per-batch partial sums for the two-pass BatchNorm reduction
    sums_ref[0:1, :] = jnp.sum(t, axis=0, keepdims=True)
    sums_ref[1:2, :] = jnp.sum(t * t, axis=0, keepdims=True)


# --------------------------------------------------------------------------- #
# Stage 2: apply the global BatchNorm affine and add beta (elementwise).
# --------------------------------------------------------------------------- #
def stage2_kernel(t_ref, beta_ref, sc_ref, sh_ref, o_ref):
    o_ref[...] = t_ref[...] * sc_ref[...] + sh_ref[...] + beta_ref[...]


def semantic_embed_se_pallas(x_nchw, segmap_nchw, p):
    N, Cn, H, W = x_nchw.shape
    Cl = segmap_nchw.shape[1]
    nh = p["ws"].shape[-1]
    nh_se = p["w1"].shape[-1]
    HW = H * W

    # ---------------- glue: layout, resize, pad, weight pre-shaping -----------
    x = jnp.transpose(x_nchw, (0, 2, 3, 1)).reshape(N, HW, Cn)
    seg = jnp.transpose(segmap_nchw, (0, 2, 3, 1))
    # F.interpolate(..., mode='bilinear', align_corners=False): no antialiasing.
    seg = jax.image.resize(seg, (N, H, W, Cl), method="bilinear", antialias=False)
    seg = jnp.pad(seg, ((0, 0), (1, 1), (1, 1), (0, 0)))         # conv padding=1

    ws = p["ws"].reshape(9 * Cl, nh).astype(jnp.bfloat16)        # (9*Cl, nh)
    wgb = jnp.concatenate([p["wg"], p["wb"]],
                          axis=-1).reshape(9 * nh, 2 * Cn).astype(jnp.bfloat16)
    bgb = jnp.concatenate([p["bg"], p["bb"]], axis=-1)           # (1, 2*Cn)

    def full(shape):
        return pl.BlockSpec(shape, lambda n, _s=shape: (0,) * len(_s))

    def per_n(d1, d2):
        return pl.BlockSpec((None, d1, d2), lambda n: (n, 0, 0))

    cost1 = pl.CostEstimate(
        flops=int(2 * N * HW * (9 * Cl * nh + 9 * nh * 2 * Cn) + 12 * N * HW * nh),
        transcendentals=int(N * HW * Cn + N * nh),
        bytes_accessed=int(4 * (3 * N * HW * Cn + N * (H + 2) * (W + 2) * Cl
                                + 2 * N * Cn)
                           + 2 * (9 * Cl * nh + 18 * nh * Cn)),
    )
    cparams = pltpu.CompilerParams(dimension_semantics=("parallel",),
                                   vmem_limit_bytes=64 * 1024 * 1024)

    t, beta, sums = pl.pallas_call(
        stage1_kernel,
        grid=(N,),
        in_specs=[
            per_n(HW, Cn),                                            # x
            pl.BlockSpec((None, H + 2, W + 2, Cl),
                         lambda n: (n, 0, 0, 0)),                     # seg (padded)
            full((9 * Cl, nh)), full((1, nh)),                        # ws, bs
            full((nh, nh_se)), full((nh_se, nh)),                     # SE fc1, fc2
            full((9 * nh, 2 * Cn)), full((1, 2 * Cn)),                # wgb, bgb
        ],
        out_specs=[per_n(HW, Cn), per_n(HW, Cn), per_n(2, Cn)],
        out_shape=[
            jax.ShapeDtypeStruct((N, HW, Cn), jnp.float32),           # t
            jax.ShapeDtypeStruct((N, HW, Cn), jnp.float32),           # beta
            jax.ShapeDtypeStruct((N, 2, Cn), jnp.float32),            # partial sums
        ],
        scratch_shapes=[
            pltpu.VMEM((H + 2, W + 2, nh), jnp.float32),              # padded actv
            pltpu.VMEM((HW, 9 * Cl), jnp.bfloat16),                   # im2col conv1
            pltpu.VMEM((HW, 9 * nh), jnp.bfloat16),                   # im2col conv2
        ],
        compiler_params=cparams,
        cost_estimate=cost1,
    )(x, seg, ws, p["bs"], p["w1"], p["w2"], wgb, bgb)

    # ---- tiny cross-batch reduce for BatchNorm batch statistics (biased var) --
    P = N * HW
    totals = jnp.sum(sums, axis=0)                                # (2, Cn)
    bmu = totals[0] / P
    bvar = jnp.maximum(totals[1] / P - bmu * bmu, 0.0)
    inv = jax.lax.rsqrt(bvar + EPS)
    scale = (p["bnw"] * inv).reshape(1, Cn)
    shift = (p["bnb"] - bmu * p["bnw"] * inv).reshape(1, Cn)

    out = pl.pallas_call(
        stage2_kernel,
        grid=(N,),
        in_specs=[per_n(HW, Cn), per_n(HW, Cn), full((1, Cn)), full((1, Cn))],
        out_specs=per_n(HW, Cn),
        out_shape=jax.ShapeDtypeStruct((N, HW, Cn), jnp.float32),
        compiler_params=pltpu.CompilerParams(dimension_semantics=("parallel",)),
    )(t, beta, scale, shift)

    return jnp.transpose(out.reshape(N, H, W, Cn), (0, 3, 1, 2))  # back to NCHW


# --------------------------------------------------------------------------- #
# Parameters / reference
# --------------------------------------------------------------------------- #
def init_params(key, norm_nc, label_nc, nhidden, se_reduction):
    ks = jax.random.split(key, 8)
    nh_se = max(1, nhidden // se_reduction)

    def bf16r(w):   # keep conv weights bf16-representable (they feed the bf16 MXU)
        return w.astype(jnp.bfloat16).astype(jnp.float32)

    def conv_w(k, cin, cout):
        return bf16r(jax.random.normal(k, (9, cin, cout), jnp.float32) * 0.1)

    return dict(
        ws=conv_w(ks[0], label_nc, nhidden),
        bs=jax.random.normal(ks[1], (1, nhidden), jnp.float32) * 0.1,
        wg=conv_w(ks[2], nhidden, norm_nc),
        bg=jax.random.normal(ks[3], (1, norm_nc), jnp.float32) * 0.1,
        wb=conv_w(ks[4], nhidden, norm_nc),
        bb=jax.random.normal(ks[5], (1, norm_nc), jnp.float32) * 0.1,
        w1=jax.random.normal(ks[6], (nhidden, nh_se), jnp.float32) * 0.1,  # fc1.T
        w2=jax.random.normal(ks[7], (nh_se, nhidden), jnp.float32) * 0.1,  # fc2.T
        bnw=jnp.ones((norm_nc,), jnp.float32),     # BatchNorm2d default weight
        bnb=jnp.zeros((norm_nc,), jnp.float32),    # BatchNorm2d default bias
    )


def reference_forward(x_nchw, segmap_nchw, p):
    """Pure-JAX f32 reference (XLA convs) for a sanity check."""
    N, Cn, H, W = x_nchw.shape
    Cl = segmap_nchw.shape[1]
    x = jnp.transpose(x_nchw, (0, 2, 3, 1))
    seg = jnp.transpose(segmap_nchw, (0, 2, 3, 1))
    seg = jax.image.resize(seg, (N, H, W, Cl), method="bilinear", antialias=False)

    mu = jnp.mean(x, axis=(1, 2), keepdims=True)
    var = jnp.mean((x - mu) ** 2, axis=(1, 2), keepdims=True)
    normalized = (x - mu) / jnp.sqrt(var + EPS)

    def conv(inp, w9, b):
        w = w9.reshape(3, 3, w9.shape[1], w9.shape[2])
        y = jax.lax.conv_general_dilated(
            inp, w, (1, 1), "SAME",
            dimension_numbers=("NHWC", "HWIO", "NHWC"),
            precision=jax.lax.Precision.HIGHEST)
        return y + b.reshape(1, 1, 1, -1)

    actv = jax.nn.relu(conv(seg, p["ws"], p["bs"]))
    sq = jnp.mean(actv, axis=(1, 2))                         # adaptive_avg_pool2d
    exc = jax.nn.relu(sq @ p["w1"])
    exc = jax.nn.sigmoid(exc @ p["w2"])
    actv = actv * exc[:, None, None, :]                      # SE scaling
    gamma = jax.nn.sigmoid(conv(actv, p["wg"], p["bg"]))
    beta = conv(actv, p["wb"], p["bb"])
    t = normalized * (1.0 + gamma)
    bmu = jnp.mean(t, axis=(0, 1, 2), keepdims=True)
    bvar = jnp.mean((t - bmu) ** 2, axis=(0, 1, 2), keepdims=True)
    bn = (t - bmu) / jnp.sqrt(bvar + EPS) * p["bnw"].reshape(1, 1, 1, -1) \
         + p["bnb"].reshape(1, 1, 1, -1)
    return jnp.transpose(bn + beta, (0, 3, 1, 2))


if __name__ == "__main__":
    key = jax.random.PRNGKey(0)
    kx, ks, kp = jax.random.split(key, 3)

    N, norm_nc, label_nc = 2, 8, 4
    nhidden, se_reduction = 64, 16
    H = W = 16
    x = jax.random.normal(kx, (N, norm_nc, H, W), jnp.float32)
    segmap = jax.random.normal(ks, (N, label_nc, H // 2, W // 2), jnp.float32)
    params = init_params(kp, norm_nc, label_nc, nhidden, se_reduction)

    out = semantic_embed_se_pallas(x, segmap, params)
    out = jax.block_until_ready(out)

    ref = reference_forward(x, segmap, params)
    assert out.shape == (N, norm_nc, H, W)
    assert bool(jnp.all(jnp.isfinite(out)))
    max_err = float(jnp.max(jnp.abs(out - ref)))
    # Conv matmuls run on the MXU in bf16 (f32 accumulation); at these magnitudes
    # the activation-rounding error stays well below 5e-2 abs.
    assert max_err < 5e-2, f"max abs error too large: {max_err}"
    print("KERNEL_OK")
</pallas_src>

<mosaic_0001>
module attributes {stable_mosaic.version = 11 : i64} {
  func.func @stage1_kernel(%arg0: i32, %arg1: memref<1x256x8xf32, #tpu.memory_space<vmem>>, %arg2: memref<1x18x18x4xf32, #tpu.memory_space<vmem>>, %arg3: memref<36x64xbf16, #tpu.memory_space<vmem>>, %arg4: memref<1x64xf32, #tpu.memory_space<vmem>>, %arg5: memref<64x4xf32, #tpu.memory_space<vmem>>, %arg6: memref<4x64xf32, #tpu.memory_space<vmem>>, %arg7: memref<576x16xbf16, #tpu.memory_space<vmem>>, %arg8: memref<1x16xf32, #tpu.memory_space<vmem>>, %arg9: memref<1x256x8xf32, #tpu.memory_space<vmem>>, %arg10: memref<1x256x8xf32, #tpu.memory_space<vmem>>, %arg11: memref<1x2x8xf32, #tpu.memory_space<vmem>>, %arg12: memref<18x18x64xf32, #tpu.memory_space<vmem>>, %arg13: memref<256x36xbf16, #tpu.memory_space<vmem>>, %arg14: memref<256x576xbf16, #tpu.memory_space<vmem>>) attributes {dimension_semantics = [#tpu.dimension_semantics<parallel>], iteration_bounds = array<i64: 2>, scalar_prefetch = 0 : i64, scratch_operands = 3 : i64, tpu.core_type = #tpu.core_type<tc>, window_params = [{transform_indices = @transform_0, window_bounds = array<i64: 1, 256, 8>}, {transform_indices = @transform_1, window_bounds = array<i64: 1, 18, 18, 4>}, {pipeline_mode = #tpu.pipeline_mode<synchronous>, transform_indices = @transform_2, window_bounds = array<i64: 36, 64>}, {pipeline_mode = #tpu.pipeline_mode<synchronous>, transform_indices = @transform_3, window_bounds = array<i64: 1, 64>}, {pipeline_mode = #tpu.pipeline_mode<synchronous>, transform_indices = @transform_4, window_bounds = array<i64: 64, 4>}, {pipeline_mode = #tpu.pipeline_mode<synchronous>, transform_indices = @transform_5, window_bounds = array<i64: 4, 64>}, {pipeline_mode = #tpu.pipeline_mode<synchronous>, transform_indices = @transform_6, window_bounds = array<i64: 576, 16>}, {pipeline_mode = #tpu.pipeline_mode<synchronous>, transform_indices = @transform_7, window_bounds = array<i64: 1, 16>}, {transform_indices = @transform_8, window_bounds = array<i64: 1, 256, 8>}, {transform_indices = @transform_9, window_bounds = array<i64: 1, 256, 8>}, {transform_indices = @transform_10, window_bounds = array<i64: 1, 2, 8>}]} {
    %c0 = arith.constant 0 : index
    %c0_0 = arith.constant 0 : index
    %c0_1 = arith.constant 0 : index
    %c0_2 = arith.constant 0 : index
    %0 = vector.load %arg2[%c0, %c0_0, %c0_1, %c0_2] : memref<1x18x18x4xf32, #tpu.memory_space<vmem>>, vector<1x18x18x4xf32>
    %1 = vector.shape_cast %0 : vector<1x18x18x4xf32> to vector<18x18x4xf32>
    %2 = vector.extract_strided_slice %1 {offsets = [0, 0, 0], sizes = [16, 16, 4], strides = [1, 1, 1]} : vector<18x18x4xf32> to vector<16x16x4xf32>
    %3 = vector.shape_cast %2 : vector<16x16x4xf32> to vector<256x4xf32>
    %4 = arith.truncf %3 : vector<256x4xf32> to vector<256x4xbf16>
    %c0_3 = arith.constant 0 : index
    %c0_4 = arith.constant 0 : index
    %5 = vector.load %arg13[%c0_3, %c0_4] : memref<256x36xbf16, #tpu.memory_space<vmem>>, vector<256x4xbf16>
    tpu.vector_store %arg13[%c0_3, %c0_4], %4 {strides = array<i32>} : memref<256x36xbf16, #tpu.memory_space<vmem>>, vector<256x4xbf16>,
    %6 = vector.extract_strided_slice %1 {offsets = [0, 1, 0], sizes = [16, 16, 4], strides = [1, 1, 1]} : vector<18x18x4xf32> to vector<16x16x4xf32>
    %7 = vector.shape_cast %6 : vector<16x16x4xf32> to vector<256x4xf32>
    %8 = arith.truncf %7 : vector<256x4xf32> to vector<256x4xbf16>
    %c0_5 = arith.constant 0 : index
    %c4 = arith.constant 4 : index
    %9 = vector.load %arg13[%c0_5, %c4] : memref<256x36xbf16, #tpu.memory_space<vmem>>, vector<256x4xbf16>
    tpu.vector_store %arg13[%c0_5, %c4], %8 {strides = array<i32>} : memref<256x36xbf16, #tpu.memory_space<vmem>>, vector<256x4xbf16>,
    %10 = vector.extract_strided_slice %1 {offsets = [0, 2, 0], sizes = [16, 16, 4], strides = [1, 1, 1]} : vector<18x18x4xf32> to vector<16x16x4xf32>
    %11 = vector.shape_cast %10 : vector<16x16x4xf32> to vector<256x4xf32>
    %12 = arith.truncf %11 : vector<256x4xf32> to vector<256x4xbf16>
    %c0_6 = arith.constant 0 : index
    %c8 = arith.constant 8 : index
    %13 = vector.load %arg13[%c0_6, %c8] : memref<256x36xbf16, #tpu.memory_space<vmem>>, vector<256x4xbf16>
    tpu.vector_store %arg13[%c0_6, %c8], %12 {strides = array<i32>} : memref<256x36xbf16, #tpu.memory_space<vmem>>, vector<256x4xbf16>,
    %14 = vector.extract_strided_slice %1 {offsets = [1, 0, 0], sizes = [16, 16, 4], strides = [1, 1, 1]} : vector<18x18x4xf32> to vector<16x16x4xf32>
    %15 = vector.shape_cast %14 : vector<16x16x4xf32> to vector<256x4xf32>
    %16 = arith.truncf %15 : vector<256x4xf32> to vector<256x4xbf16>
    %c0_7 = arith.constant 0 : index
    %c12 = arith.constant 12 : index
    %17 = vector.load %arg13[%c0_7, %c12] : memref<256x36xbf16, #tpu.memory_space<vmem>>, vector<256x4xbf16>
    tpu.vector_store %arg13[%c0_7, %c12], %16 {strides = array<i32>} : memref<256x36xbf16, #tpu.memory_space<vmem>>, vector<256x4xbf16>,
    %18 = vector.extract_strided_slice %1 {offsets = [1, 1, 0], sizes = [16, 16, 4], strides = [1, 1, 1]} : vector<18x18x4xf32> to vector<16x16x4xf32>
    %19 = vector.shape_cast %18 : vector<16x16x4xf32> to vector<256x4xf32>
    %20 = arith.truncf %19 : vector<256x4xf32> to vector<256x4xbf16>
    %c0_8 = arith.constant 0 : index
    %c16 = arith.constant 16 : index
    %21 = vector.load %arg13[%c0_8, %c16] : memref<256x36xbf16, #tpu.memory_space<vmem>>, vector<256x4xbf16>
    tpu.vector_store %arg13[%c0_8, %c16], %20 {strides = array<i32>} : memref<256x36xbf16, #tpu.memory_space<vmem>>, vector<256x4xbf16>,
    %22 = vector.extract_strided_slice %1 {offsets = [1, 2, 0], sizes = [16, 16, 4], strides = [1, 1, 1]} : vector<18x18x4xf32> to vector<16x16x4xf32>
    %23 = vector.shape_cast %22 : vector<16x16x4xf32> to vector<256x4xf32>
    %24 = arith.truncf %23 : vector<256x4xf32> to vector<256x4xbf16>
    %c0_9 = arith.constant 0 : index
    %c20 = arith.constant 20 : index
    %25 = vector.load %arg13[%c0_9, %c20] : memref<256x36xbf16, #tpu.memory_space<vmem>>, vector<256x4xbf16>
    tpu.vector_store %arg13[%c0_9, %c20], %24 {strides = array<i32>} : memref<256x36xbf16, #tpu.memory_space<vmem>>, vector<256x4xbf16>,
    %26 = vector.extract_strided_slice %1 {offsets = [2, 0, 0], sizes = [16, 16, 4], strides = [1, 1, 1]} : vector<18x18x4xf32> to vector<16x16x4xf32>
    %27 = vector.shape_cast %26 : vector<16x16x4xf32> to vector<256x4xf32>
    %28 = arith.truncf %27 : vector<256x4xf32> to vector<256x4xbf16>
    %c0_10 = arith.constant 0 : index
    %c24 = arith.constant 24 : index
    %29 = vector.load %arg13[%c0_10, %c24] : memref<256x36xbf16, #tpu.memory_space<vmem>>, vector<256x4xbf16>
    tpu.vector_store %arg13[%c0_10, %c24], %28 {strides = array<i32>} : memref<256x36xbf16, #tpu.memory_space<vmem>>, vector<256x4xbf16>,
    %30 = vector.extract_strided_slice %1 {offsets = [2, 1, 0], sizes = [16, 16, 4], strides = [1, 1, 1]} : vector<18x18x4xf32> to vector<16x16x4xf32>
    %31 = vector.shape_cast %30 : vector<16x16x4xf32> to vector<256x4xf32>
    %32 = arith.truncf %31 : vector<256x4xf32> to vector<256x4xbf16>
    %c0_11 = arith.constant 0 : index
    %c28 = arith.constant 28 : index
    %33 = vector.load %arg13[%c0_11, %c28] : memref<256x36xbf16, #tpu.memory_space<vmem>>, vector<256x4xbf16>
    tpu.vector_store %arg13[%c0_11, %c28], %32 {strides = array<i32>} : memref<256x36xbf16, #tpu.memory_space<vmem>>, vector<256x4xbf16>,
    %34 = vector.extract_strided_slice %1 {offsets = [2, 2, 0], sizes = [16, 16, 4], strides = [1, 1, 1]} : vector<18x18x4xf32> to vector<16x16x4xf32>
    %35 = vector.shape_cast %34 : vector<16x16x4xf32> to vector<256x4xf32>
    %36 = arith.truncf %35 : vector<256x4xf32> to vector<256x4xbf16>
    %c0_12 = arith.constant 0 : index
    %c32 = arith.constant 32 : index
    %37 = vector.load %arg13[%c0_12, %c32] : memref<256x36xbf16, #tpu.memory_space<vmem>>, vector<256x4xbf16>
    tpu.vector_store %arg13[%c0_12, %c32], %36 {strides = array<i32>} : memref<256x36xbf16, #tpu.memory_space<vmem>>, vector<256x4xbf16>,
    %c0_13 = arith.constant 0 : index
    %c0_14 = arith.constant 0 : index
    %38 = vector.load %arg13[%c0_13, %c0_14] : memref<256x36xbf16, #tpu.memory_space<vmem>>, vector<256x36xbf16>
    %c0_15 = arith.constant 0 : index
    %c0_16 = arith.constant 0 : index
    %39 = vector.load %arg3[%c0_15, %c0_16] : memref<36x64xbf16, #tpu.memory_space<vmem>>, vector<36x64xbf16>
    %cst = arith.constant dense<0.000000e+00> : vector<256x64xf32>
    %40 = tpu.matmul %38, %39, %cst {dimension_numbers = #tpu.dot_dimension_numbers<[1], [0], [0], [1], [0, 0, 1, 1], [], []>} : vector<256x36xbf16>, vector<36x64xbf16>, vector<256x64xf32> -> vector<256x64xf32>
    %c0_17 = arith.constant 0 : index
    %c0_18 = arith.constant 0 : index
    %41 = vector.load %arg4[%c0_17, %c0_18] : memref<1x64xf32, #tpu.memory_space<vmem>>, vector<1x64xf32>
    %42 = vector.broadcast %41 : vector<1x64xf32> to vector<256x64xf32>
    %43 = arith.addf %40, %42 : vector<256x64xf32>
    %cst_19 = arith.constant 0.000000e+00 : f32
    %44 = vector.broadcast %cst_19 : f32 to vector<256x64xf32>
    %45 = arith.maximumf %43, %44 : vector<256x64xf32>
    %cst_20 = arith.constant dense<0.000000e+00> : vector<64xf32>
    %46 = vector.multi_reduction <add>, %45, %cst_20 [0] : vector<256x64xf32> to vector<64xf32>
    %47 = vector.shape_cast %46 : vector<64xf32> to vector<1x64xf32>
    %cst_21 = arith.constant 2.560000e+02 : f32
    %48 = vector.broadcast %cst_21 : f32 to vector<1x64xf32>
    %49 = arith.divf %47, %48 : vector<1x64xf32>
    %c0_22 = arith.constant 0 : index
    %c0_23 = arith.constant 0 : index
    %50 = vector.load %arg5[%c0_22, %c0_23] : memref<64x4xf32, #tpu.memory_space<vmem>>, vector<64x4xf32>
    %cst_24 = arith.constant dense<0.000000e+00> : vector<1x4xf32>
    %51 = tpu.matmul %49, %50, %cst_24 {dimension_numbers = #tpu.dot_dimension_numbers<[1], [0], [0], [1], [0, 0, 1, 1], [], []>} : vector<1x64xf32>, vector<64x4xf32>, vector<1x4xf32> -> vector<1x4xf32>
    %cst_25 = arith.constant 0.000000e+00 : f32
    %52 = vector.broadcast %cst_25 : f32 to vector<1x4xf32>
    %53 = arith.maximumf %51, %52 : vector<1x4xf32>
    %c0_26 = arith.constant 0 : index
    %c0_27 = arith.constant 0 : index
    %54 = vector.load %arg6[%c0_26, %c0_27] : memref<4x64xf32, #tpu.memory_space<vmem>>, vector<4x64xf32>
    %cst_28 = arith.constant dense<0.000000e+00> : vector<1x64xf32>
    %55 = tpu.matmul %53, %54, %cst_28 {dimension_numbers = #tpu.dot_dimension_numbers<[1], [0], [0], [1], [0, 0, 1, 1], [], []>} : vector<1x4xf32>, vector<4x64xf32>, vector<1x64xf32> -> vector<1x64xf32>
    %56 = arith.negf %55 : vector<1x64xf32>
    %57 = math.exp %56 : vector<1x64xf32>
    %cst_29 = arith.constant 1.000000e+00 : f32
    %58 = vector.broadcast %cst_29 : f32 to vector<1x64xf32>
    %59 = arith.addf %58, %57 : vector<1x64xf32>
    %60 = arith.divf %58, %59 : vector<1x64xf32>
    %61 = vector.broadcast %60 : vector<1x64xf32> to vector<256x64xf32>
    %62 = arith.mulf %45, %61 : vector<256x64xf32>
    %cst_30 = arith.constant 0.000000e+00 : f32
    %63 = vector.broadcast %cst_30 : f32 to vector<1x18x64xf32>
    %c0_31 = arith.constant 0 : index
    %c0_32 = arith.constant 0 : index
    %c0_33 = arith.constant 0 : index
    %64 = vector.load %arg12[%c0_31, %c0_32, %c0_33] : memref<18x18x64xf32, #tpu.memory_space<vmem>>, vector<1x18x64xf32>
    tpu.vector_store %arg12[%c0_31, %c0_32, %c0_33], %63 {strides = array<i32>} : memref<18x18x64xf32, #tpu.memory_space<vmem>>, vector<1x18x64xf32>,
    %cst_34 = arith.constant 0.000000e+00 : f32
    %65 = vector.broadcast %cst_34 : f32 to vector<1x18x64xf32>
    %c17 = arith.constant 17 : index
    %c0_35 = arith.constant 0 : index
    %c0_36 = arith.constant 0 : index
    %66 = vector.load %arg12[%c17, %c0_35, %c0_36] : memref<18x18x64xf32, #tpu.memory_space<vmem>>, vector<1x18x64xf32>
    tpu.vector_store %arg12[%c17, %c0_35, %c0_36], %65 {strides = array<i32>} : memref<18x18x64xf32, #tpu.memory_space<vmem>>, vector<1x18x64xf32>,
    %cst_37 = arith.constant 0.000000e+00 : f32
    %67 = vector.broadcast %cst_37 : f32 to vector<18x1x64xf32>
    %c0_38 = arith.constant 0 : index
    %c0_39 = arith.constant 0 : index
    %c0_40 = arith.constant 0 : index
    %68 = vector.load %arg12[%c0_38, %c0_39, %c0_40] : memref<18x18x64xf32, #tpu.memory_space<vmem>>, vector<18x1x64xf32>
    tpu.vector_store %arg12[%c0_38, %c0_39, %c0_40], %67 {strides = array<i32>} : memref<18x18x64xf32, #tpu.memory_space<vmem>>, vector<18x1x64xf32>,
    %cst_41 = arith.constant 0.000000e+00 : f32
    %69 = vector.broadcast %cst_41 : f32 to vector<18x1x64xf32>
    %c0_42 = arith.constant 0 : index
    %c17_43 = arith.constant 17 : index
    %c0_44 = arith.constant 0 : index
    %70 = vector.load %arg12[%c0_42, %c17_43, %c0_44] : memref<18x18x64xf32, #tpu.memory_space<vmem>>, vector<18x1x64xf32>
    tpu.vector_store %arg12[%c0_42, %c17_43, %c0_44], %69 {strides = array<i32>} : memref<18x18x64xf32, #tpu.memory_space<vmem>>, vector<18x1x64xf32>,
    %71 = vector.shape_cast %62 : vector<256x64xf32> to vector<16x16x64xf32>
    %c1 = arith.constant 1 : index
    %c1_45 = arith.constant 1 : index
    %c0_46 = arith.constant 0 : index
    %72 = vector.load %arg12[%c1, %c1_45, %c0_46] : memref<18x18x64xf32, #tpu.memory_space<vmem>>, vector<16x16x64xf32>
    tpu.vector_store %arg12[%c1, %c1_45, %c0_46], %71 {strides = array<i32>} : memref<18x18x64xf32, #tpu.memory_space<vmem>>, vector<16x16x64xf32>,
    %c0_47 = arith.constant 0 : index
    %c0_48 = arith.constant 0 : index
    %c0_49 = arith.constant 0 : index
    %73 = vector.load %arg12[%c0_47, %c0_48, %c0_49] : memref<18x18x64xf32, #tpu.memory_space<vmem>>, vector<18x18x64xf32>
    %74 = vector.extract_strided_slice %73 {offsets = [0, 0, 0], sizes = [16, 16, 64], strides = [1, 1, 1]} : vector<18x18x64xf32> to vector<16x16x64xf32>
    %75 = vector.shape_cast %74 : vector<16x16x64xf32> to vector<256x64xf32>
    %76 = arith.truncf %75 : vector<256x64xf32> to vector<256x64xbf16>
    %c0_50 = arith.constant 0 : index
    %c0_51 = arith.constant 0 : index
    %77 = vector.load %arg14[%c0_50, %c0_51] : memref<256x576xbf16, #tpu.memory_space<vmem>>, vector<256x64xbf16>
    tpu.vector_store %arg14[%c0_50, %c0_51], %76 {strides = array<i32>} : memref<256x576xbf16, #tpu.memory_space<vmem>>, vector<256x64xbf16>,
    %78 = vector.extract_strided_slice %73 {offsets = [0, 1, 0], sizes = [16, 16, 64], strides = [1, 1, 1]} : vector<18x18x64xf32> to vector<16x16x64xf32>
    %79 = vector.shape_cast %78 : vector<16x16x64xf32> to vector<256x64xf32>
    %80 = arith.truncf %79 : vector<256x64xf32> to vector<256x64xbf16>
    %c0_52 = arith.constant 0 : index
    %c64 = arith.constant 64 : index
    %81 = vector.load %arg14[%c0_52, %c64] : memref<256x576xbf16, #tpu.memory_space<vmem>>, vector<256x64xbf16>
    tpu.vector_store %arg14[%c0_52, %c64], %80 {strides = array<i32>} : memref<256x576xbf16, #tpu.memory_space<vmem>>, vector<256x64xbf16>,
    %82 = vector.extract_strided_slice %73 {offsets = [0, 2, 0], sizes = [16, 16, 64], strides = [1, 1, 1]} : vector<18x18x64xf32> to vector<16x16x64xf32>
    %83 = vector.shape_cast %82 : vector<16x16x64xf32> to vector<256x64xf32>
    %84 = arith.truncf %83 : vector<256x64xf32> to vector<256x64xbf16>
    %c0_53 = arith.constant 0 : index
    %c128 = arith.constant 128 : index
    %85 = vector.load %arg14[%c0_53, %c128] : memref<256x576xbf16, #tpu.memory_space<vmem>>, vector<256x64xbf16>
    tpu.vector_store %arg14[%c0_53, %c128], %84 {strides = array<i32>} : memref<256x576xbf16, #tpu.memory_space<vmem>>, vector<256x64xbf16>,
    %86 = vector.extract_strided_slice %73 {offsets = [1, 0, 0], sizes = [16, 16, 64], strides = [1, 1, 1]} : vector<18x18x64xf32> to vector<16x16x64xf32>
    %87 = vector.shape_cast %86 : vector<16x16x64xf32> to vector<256x64xf32>
    %88 = arith.truncf %87 : vector<256x64xf32> to vector<256x64xbf16>
    %c0_54 = arith.constant 0 : index
    %c192 = arith.constant 192 : index
    %89 = vector.load %arg14[%c0_54, %c192] : memref<256x576xbf16, #tpu.memory_space<vmem>>, vector<256x64xbf16>
    tpu.vector_store %arg14[%c0_54, %c192], %88 {strides = array<i32>} : memref<256x576xbf16, #tpu.memory_space<vmem>>, vector<256x64xbf16>,
    %90 = vector.extract_strided_slice %73 {offsets = [1, 1, 0], sizes = [16, 16, 64], strides = [1, 1, 1]} : vector<18x18x64xf32> to vector<16x16x64xf32>
    %91 = vector.shape_cast %90 : vector<16x16x64xf32> to vector<256x64xf32>
    %92 = arith.truncf %91 : vector<256x64xf32> to vector<256x64xbf16>
    %c0_55 = arith.constant 0 : index
    %c256 = arith.constant 256 : index
    %93 = vector.load %arg14[%c0_55, %c256] : memref<256x576xbf16, #tpu.memory_space<vmem>>, vector<256x64xbf16>
    tpu.vector_store %arg14[%c0_55, %c256], %92 {strides = array<i32>} : memref<256x576xbf16, #tpu.memory_space<vmem>>, vector<256x64xbf16>,
    %94 = vector.extract_strided_slice %73 {offsets = [1, 2, 0], sizes = [16, 16, 64], strides = [1, 1, 1]} : vector<18x18x64xf32> to vector<16x16x64xf32>
    %95 = vector.shape_cast %94 : vector<16x16x64xf32> to vector<256x64xf32>
    %96 = arith.truncf %95 : vector<256x64xf32> to vector<256x64xbf16>
    %c0_56 = arith.constant 0 : index
    %c320 = arith.constant 320 : index
    %97 = vector.load %arg14[%c0_56, %c320] : memref<256x576xbf16, #tpu.memory_space<vmem>>, vector<256x64xbf16>
    tpu.vector_store %arg14[%c0_56, %c320], %96 {strides = array<i32>} : memref<256x576xbf16, #tpu.memory_space<vmem>>, vector<256x64xbf16>,
    %98 = vector.extract_strided_slice %73 {offsets = [2, 0, 0], sizes = [16, 16, 64], strides = [1, 1, 1]} : vector<18x18x64xf32> to vector<16x16x64xf32>
    %99 = vector.shape_cast %98 : vector<16x16x64xf32> to vector<256x64xf32>
    %100 = arith.truncf %99 : vector<256x64xf32> to vector<256x64xbf16>
    %c0_57 = arith.constant 0 : index
    %c384 = arith.constant 384 : index
    %101 = vector.load %arg14[%c0_57, %c384] : memref<256x576xbf16, #tpu.memory_space<vmem>>, vector<256x64xbf16>
    tpu.vector_store %arg14[%c0_57, %c384], %100 {strides = array<i32>} : memref<256x576xbf16, #tpu.memory_space<vmem>>, vector<256x64xbf16>,
    %102 = vector.extract_strided_slice %73 {offsets = [2, 1, 0], sizes = [16, 16, 64], strides = [1, 1, 1]} : vector<18x18x64xf32> to vector<16x16x64xf32>
    %103 = vector.shape_cast %102 : vector<16x16x64xf32> to vector<256x64xf32>
    %104 = arith.truncf %103 : vector<256x64xf32> to vector<256x64xbf16>
    %c0_58 = arith.constant 0 : index
    %c448 = arith.constant 448 : index
    %105 = vector.load %arg14[%c0_58, %c448] : memref<256x576xbf16, #tpu.memory_space<vmem>>, vector<256x64xbf16>
    tpu.vector_store %arg14[%c0_58, %c448], %104 {strides = array<i32>} : memref<256x576xbf16, #tpu.memory_space<vmem>>, vector<256x64xbf16>,
    %106 = vector.extract_strided_slice %73 {offsets = [2, 2, 0], sizes = [16, 16, 64], strides = [1, 1, 1]} : vector<18x18x64xf32> to vector<16x16x64xf32>
    %107 = vector.shape_cast %106 : vector<16x16x64xf32> to vector<256x64xf32>
    %108 = arith.truncf %107 : vector<256x64xf32> to vector<256x64xbf16>
    %c0_59 = arith.constant 0 : index
    %c512 = arith.constant 512 : index
    %109 = vector.load %arg14[%c0_59, %c512] : memref<256x576xbf16, #tpu.memory_space<vmem>>, vector<256x64xbf16>
    tpu.vector_store %arg14[%c0_59, %c512], %108 {strides = array<i32>} : memref<256x576xbf16, #tpu.memory_space<vmem>>, vector<256x64xbf16>,
    %c0_60 = arith.constant 0 : index
    %c0_61 = arith.constant 0 : index
    %110 = vector.load %arg14[%c0_60, %c0_61] : memref<256x576xbf16, #tpu.memory_space<vmem>>, vector<256x576xbf16>
    %c0_62 = arith.constant 0 : index
    %c0_63 = arith.constant 0 : index
    %111 = vector.load %arg7[%c0_62, %c0_63] : memref<576x16xbf16, #tpu.memory_space<vmem>>, vector<576x16xbf16>
    %cst_64 = arith.constant dense<0.000000e+00> : vector<256x16xf32>
    %112 = tpu.matmul %110, %111, %cst_64 {dimension_numbers = #tpu.dot_dimension_numbers<[1], [0], [0], [1], [0, 0, 1, 1], [], []>} : vector<256x576xbf16>, vector<576x16xbf16>, vector<256x16xf32> -> vector<256x16xf32>
    %c0_65 = arith.constant 0 : index
    %c0_66 = arith.constant 0 : index
    %113 = vector.load %arg8[%c0_65, %c0_66] : memref<1x16xf32, #tpu.memory_space<vmem>>, vector<1x16xf32>
    %114 = vector.broadcast %113 : vector<1x16xf32> to vector<256x16xf32>
    %115 = arith.addf %112, %114 : vector<256x16xf32>
    %116 = vector.extract_strided_slice %115 {offsets = [0, 0], sizes = [256, 8], strides = [1, 1]} : vector<256x16xf32> to vector<256x8xf32>
    %117 = arith.negf %116 : vector<256x8xf32>
    %118 = math.exp %117 : vector<256x8xf32>
    %cst_67 = arith.constant 1.000000e+00 : f32
    %119 = vector.broadcast %cst_67 : f32 to vector<256x8xf32>
    %120 = arith.addf %119, %118 : vector<256x8xf32>
    %121 = arith.divf %119, %120 : vector<256x8xf32>
    %122 = vector.extract_strided_slice %115 {offsets = [0, 8], sizes = [256, 8], strides = [1, 1]} : vector<256x16xf32> to vector<256x8xf32>
    %c0_68 = arith.constant 0 : index
    %c0_69 = arith.constant 0 : index
    %c0_70 = arith.constant 0 : index
    %123 = vector.load %arg1[%c0_68, %c0_69, %c0_70] : memref<1x256x8xf32, #tpu.memory_space<vmem>>, vector<1x256x8xf32>
    %124 = vector.shape_cast %123 : vector<1x256x8xf32> to vector<256x8xf32>
    %cst_71 = arith.constant dense<0.000000e+00> : vector<8xf32>
    %125 = vector.multi_reduction <add>, %124, %cst_71 [0] : vector<256x8xf32> to vector<8xf32>
    %126 = vector.shape_cast %125 : vector<8xf32> to vector<1x8xf32>
    %cst_72 = arith.constant 2.560000e+02 : f32
    %127 = vector.broadcast %cst_72 : f32 to vector<1x8xf32>
    %128 = arith.divf %126, %127 : vector<1x8xf32>
    %129 = vector.broadcast %128 : vector<1x8xf32> to vector<256x8xf32>
    %130 = arith.subf %124, %129 : vector<256x8xf32>
    %131 = arith.mulf %130, %130 : vector<256x8xf32>
    %cst_73 = arith.constant dense<0.000000e+00> : vector<8xf32>
    %132 = vector.multi_reduction <add>, %131, %cst_73 [0] : vector<256x8xf32> to vector<8xf32>
    %133 = vector.shape_cast %132 : vector<8xf32> to vector<1x8xf32>
    %cst_74 = arith.constant 2.560000e+02 : f32
    %134 = vector.broadcast %cst_74 : f32 to vector<1x8xf32>
    %135 = arith.divf %133, %134 : vector<1x8xf32>
    %136 = vector.broadcast %128 : vector<1x8xf32> to vector<256x8xf32>
    %137 = arith.subf %124, %136 : vector<256x8xf32>
    %cst_75 = arith.constant 9.99999974E-6 : f32
    %138 = vector.broadcast %cst_75 : f32 to vector<1x8xf32>
    %139 = arith.addf %135, %138 : vector<1x8xf32>
    %140 = math.rsqrt %139 : vector<1x8xf32>
    %141 = vector.broadcast %140 : vector<1x8xf32> to vector<256x8xf32>
    %142 = arith.mulf %137, %141 : vector<256x8xf32>
    %cst_76 = arith.constant 1.000000e+00 : f32
    %143 = vector.broadcast %cst_76 : f32 to vector<256x8xf32>
    %144 = arith.addf %143, %121 : vector<256x8xf32>
    %145 = arith.mulf %142, %144 : vector<256x8xf32>
    %c0_77 = arith.constant 0 : index
    %c0_78 = arith.constant 0 : index
    %c0_79 = arith.constant 0 : index
    %146 = vector.load %arg9[%c0_77, %c0_78, %c0_79] : memref<1x256x8xf32, #tpu.memory_space<vmem>>, vector<1x256x8xf32>
    %147 = vector.shape_cast %146 : vector<1x256x8xf32> to vector<256x8xf32>
    %148 = vector.shape_cast %145 : vector<256x8xf32> to vector<1x256x8xf32>
    tpu.vector_store %arg9[%c0_77, %c0_78, %c0_79], %148 {strides = array<i32>} : memref<1x256x8xf32, #tpu.memory_space<vmem>>, vector<1x256x8xf32>,
    %c0_80 = arith.constant 0 : index
    %c0_81 = arith.constant 0 : index
    %c0_82 = arith.constant 0 : index
    %149 = vector.load %arg10[%c0_80, %c0_81, %c0_82] : memref<1x256x8xf32, #tpu.memory_space<vmem>>, vector<1x256x8xf32>
    %150 = vector.shape_cast %149 : vector<1x256x8xf32> to vector<256x8xf32>
    %151 = vector.shape_cast %122 : vector<256x8xf32> to vector<1x256x8xf32>
    tpu.vector_store %arg10[%c0_80, %c0_81, %c0_82], %151 {strides = array<i32>} : memref<1x256x8xf32, #tpu.memory_space<vmem>>, vector<1x256x8xf32>,
    %cst_83 = arith.constant dense<0.000000e+00> : vector<8xf32>
    %152 = vector.multi_reduction <add>, %145, %cst_83 [0] : vector<256x8xf32> to vector<8xf32>
    %153 = vector.shape_cast %152 : vector<8xf32> to vector<1x8xf32>
    %c0_84 = arith.constant 0 : index
    %c0_85 = arith.constant 0 : index
    %c0_86 = arith.constant 0 : index
    %154 = vector.load %arg11[%c0_84, %c0_85, %c0_86] : memref<1x2x8xf32, #tpu.memory_space<vmem>>, vector<1x1x8xf32>
    %155 = vector.shape_cast %154 : vector<1x1x8xf32> to vector<1x8xf32>
    %156 = vector.shape_cast %153 : vector<1x8xf32> to vector<1x1x8xf32>
    tpu.vector_store %arg11[%c0_84, %c0_85, %c0_86], %156 {strides = array<i32>} : memref<1x2x8xf32, #tpu.memory_space<vmem>>, vector<1x1x8xf32>,
    %157 = arith.mulf %145, %145 : vector<256x8xf32>
    %cst_87 = arith.constant dense<0.000000e+00> : vector<8xf32>
    %158 = vector.multi_reduction <add>, %157, %cst_87 [0] : vector<256x8xf32> to vector<8xf32>
    %159 = vector.shape_cast %158 : vector<8xf32> to vector<1x8xf32>
    %c0_88 = arith.constant 0 : index
    %c1_89 = arith.constant 1 : index
    %c0_90 = arith.constant 0 : index
    %160 = vector.load %arg11[%c0_88, %c1_89, %c0_90] : memref<1x2x8xf32, #tpu.memory_space<vmem>>, vector<1x1x8xf32>
    %161 = vector.shape_cast %160 : vector<1x1x8xf32> to vector<1x8xf32>
    %162 = vector.shape_cast %159 : vector<1x8xf32> to vector<1x1x8xf32>
    tpu.vector_store %arg11[%c0_88, %c1_89, %c0_90], %162 {strides = array<i32>} : memref<1x2x8xf32, #tpu.memory_space<vmem>>, vector<1x1x8xf32>,
    return
  }
  func.func @transform_0(%arg0: i32) -> (i32, i32, i32) {
    %c0_i32 = arith.constant 0 : i32
    %c0_i32_0 = arith.constant 0 : i32
    %c0_i32_1 = arith.constant 0 : i32
    return %arg0, %c0_i32, %c0_i32_0 : i32, i32, i32
  }
  func.func @transform_1(%arg0: i32) -> (i32, i32, i32, i32) {
    %c0_i32 = arith.constant 0 : i32
    %c0_i32_0 = arith.constant 0 : i32
    %c0_i32_1 = arith.constant 0 : i32
    %c0_i32_2 = arith.constant 0 : i32
    return %arg0, %c0_i32, %c0_i32_0, %c0_i32_1 : i32, i32, i32, i32
  }
  func.func @transform_2(%arg0: i32) -> (i32, i32) {
    %c0_i32 = arith.constant 0 : i32
    %c0_i32_0 = arith.constant 0 : i32
    %c0_i32_1 = arith.constant 0 : i32
    return %c0_i32, %c0_i32_0 : i32, i32
  }
  func.func @transform_3(%arg0: i32) -> (i32, i32) {
    %c0_i32 = arith.constant 0 : i32
    %c0_i32_0 = arith.constant 0 : i32
    %c0_i32_1 = arith.constant 0 : i32
    return %c0_i32, %c0_i32_0 : i32, i32
  }
  func.func @transform_4(%arg0: i32) -> (i32, i32) {
    %c0_i32 = arith.constant 0 : i32
    %c0_i32_0 = arith.constant 0 : i32
    %c0_i32_1 = arith.constant 0 : i32
    return %c0_i32, %c0_i32_0 : i32, i32
  }
  func.func @transform_5(%arg0: i32) -> (i32, i32) {
    %c0_i32 = arith.constant 0 : i32
    %c0_i32_0 = arith.constant 0 : i32
    %c0_i32_1 = arith.constant 0 : i32
    return %c0_i32, %c0_i32_0 : i32, i32
  }
  func.func @transform_6(%arg0: i32) -> (i32, i32) {
    %c0_i32 = arith.constant 0 : i32
    %c0_i32_0 = arith.constant 0 : i32
    %c0_i32_1 = arith.constant 0 : i32
    return %c0_i32, %c0_i32_0 : i32, i32
  }
  func.func @transform_7(%arg0: i32) -> (i32, i32) {
    %c0_i32 = arith.constant 0 : i32
    %c0_i32_0 = arith.constant 0 : i32
    %c0_i32_1 = arith.constant 0 : i32
    return %c0_i32, %c0_i32_0 : i32, i32
  }
  func.func @transform_8(%arg0: i32) -> (i32, i32, i32) {
    %c0_i32 = arith.constant 0 : i32
    %c0_i32_0 = arith.constant 0 : i32
    %c0_i32_1 = arith.constant 0 : i32
    return %arg0, %c0_i32, %c0_i32_0 : i32, i32, i32
  }
  func.func @transform_9(%arg0: i32) -> (i32, i32, i32) {
    %c0_i32 = arith.constant 0 : i32
    %c0_i32_0 = arith.constant 0 : i32
    %c0_i32_1 = arith.constant 0 : i32
    return %arg0, %c0_i32, %c0_i32_0 : i32, i32, i32
  }
  func.func @transform_10(%arg0: i32) -> (i32, i32, i32) {
    %c0_i32 = arith.constant 0 : i32
    %c0_i32_0 = arith.constant 0 : i32
    %c0_i32_1 = arith.constant 0 : i32
    return %arg0, %c0_i32, %c0_i32_0 : i32, i32, i32
  }
}

</mosaic_0001>

<bundles_post_ra>
// kernel: tpu_custom_call.1
= control target key start
LH: loop header
LB: loop body
LE: loop exit
PB: predicated region body
PF: predicated region fallthrough
CT: control target
= control target key end

     0   :  { %s9607_s0 = inlined_call_operand.hbm [shape: f32[2,256,8], index: 0, kind: input, shape index: {}]   ;;  %s9608_s1 = inlined_call_operand.hbm [shape: f32[2,18,18,4], index: 1, kind: input, shape index: {}]   ;;  %s9609_s2 = inlined_call_operand.hbm [shape: bf16[36,64], index: 2, kind: input, shape index: {}]   ;;  %s9610_s3 = inlined_call_operand.hbm [shape: f32[1,64], index: 3, kind: input, shape index: {}]   ;;  %s9611_s4 = inlined_call_operand.hbm [shape: f32[64,4], index: 4, kind: input, shape index: {}]   ;;  %s9612_s5 = inlined_call_operand.hbm [shape: f32[4,64], index: 5, kind: input, shape index: {}]   ;;  %s9613_s6 = inlined_call_operand.hbm [shape: bf16[576,16], index: 6, kind: input, shape index: {}]   ;;  %s9614_s7 = inlined_call_operand.hbm [shape: f32[1,16], index: 7, kind: input, shape index: {}]   ;;  %s9615_s8 = inlined_call_operand.hbm [shape: f32[2,256,8], index: 8, kind: output, shape index: {0}]   ;;  %s9616_s9 = inlined_call_operand.hbm [shape: f32[2,256,8], index: 9, kind: output, shape index: {1}]   ;;  %s9617_s10 = inlined_call_operand.hbm [shape: f32[2,2,8], index: 10, kind: output, shape index: {2}]  }
   0x1   :  { %9665 = sst [smem:[#allocation52_spill]] %s9607_s0 }
   0x2   :  { %9666 = sst [smem:[#allocation53_spill]] %s9609_s2 }
   0x3   :  { %9667 = sst [smem:[#allocation54_spill]] %s9610_s3 }
   0x4   :  { %9668 = sst [smem:[#allocation55_spill]] %s9611_s4 }
   0x5   :  { %9669 = sst [smem:[#allocation56_spill]] %s9612_s5 }
   0x6   :  { %9670 = sst [smem:[#allocation57_spill]] %s9613_s6 }
   0x7   :  { %9671 = sst [smem:[#allocation58_spill]] %s9616_s9 }
   0x8   :  { %9672 = sst [smem:[#allocation59_spill]] %s9617_s10 }
   0x9   :  { %16 = vsyncpa [#allocation6], 0 }
   0xa   :  { %18 = vsyncpa [#allocation6 + $0x1], 0 }
   0xb   :  { %19 = vsyncpa [#allocation9], 0 }
   0xc   :  { %21 = vsyncpa [#allocation9 + $0x1], 0 }
   0xd   :  { %22 = vsyncpa [#allocation12], 0 }
   0xe   :  { %23 = vsyncpa [#allocation15], 0 }
   0xf   :  { %24 = vsyncpa [#allocation18], 0 }
  0x10   :  { %25 = vsyncpa [#allocation7], 0 }
  0x11   :  { %27 = vsyncpa [#allocation7 + $0x1], 0 }
  0x12   :  { %28 = vsyncpa [#allocation21], 0 }
  0x13   :  { %30 = vsyncpa [#allocation21 + $0x1], 0  ;;  %s6311_s13 = smov 0   ;;  %s6313_s14 = smov 0  }
  0x14   :  { %s6315_s15 = smov 0   ;;  %s6317_s16 = smov 0  }
  0x15 LB: > { %s6227_s17 = smov [#allocation10]   ;;  %s6332_s19 = sadd.s32 4294967295, %s6225_s16   ;;  %s6225_s16 = sphi %s6317_s16, %s9771_s16   ;;  %s6221_s15 = sphi %s6315_s15, %s9770_s15   ;;  %s6217_s14 = sphi %s6313_s14, %s9769_s14   ;;  %s6213_s13 = sphi %s6311_s13, %s9768_s13  }
  0x16   : > { %s309_s18 = sshll.u32 %s6227_s17, 4  ;;  %p4990_p0 = scmp.ge.s32.totalorder %s6225_s16, 1  ;;  %s6337_s18 = int_to_ptr.vmem [resolvable:$true] %s309_s18 }
  0x17   : > { %p9620_p1 = scmp.eq.s32.totalorder %s6332_s19, 0  ;;  %p297_p2 = scmp.lt.s32.totalorder %s6225_s16, 3 }
  0x18   : > { %s6228_s21 = smov [#allocation11]   ;;  %s6229_s24 = smov [#allocation14]  }
  0x19   : > { %p6339_p3 = pnand %p4990_p0, %p297_p2  ;;  %s323_s22 = sshll.u32 %s6228_s21, 4  ;;  %s6352_s22 = int_to_ptr.vmem [resolvable:$true] %s323_s22 }
  0x1a   : > { %s347_s25 = sshll.u32 %s6229_s24, 4  ;;  %s9675_s2 = sld [smem:[#allocation53_spill]]  ;;  %s6354_s25 = int_to_ptr.vmem [resolvable:$true] %s347_s25 }
  0x1b   : > { %s9673_s20 = scalar_select %p6339_p3, 1, 0 }
  0x1c   : > { %p5569_p5 = pneg %p6339_p3 }
  0x1e   : > { %p6348_p6 = pnand %p5569_p5, %p9620_p1 }
  0x20   : > { %s5851_s28 = scalar_lea.hbm %s9675_s2, 320  ;;  %p6364_p8 = pneg %p6348_p6 }
  0x21   : > { %p5852_p7 = scmp.ne.s32.totalorder %s9675_s2, %s5851_s28  ;;  %p5858_p11 = scmp.lt.u32.totalorder %s5851_s28, %s9675_s2 }
  0x23   : > { %p5854_p9 = pnand %p6364_p8, %p5852_p7 }
  0x25   : > { %p5855_p10 = pneg %p5854_p9 }
  0x27   : > { %p5860_p12 = pnand %p5858_p11, %p5855_p10 }
  0x29   : > { %5863 = shalt.err (!%p5860_p12)
}
  0x2a   : > { %s5864_s21 = scalar_lea.vmem %s6337_s18, 320  ;;  %p5872_p5 = scmp.lt.s32.totalorder %s6337_s18, %s6337_s18 }
  0x2b   : > { %p5865_p13 = scmp.ne.s32.totalorder %s6337_s18, %s5864_s21  ;;  %p5873_p4 = scmp.lt.s32.totalorder %s5864_s21, %s5864_s21 }
  0x2d   : > { %p5867_p0 = pnand %p5865_p13, %p6364_p8  ;;  %p5874_p7 = por %p5873_p4, %p5872_p5 }
  0x2f   : > { %p5868_p2 = pneg %p5867_p0 }
  0x31   : > { %p5875_p9 = pnand %p5874_p7, %p5868_p2 }
  0x33   : > { %5878 = shalt.err (!%p5875_p9)
}
  0x34   : > { %s9622_s24 = smov 64   ;;  %s9623_s26 = smov 4  }
  0x35   : > { %5572 = dma.hbm_to_vmem [thread:$0]  (!%p6348_p6), %s9675_s2, 320, %s6337_s18, [#allocation9], %s9622_s24, %s9622_s24, %s9623_s26  }
  0x36   : > { %s9677_s3 = sld [smem:[#allocation54_spill]] }
  0x3c   : > { %s5879_s12 = scalar_lea.hbm %s9677_s3, 16 }
  0x3d   : > { %p5880_p4 = scmp.ne.s32.totalorder %s9677_s3, %s5879_s12  ;;  %p5886_p12 = scmp.lt.u32.totalorder %s5879_s12, %s9677_s3 }
  0x3f   : > { %p5882_p10 = pnand %p5880_p4, %p6364_p8 }
  0x41   : > { %p5883_p11 = pneg %p5882_p10 }
  0x43   : > { %p5888_p13 = pnand %p5886_p12, %p5883_p11 }
  0x45   : > { %5891 = shalt.err (!%p5888_p13)
}
  0x46   : > { %s5892_s18 = scalar_lea.vmem %s6352_s22, 16  ;;  %s5899_s27 = scalar_lea.vmem %s6352_s22, 32 }
  0x47   : > { %p5893_p0 = scmp.ne.s32.totalorder %s6352_s22, %s5892_s18  ;;  %p5900_p7 = scmp.lt.s32.totalorder %s6352_s22, %s6352_s22 }
  0x48   : > { %p5901_p9 = scmp.lt.s32.totalorder %s5899_s27, %s5892_s18 }
  0x49   : > { %p5895_p2 = pnand %p5893_p0, %p6364_p8 }
  0x4a   : > { %p5902_p4 = por %p5901_p9, %p5900_p7 }
  0x4b   : > { %p5896_p5 = pneg %p5895_p2 }
  0x4d   : > { %p5903_p10 = pnand %p5902_p4, %p5896_p5 }
  0x4f   : > { %5906 = shalt.err (!%p5903_p10)
}
  0x50   : > { %5575 = dma.hbm_to_vmem [thread:$0]  (!%p6348_p6), %s9677_s3, 16, %s6352_s22, [#allocation12]  }
  0x51   : > { %s9678_s5 = sld [smem:[#allocation56_spill]] }
  0x57   : > { %s5907_s30 = scalar_lea.hbm %s9678_s5, 64 }
  0x58   : > { %p5908_p11 = scmp.ne.s32.totalorder %s9678_s5, %s5907_s30  ;;  %p5914_p0 = scmp.lt.u32.totalorder %s5907_s30, %s9678_s5 }
  0x5a   : > { %p5910_p12 = pnand %p5908_p11, %p6364_p8 }
  0x5c   : > { %p5911_p13 = pneg %p5910_p12 }
  0x5e   : > { %p5916_p2 = pnand %p5914_p0, %p5911_p13 }
  0x60   : > { %5919 = shalt.err (!%p5916_p2)
}
  0x61   : > { %s5920_s22 = scalar_lea.vmem %s6354_s25, 64  ;;  %p5928_p4 = scmp.lt.s32.totalorder %s6354_s25, %s6354_s25 }
  0x62   : > { %p5921_p5 = scmp.ne.s32.totalorder %s6354_s25, %s5920_s22  ;;  %p5929_p10 = scmp.lt.s32.totalorder %s5920_s22, %s5920_s22 }
  0x64   : > { %p5923_p7 = pnand %p5921_p5, %p6364_p8  ;;  %p5930_p11 = por %p5929_p10, %p5928_p4 }
  0x66   : > { %p5924_p9 = pneg %p5923_p7 }
  0x68   : > { %p5931_p12 = pnand %p5930_p11, %p5924_p9 }
  0x6a   : > { %5934 = shalt.err (!%p5931_p12)
}
  0x6b   : > { %5581 = dma.hbm_to_vmem [thread:$0]  (!%p6348_p6), %s9678_s5, 64, %s6354_s25, [#allocation15]  }
  0x6c   : > { %s6232_s10 = smov [#allocation13]   ;;  %s9679_s4 = sld [smem:[#allocation55_spill]] }
  0x6d   : > { %s333_s28 = sshll.u32 %s6232_s10, 4  ;;  %s334_s28 = int_to_ptr.vmem [resolvable:$true] %s333_s28 }
  0x72   : > { %s5935_s12 = scalar_lea.hbm %s9679_s4, 1024 }
  0x73   : > { %p5936_p13 = scmp.ne.s32.totalorder %s9679_s4, %s5935_s12  ;;  %p5942_p5 = scmp.lt.u32.totalorder %s5935_s12, %s9679_s4 }
  0x75   : > { %p5938_p0 = pnand %p5936_p13, %p6364_p8 }
  0x77   : > { %p5939_p2 = pneg %p5938_p0 }
  0x79   : > { %p5944_p7 = pnand %p5942_p5, %p5939_p2 }
  0x7b   : > { %5947 = shalt.err (!%p5944_p7)
}
  0x7c   : > { %s5948_s25 = scalar_lea.vmem %s334_s28, 1024  ;;  %p5956_p11 = scmp.lt.s32.totalorder %s334_s28, %s334_s28 }
  0x7d   : > { %p5949_p9 = scmp.ne.s32.totalorder %s334_s28, %s5948_s25  ;;  %p5957_p12 = scmp.lt.s32.totalorder %s5948_s25, %s5948_s25 }
  0x7f   : > { %p5951_p4 = pnand %p5949_p9, %p6364_p8  ;;  %p5958_p1 = por %p5957_p12, %p5956_p11 }
  0x81   : > { %p5952_p10 = pneg %p5951_p4 }
  0x83   : > { %p5959_p3 = pnand %p5958_p1, %p5952_p10 }
  0x85   : > { %5962 = shalt.err (!%p5959_p3)
}
  0x86   : > { %s9624_s27 = smov 128   ;;  %s9627_s9 = smov 8  }
  0x87   : > { %5578 = dma.hbm_to_vmem [thread:$0]  (!%p6348_p6), %s9679_s4, 1024, %s334_s28, [#allocation12], %s9624_s27, %s9624_s27, %s9627_s9  }
  0x88   : > { %s6235_s30 = smov [#allocation16]   ;;  %s6236_s17 = smov [#allocation17]  }
  0x89   : > { %s357_s12 = sshll.u32 %s6235_s30, 4  ;;  %s371_s21 = sshll.u32 %s6236_s17, 4  ;;  %s358_s12 = int_to_ptr.vmem [resolvable:$true] %s357_s12  ;;  %s6456_s21 = int_to_ptr.vmem [resolvable:$true] %s371_s21 }
  0x8a   : > { %s9680_s6 = sld [smem:[#allocation57_spill]] }
  0x90   : > { %s5963_s25 = scalar_lea.hbm %s9680_s6, 4608 }
  0x91   : > { %p5964_p1 = scmp.ne.s32.totalorder %s9680_s6, %s5963_s25  ;;  %p5970_p0 = scmp.lt.u32.totalorder %s5963_s25, %s9680_s6 }
  0x93   : > { %p5966_p3 = pnand %p5964_p1, %p6364_p8 }
  0x95   : > { %p5967_p13 = pneg %p5966_p3 }
  0x97   : > { %p5972_p2 = pnand %p5970_p0, %p5967_p13 }
  0x99   : > { %5975 = shalt.err (!%p5972_p2)
}
  0x9a   : > { %s5976_s29 = scalar_lea.vmem %s358_s12, 4608  ;;  %p5984_p4 = scmp.lt.s32.totalorder %s358_s12, %s358_s12 }
  0x9b   : > { %p5977_p5 = scmp.ne.s32.totalorder %s358_s12, %s5976_s29  ;;  %p5985_p10 = scmp.lt.s32.totalorder %s5976_s29, %s5976_s29 }
  0x9d   : > { %p5979_p7 = pnand %p5977_p5, %p6364_p8  ;;  %p5986_p11 = por %p5985_p10, %p5984_p4 }
  0x9f   : > { %p5980_p9 = pneg %p5979_p7 }
  0xa1   : > { %p5987_p12 = pnand %p5986_p11, %p5980_p9 }
  0xa3   : > { %5990 = shalt.err (!%p5987_p12)
}
  0xa4   : > { %s9681_s24 = smov 4   ;;  %s9682_s26 = smov 64  }
  0xa5   : > { %5584 = dma.hbm_to_vmem [thread:$0]  (!%p6348_p6), %s9680_s6, 4608, %s358_s12, [#allocation15], %s9682_s26, %s9682_s26, %s9681_s24  }
  0xa6   : > { %s5991_s25 = scalar_lea.hbm %s9614_s7, 16 }
  0xa7   : > { %p5992_p1 = scmp.ne.s32.totalorder %s9614_s7, %s5991_s25  ;;  %p5998_p0 = scmp.lt.u32.totalorder %s5991_s25, %s9614_s7 }
  0xa9   : > { %p5994_p3 = pnand %p5992_p1, %p6364_p8 }
  0xab   : > { %p5995_p13 = pneg %p5994_p3 }
  0xad   : > { %p6000_p2 = pnand %p5998_p0, %p5995_p13 }
  0xaf   : > { %6003 = shalt.err (!%p6000_p2)
}
  0xb0   : > { %s6004_s12 = scalar_lea.vmem %s6456_s21, 16  ;;  %s6011_s24 = scalar_lea.vmem %s6456_s21, 32 }
  0xb1   : > { %p6005_p5 = scmp.ne.s32.totalorder %s6456_s21, %s6004_s12  ;;  %p6012_p4 = scmp.lt.s32.totalorder %s6456_s21, %s6456_s21 }
  0xb2   : > { %p6013_p10 = scmp.lt.s32.totalorder %s6011_s24, %s6004_s12 }
  0xb3   : > { %p6007_p7 = pnand %p6005_p5, %p6364_p8 }
  0xb4   : > { %p6014_p11 = por %p6013_p10, %p6012_p4 }
  0xb5   : > { %p6008_p9 = pneg %p6007_p7 }
  0xb7   : > { %p6015_p12 = pnand %p6014_p11, %p6008_p9 }
  0xb9   : > { %6018 = shalt.err (!%p6015_p12)
}
  0xba   : > { %5587 = dma.hbm_to_vmem [thread:$0]  (!%p6348_p6), %s9614_s7, 16, %s6456_s21, [#allocation18]  }
  0xbb   : > { %s9626_s23 = sadd.s32 4294967294, %s6225_s16   ;;  %s6505_s11 = sadd.s32 1, %s6225_s16  }
  0xbc   : > { %s40_s30 = ssub.s32 %s6225_s16, %s6505_s11  ;;  %s43_s17 = sadd.s32 1, %s6221_s15 }
  0xbd   : > { %p41_p8 = scmp.eq.s32.totalorder %s40_s30, 0  ;;  %p50_p1 = scmp.ne.s32.totalorder %s6221_s15, %s6217_s14 }
  0xbe   : > { %p51_p3 = scmp.eq.s32.totalorder %s6225_s16, 0  ;;  %p56_p13 = scmp.ne.s32.totalorder %s6217_s14, %s6213_s13 }
  0xbf   : > { %s6516_s18 = scalar_select %p41_p8, %s6221_s15, %s43_s17  }
  0xc0   : > { %p6518_p0 = por %p51_p3, %p50_p1  ;;  %p9684_p2 = scmp.eq.s32.totalorder %s6332_s19, 0 }
  0xc1   : > { %p232_p5 = scmp.eq.s32.totalorder %s6332_s19, 1  ;;  %p238_p7 = scmp.eq.s32.totalorder %s9626_s23, 1 }
  0xc2   : > { %p6524_p6 = por %p9684_p2, %p56_p13  ;;  %p5611_p9 = scmp.lt.s32.totalorder %s6225_s16, 2 }
  0xc3   : > { %s6533_s25 = sand.u32 1, %s6221_s15   ;;  %p6535_p4 = por %p232_p5, %p50_p1 }
  0xc4   : > { %p6539_p10 = por %p238_p7, %p56_p13  ;;  %s4998_s29 = sshll.u32 %s6533_s25, 8 }
  0xc5   : > { %s9686_s10 = scalar_select %p6535_p4, 1, 0 }
  0xc6   : > { %s9687_s28 = scalar_select %p6539_p10, 1, 0 }
  0xc7   : > { %s5132_s12 = sshll.u32 %s6225_s16, 12  ;;  %s9688_s0 = sld [smem:[#allocation52_spill]] }
  0xc8   : > { %s386_s30 = scalar_lea.vmem [#allocation5], %s4998_s29  ;;  %p6554_p11 = pnand %p5611_p9, %p6518_p0 }
  0xc9   : > { %s393_s17 = sshll.u32 %s386_s30, 4  ;;  %s5532_s2 = smul.u32 432, %s6533_s25  ;;  %s6550_s17 = int_to_ptr.vmem [resolvable:$true] %s393_s17 }
  0xca   : > { %s383_s24 = scalar_lea.sflag [#allocation6], %s6533_s25  ;;  %p6021_p8 = pneg %p6554_p11 }
  0xcd   : > { %s6548_s26 = scalar_lea.hbm %s9688_s0, %s5132_s12  ;;  %s6024_s22 = scalar_lea.hbm %s9688_s0, 8192 }
  0xce   : > { %s6019_s12 = scalar_lea.hbm %s6548_s26, 4096  ;;  %p6025_p13 = scmp.lt.u32.totalorder %s6548_s26, %s9688_s0 }
  0xcf   : > { %p6020_p12 = scmp.ne.s32.totalorder %s6548_s26, %s6019_s12  ;;  %p6026_p0 = scmp.lt.u32.totalorder %s6024_s22, %s6019_s12 }
  0xd0   : > { %p6028_p5 = scmp.lt.u32.totalorder %s6019_s12, %s6548_s26 }
  0xd1   : > { %p6022_p1 = pnand %p6021_p8, %p6020_p12  ;;  %p6027_p2 = por %p6026_p0, %p6025_p13 }
  0xd3   : > { %p6023_p3 = pneg %p6022_p1  ;;  %p6029_p7 = por %p6028_p5, %p6027_p2 }
  0xd5   : > { %p6030_p9 = pnand %p6029_p7, %p6023_p3 }
  0xd7   : > { %6033 = shalt.err (!%p6030_p9)
}
  0xd8   : > { %s6034_s9 = scalar_lea.vmem %s6550_s17, 4096  ;;  %s6237_s29 = smov [#allocation5]  }
  0xd9   : > { %p6035_p12 = scmp.ne.s32.totalorder %s6550_s17, %s6034_s9  ;;  %s6039_s27 = sshll.u32 %s6237_s29, 4  ;;  %s6040_s27 = int_to_ptr.vmem [resolvable:$false] %s6039_s27 }
  0xda   : > { %s6041_s3 = scalar_lea.vmem %s6040_s27, 8192  ;;  %p6042_p4 = scmp.lt.s32.totalorder %s6550_s17, %s6040_s27 }
  0xdb   : > { %p6037_p1 = pnand %p6035_p12, %p6021_p8  ;;  %p6043_p13 = scmp.lt.s32.totalorder %s6041_s3, %s6034_s9 }
  0xdd   : > { %p6038_p10 = pneg %p6037_p1  ;;  %p6044_p0 = por %p6043_p13, %p6042_p4 }
  0xdf   : > { %p6045_p2 = pnand %p6044_p0, %p6038_p10 }
  0xe1   : > { %6048 = shalt.err (!%p6045_p2)
}
  0xe2   : > { %s9690_s12 = smov 8   ;;  %s9691_s22 = smov 128  }
  0xe3   : > { %5591 = dma.hbm_to_vmem [thread:$0]  (!%p6554_p11), %s6548_s26, 4096, %s6550_s17, %s383_s24, %s9691_s22, %s9691_s22, %s9690_s12  }
  0xe4   : > { %s5533_s30 = smul.u32 6912, %s6225_s16  ;;  %s407_s9 = scalar_lea.vmem [#allocation8], %s5532_s2 }
  0xe5   : > { %s414_s29 = sshll.u32 %s407_s9, 4  ;;  %s9692_s4 = sand.u32 1, %s6225_s16   ;;  %s6599_s29 = int_to_ptr.vmem [resolvable:$true] %s414_s29 }
  0xe6   : > { %s6597_s0 = scalar_lea.hbm %s9608_s1, %s5533_s30  ;;  %s6603_s5 = scalar_lea.sflag [#allocation9], %s9692_s4 }
  0xe7   : > { %s6049_s6 = scalar_lea.hbm %s6597_s0, 6912  ;;  %s6054_s26 = scalar_lea.hbm %s9608_s1, 13824 }
  0xe8   : > { %p6050_p4 = scmp.ne.s32.totalorder %s6597_s0, %s6049_s6  ;;  %p6055_p5 = scmp.lt.u32.totalorder %s6597_s0, %s9608_s1 }
  0xe9   : > { %p6056_p7 = scmp.lt.u32.totalorder %s6054_s26, %s6049_s6  ;;  %p6058_p12 = scmp.lt.u32.totalorder %s6049_s6, %s6597_s0 }
  0xea   : > { %p6052_p10 = pnand %p6050_p4, %p6021_p8 }
  0xeb   : > { %p6057_p9 = por %p6056_p7, %p6055_p5 }
  0xec   : > { %p6053_p3 = pneg %p6052_p10 }
  0xed   : > { %p6059_p1 = por %p6058_p12, %p6057_p9 }
  0xef   : > { %p6060_p13 = pnand %p6059_p1, %p6053_p3 }
  0xf1   : > { %6063 = shalt.err (!%p6060_p13)
}
  0xf2   : > { %s6064_s4 = scalar_lea.vmem %s6599_s29, 6912  ;;  %s6238_s30 = smov [#allocation8]  }
  0xf3   : > { %p6065_p0 = scmp.ne.s32.totalorder %s6599_s29, %s6064_s4  ;;  %s6069_s9 = sshll.u32 %s6238_s30, 4  ;;  %s6070_s9 = int_to_ptr.vmem [resolvable:$false] %s6069_s9 }
  0xf4   : > { %s6071_s27 = scalar_lea.vmem %s6070_s9, 13824  ;;  %p6072_p10 = scmp.lt.s32.totalorder %s6599_s29, %s6070_s9 }
  0xf5   : > { %p6067_p2 = pnand %p6065_p0, %p6021_p8  ;;  %p6073_p5 = scmp.lt.s32.totalorder %s6071_s27, %s6064_s4 }
  0xf7   : > { %p6068_p4 = pneg %p6067_p2  ;;  %p6074_p7 = por %p6073_p5, %p6072_p10 }
  0xf9   : > { %p6075_p9 = pnand %p6074_p7, %p6068_p4 }
  0xfb   : > { %6078 = shalt.err (!%p6075_p9)
}
  0xfc   : > { %5594 = dma.hbm_to_vmem [thread:$0]  (!%p6554_p11), %s6597_s0, 6912, %s6599_s29, %s6603_s5, %s9691_s22, %s9691_s22, %s9690_s12  }
  0xfd   : > { %p9693_p8 = scmp.ne.s32.totalorder %s9673_s20, 0 }
  0xff   : > { %426 = sbr.rel (%p9693_p8) target bundleno = 2071 (0x817), region = 52 }
 0x106   : > { %s6635_s6 = sand.u32 1, %s6217_s14  }
 0x107   : > { %s6638_s3 = sshll.u32 %s6635_s6, 8  ;;  %s429_s23 = scalar_lea.sflag [#allocation6], %s6635_s6 }
 0x108   : > { %s6642_s2 = scalar_lea.vmem [#allocation5], %s6638_s3 }
 0x109   : > { %6180 = dma.done.wait (%p6524_p6), %s429_s23, 4096  }
 0x10a   : > { %6182 = vsyncadd (%p6524_p6), %s429_s23, 4294963200  ;;  %s437_s0 = sand.u32 1, %s6332_s19   ;;  %s5534_s5 = smul.u32 432, %s6635_s6 }
 0x10b   : > { %s438_s20 = scalar_lea.sflag [#allocation9], %s437_s0 }
 0x10c   : > { %s6652_s12 = scalar_lea.vmem [#allocation8], %s5534_s5 }
 0x10d   : > { %6184 = dma.done.wait (%p6524_p6), %s438_s20, 6912  }
 0x10e   : > { %6186 = vsyncadd (%p6524_p6), %s438_s20, 4294960384  ;;  %p9694_p11 = scmp.eq.s32.totalorder %s6332_s19, 0 }
 0x110   : > { %6188 = dma.done.wait (%p9694_p11), [#allocation9], 320   ;;  %p9695_p3 = pmov %p9694_p11 }
 0x112   : > { %6190 = vsyncadd (%p9695_p3), [#allocation9], 4294966976  ;;  %p9696_p12 = pmov %p9695_p3 }
 0x113   : > { %p9697_p1 = pmov %p9695_p3 }
 0x114   : > { %6192 = dma.done.wait (%p9696_p12), [#allocation12], 1040  }
 0x115   : > { %6194 = vsyncadd (%p9697_p1), [#allocation12], 4294966256  ;;  %p9698_p13 = pmov %p9697_p1 }
 0x116   : > { %p9699_p0 = pmov %p9697_p1 }
 0x117   : > { %6196 = dma.done.wait (%p9698_p13), [#allocation15], 4672  }
 0x118   : > { %6198 = vsyncadd (%p9699_p0), [#allocation15], 4294962624  ;;  %p9700_p6 = pmov %p9699_p0 }
 0x119   : > { %p9701_p2 = pmov %p9699_p0 }
 0x11a   : > { %6200 = dma.done.wait (%p9700_p6), [#allocation18], 16  }
 0x11b   : > { %6202 = vsyncadd (%p9701_p2), [#allocation18], 4294967280  ;;  %v521_v0 = vld [vmem:[%s6652_s12 + $0x18] sm:$0xff]  ;;  %v522_v1 = vld [vmem:[%s6652_s12 + $0x20] sm:$0xff]  ;;  %vm588_vm0 = vcmask 31744   ;;  %vm653_vm1 = vcmask 1046528  }
 0x11c   : > { %v6677_v2 = vld [vmem:[%s6652_s12 + $0x30] sm:$0xff]  ;;  %v573_v3 = vpack.c.bf16 %v522_v1, %v521_v0  ;;  %v659_v4 = vrot.slane %v521_v0, 1  ;;  %v660_v5 = vrot.slane %v522_v1, 1  ;;  %v869_v6 = vrot.slane %v521_v0, 2  ;;  %v525_v7 = vld [vmem:[%s6652_s12 + $0x38] sm:$0xff]  ;;  %v6681_v8 = vld [vmem:[%s6652_s12] sm:$0xff] }
 0x11d   : > { %v6684_v9 = vld [vmem:[%s6652_s12 + $0x8] sm:$0xff]  ;;  %v870_v10 = vrot.slane %v522_v1, 2  ;;  %v6687_v11 = vpack.c.bf16 %v525_v7, %v6677_v2  ;;  %v520_v12 = vld [vmem:[%s6652_s12 + $0x10] sm:$0x3]  ;;  %vm863_vm2 = vcmask 1045504   ;;  %s6239_s21 = smov 12  }
 0x11e   : > { %1090 = vrot.lane.b32.xlu0 %v573_v3, %s6239_s21  ;;  %590 = vst.msk [vmem:[#allocation3 + $0x8] sm:$0xff] %vm588_vm0, %v573_v3  ;;  %v664_v13 = vrot.slane %v6677_v2, 1  ;;  %v665_v14 = vrot.slane %v525_v7, 1  ;;  %v654_v15 = vrot.slane %v6681_v8, 1  ;;  %v655_v16 = vrot.slane %v6684_v9, 1  ;;  %v6710_v31 = vld [vmem:[%s6652_s12 + $0x48] sm:$0xff] }
 0x11f   : > { %v523_v17 = vld [vmem:[%s6652_s12 + $0x28] sm:$0x3]  ;;  %1092 = vrot.lane.b32.xlu1 %v6687_v11, %s6239_s21  ;;  %591 = vst.msk [vmem:[#allocation3 + $0x10] sm:$0xff] %vm588_vm0, %v6687_v11  ;;  %v657_v18 = vrot.slane %v520_v12, 1  ;;  %v864_v19 = vrot.slane %v6681_v8, 2  ;;  %v865_v20 = vrot.slane %v6684_v9, 2  ;;  %v661_v23 = vsel %vm653_vm1, %v659_v4, %v660_v5 }
 0x120   : > { %v867_v21 = vrot.slane %v520_v12, 2  ;;  %v656_v22 = vsel %vm653_vm1, %v654_v15, %v655_v16  ;;  %v662_v24 = vrot.slane %v523_v17, 1  ;;  %v871_v25 = vsel %vm863_vm2, %v869_v6, %v870_v10  ;;  %v526_v26 = vld [vmem:[%s6652_s12 + $0x40] sm:$0x3]  ;;  %v6713_v32 = vld [vmem:[%s6652_s12 + $0x50] sm:$0xff]  ;;  %s6240_s22 = smov 4  }
 0x121   : > { %v658_v27 = vsel %vm653_vm1, %v655_v16, %v657_v18  ;;  %v866_v28 = vsel %vm863_vm2, %v864_v19, %v865_v20  ;;  %v872_v30 = vrot.slane %v523_v17, 2  ;;  %v667_v37 = vrot.slane %v526_v26, 1  ;;  %s6241_s29 = smov 8   ;;  %v6725_v42 = vld [vmem:[%s6652_s12 + $0x60] sm:$0xff]  ;;  %v6728_v43 = vld [vmem:[%s6652_s12 + $0x68] sm:$0xff]  ;;  %v6739_v49 = vld [vmem:[%s6652_s12 + $0x78] sm:$0xff] }
 0x122   : > { %v868_v29 = vsel %vm863_vm2, %v865_v20, %v867_v21  ;;  %v766_v33 = vpack.c.bf16 %v658_v27, %v656_v22  ;;  %v663_v35 = vsel %vm653_vm1, %v660_v5, %v662_v24  ;;  %v874_v38 = vrot.slane %v6677_v2, 2  ;;  %v6742_v50 = vld [vmem:[%s6652_s12 + $0x80] sm:$0xff]  ;;  %v529_v54 = vld [vmem:[%s6652_s12 + $0x58] sm:$0x3]  ;;  %v6759_v57 = vld [vmem:[%s6652_s12 + $0x90] sm:$0xff]  ;;  %s6242_s25 = smov 16  }
 0x123   : > { %v976_v34 = vpack.c.bf16 %v868_v29, %v866_v28  ;;  %v873_v36 = vsel %vm863_vm2, %v870_v10, %v872_v30  ;;  %v767_v39 = vpack.c.bf16 %v663_v35, %v661_v23  ;;  %v6722_v41 = vpack.c.bf16 %v6713_v32, %v6710_v31  ;;  %v6762_v58 = vld [vmem:[%s6652_s12 + $0x98] sm:$0xff]  ;;  %v539_v62 = vld [vmem:[%s6652_s12 + $0xa8] sm:$0xff]  ;;  %v540_v63 = vld [vmem:[%s6652_s12 + $0xb0] sm:$0xff]  ;;  %s6243_s26 = smov 20   ;;  %s6244_s17 = smov 24  }
 0x124   : > { %798 = vrot.lane.b32.xlu0 %v766_v33, %s6240_s22  ;;  %v977_v40 = vpack.c.bf16 %v873_v36, %v871_v25  ;;  %v875_v44 = vrot.slane %v525_v7, 2  ;;  %v666_v45 = vsel %vm653_vm1, %v664_v13, %v665_v14  ;;  %v668_v46 = vsel %vm653_vm1, %v665_v14, %v667_v37  ;;  %v5675_v1 = vld [vmem:[#allocation10] sm:$0xff]   ;;  %v541_v7 = vld [vmem:[%s6652_s12 + $0xb8] sm:$0x3]  ;;  %v543_v15 = vld [vmem:[%s6652_s12 + $0xc8] sm:$0xff]  ;;  %s6245_s24 = smov 28  }
 0x125   : > { %1008 = vrot.lane.b32.xlu1 %v976_v34, %s6241_s29  ;;  %v877_v47 = vrot.slane %v526_v26, 2  ;;  %592 = vst.msk [vmem:[#allocation3 + $0x18] sm:$0xff] %vm588_vm0, %v6722_v41  ;;  %v6736_v48 = vpack.c.bf16 %v6728_v43, %v6725_v42  ;;  %v6746_v51 = vpack.c.bf16 %v668_v46, %v666_v45  ;;  %v6755_v55 = vpack.c.bf16 %v6742_v50, %v6739_v49  ;;  %v542_v10 = vld [vmem:[%s6652_s12 + $0xc0] sm:$0xff]  ;;  %v5676_v16 = vld [vmem:[#allocation10 + $0x8] sm:$0xff]   ;;  %v544_v25 = vld [vmem:[%s6652_s12 + $0xd0] sm:$0x3] }
 0x126   : > { %v876_v52 = vsel %vm863_vm2, %v874_v38, %v875_v44  ;;  %v669_v56 = vrot.slane %v6710_v31, 1  ;;  %v670_v60 = vrot.slane %v6713_v32, 1  ;;  %v672_v61 = vrot.slane %v529_v54, 1  ;;  %5409 = vmatprep.subr.bf16.mxu0 %v5675_v1  ;;  %v545_v30 = vld [vmem:[%s6652_s12 + $0xd8] sm:$0xff]  ;;  %v546_v35 = vld [vmem:[%s6652_s12 + $0xe0] sm:$0xff]  ;;  %s6246_s4 = smov 32  }
 0x127   : > { %v878_v53 = vsel %vm863_vm2, %v875_v44, %v877_v47  ;;  %593 = vst.msk [vmem:[#allocation3 + $0x20] sm:$0xff] %vm588_vm0, %v6736_v48  ;;  %594 = vst.msk [vmem:[#allocation3 + $0x28] sm:$0xff] %vm588_vm0, %v6755_v55  ;;  %v879_v0 = vrot.slane %v6710_v31, 2  ;;  %v880_v2 = vrot.slane %v6713_v32, 2  ;;  %v882_v3 = vrot.slane %v529_v54, 2  ;;  %5410 = vmatpush3.bf16.msra.mxu0 %v5675_v1  ;;  %v548_v47 = vld [vmem:[%s6652_s12 + $0xf0] sm:$0xff] }
 0x128   : > { %800 = vrot.lane.b32.xlu0 %v767_v39, %s6240_s22  ;;  %v6767_v59 = vpack.c.bf16 %v878_v53, %v876_v52  ;;  %v6778_v4 = vpack.c.bf16 %v6762_v58, %v6759_v57  ;;  %v671_v5 = vsel %vm653_vm1, %v669_v56, %v670_v60  ;;  %v673_v6 = vsel %vm653_vm1, %v670_v60, %v672_v61  ;;  %v547_v36 = vld [vmem:[%s6652_s12 + $0xe8] sm:$0x3]  ;;  %v549_v60 = vld [vmem:[%s6652_s12 + $0xf8] sm:$0xff]  ;;  %s6250_s30 = smov 64   ;;  %s6251_s9 = smov 120  }
 0x129   : > { %1010 = vrot.lane.b32.xlu1 %v977_v40, %s6241_s29  ;;  %v6789_v12 = vpack.c.bf16 %v540_v63, %v539_v62  ;;  %v689_v13 = vrot.slane %v539_v62, 1  ;;  %v690_v14 = vrot.slane %v540_v63, 1  ;;  %v881_v17 = vsel %vm863_vm2, %v879_v0, %v880_v2  ;;  %5411 = vmatprep.subr.bf16.mxu0 %v5676_v16  ;;  %s9051_s27 = scalar_lea.vmem [#allocation19], %s6638_s3  ;;  %s5133_s23 = sshll.u32 %s6332_s19, 12 }
 0x12a   : > { %595 = vst.msk [vmem:[#allocation3 + $0x30] sm:$0xff] %vm588_vm0, %v6778_v4  ;;  %v883_v18 = vsel %vm863_vm2, %v880_v2, %v882_v3  ;;  %v674_v19 = vrot.slane %v6725_v42, 1  ;;  %v899_v20 = vrot.slane %v539_v62, 2  ;;  %v6795_v21 = vpack.c.bf16 %v673_v6, %v671_v5  ;;  %v6839_v2 = vld [vmem:[%s6652_s12 + $0x70] sm:$0x3]  ;;  %s9397_s5 = scalar_lea.vmem [#allocation20], %s6638_s3 }
 0x12b   : > { %v675_v22 = vrot.slane %v6728_v43, 1  ;;  %v900_v23 = vrot.slane %v540_v63, 2  ;;  %596 = vst.msk [vmem:[#allocation3 + $0x38] sm:$0xff] %vm588_vm0, %v6789_v12  ;;  %v691_v24 = vsel %vm653_vm1, %v689_v13, %v690_v14  ;;  %v692_v26 = vrot.slane %v541_v7, 1  ;;  %5412 = vmatpush3.bf16.msra.mxu0 %v5676_v16  ;;  %v551_v16 = vld [vmem:[%s6652_s12 + $0x108] sm:$0xff]  ;;  %s4723_s3 = scalar_lea.sflag [#allocation7], %s6635_s6 }
 0x12c   : > { %1167 = vrot.lane.b32.xlu0 %v767_v39, %s6242_s25  ;;  %v902_v27 = vrot.slane %v541_v7, 2  ;;  %v6806_v28 = vpack.c.bf16 %v543_v15, %v542_v10  ;;  %v694_v29 = vrot.slane %v542_v10, 1  ;;  %v695_v32 = vrot.slane %v543_v15, 1  ;;  %v550_v7 = vld [vmem:[%s6652_s12 + $0x100] sm:$0x3]  ;;  %p9762_p10 = scmp.ne.s32.totalorder %s9686_s10, 0 }
 0x12d   : > { %1169 = vrot.lane.b32.xlu1 %v6746_v51, %s6242_s25  ;;  %v901_v31 = vsel %vm863_vm2, %v899_v20, %v900_v23  ;;  %v904_v33 = vrot.slane %v542_v10, 2  ;;  %v905_v34 = vrot.slane %v543_v15, 2  ;;  %v697_v38 = vrot.slane %v544_v25, 1  ;;  %v552_v20 = vld [vmem:[%s6652_s12 + $0x110] sm:$0xff] }
 0x12e   : > { %v903_v37 = vsel %vm863_vm2, %v900_v23, %v902_v27  ;;  %597 = vst.msk [vmem:[#allocation3 + $0x40] sm:$0xff] %vm588_vm0, %v6806_v28  ;;  %v907_v39 = vrot.slane %v544_v25, 2  ;;  %v696_v45 = vsel %vm653_vm1, %v694_v29, %v695_v32  ;;  %v6829_v54 = vpack.c.bf16 %v546_v35, %v545_v30  ;;  %v5677_v27 = vld [vmem:[#allocation10 + $0x10] ss:$0 sps:$4 sm:$0x33]  }
 0x12f   : > { %v6818_v44 = vpack.c.bf16 %v903_v37, %v901_v31  ;;  %v906_v46 = vsel %vm863_vm2, %v904_v33, %v905_v34  ;;  %v698_v52 = vsel %vm653_vm1, %v695_v32, %v697_v38  ;;  %v699_v56 = vrot.slane %v545_v30, 1  ;;  %v553_v31 = vld [vmem:[%s6652_s12 + $0x118] sm:$0x3] }
 0x130   : > { %1241 = vrot.lane.b32.xlu0 %v977_v40, %s6243_s26  ;;  %v908_v53 = vsel %vm863_vm2, %v905_v34, %v907_v39  ;;  %v6832_v61 = vpack.c.bf16 %v698_v52, %v696_v45  ;;  %v700_v63 = vrot.slane %v546_v35, 1  ;;  %v909_v0 = vrot.slane %v545_v30, 2  ;;  %598 = vst.msk [vmem:[#allocation3 + $0x48] sm:$0xff] %vm588_vm0, %v6829_v54 }
 0x131   : > { %1243 = vrot.lane.b32.xlu1 %v6767_v59, %s6243_s26  ;;  %v6834_v62 = vpack.c.bf16 %v908_v53, %v906_v46  ;;  %v6836_v1 = vpack.c.bf16 %v883_v18, %v881_v17  ;;  %v910_v3 = vrot.slane %v546_v35, 2  ;;  %v572_v5 = vpack.c.bf16 %v6684_v9, %v6681_v8 }
 0x132   : > { %v702_v6 = vrot.slane %v547_v36, 1  ;;  %v884_v10 = vrot.slane %v6725_v42, 2  ;;  %v885_v13 = vrot.slane %v6728_v43, 2  ;;  %v912_v15 = vrot.slane %v547_v36, 2 }
 0x133   : > { %589 = vst.msk [vmem:[#allocation3] sm:$0xff] %vm588_vm0, %v572_v5  ;;  %v911_v9 = vsel %vm863_vm2, %v909_v0, %v910_v3  ;;  %v6857_v17 = vpack.c.bf16 %v549_v60, %v548_v47  ;;  %v704_v18 = vrot.slane %v548_v47, 1  ;;  %v705_v25 = vrot.slane %v549_v60, 1 }
 0x134   : > { %1308 = vrot.lane.b32.xlu0 %v6687_v11, %s6244_s17  ;;  %v693_v11 = vsel %vm653_vm1, %v690_v14, %v692_v26  ;;  %v701_v14 = vsel %vm653_vm1, %v699_v56, %v700_v63  ;;  %v703_v8 = vsel %vm653_vm1, %v700_v63, %v702_v6  ;;  %v914_v26 = vrot.slane %v548_v47, 2 }
 0x135   : > { %1310 = vrot.lane.b32.xlu1 %v6722_v41, %s6244_s17  ;;  %v6816_v40 = vpack.c.bf16 %v693_v11, %v691_v24  ;;  %v6860_v23 = vpack.c.bf16 %v703_v8, %v701_v14  ;;  %v913_v24 = vsel %vm863_vm2, %v910_v3, %v912_v15  ;;  %599 = vst.msk [vmem:[#allocation3 + $0x50] sm:$0xff] %vm588_vm0, %v6857_v17  ;;  %v707_v30 = vrot.slane %v550_v7, 1  ;;  %v554_v8 = vld [vmem:[%s6652_s12 + $0x120] sm:$0xff] }
 0x136   : > { %v6863_v29 = vpack.c.bf16 %v913_v24, %v911_v9  ;;  %v677_v32 = vrot.slane %v6839_v2, 1  ;;  %v706_v33 = vsel %vm653_vm1, %v704_v18, %v705_v25  ;;  %v917_v34 = vrot.slane %v550_v7, 2  ;;  %v555_v9 = vld [vmem:[%s6652_s12 + $0x128] sm:$0xff] }
 0x137   : > { %v6870_v35 = vpack.c.bf16 %v552_v20, %v551_v16  ;;  %v708_v36 = vsel %vm653_vm1, %v705_v25, %v707_v30  ;;  %v709_v37 = vrot.slane %v551_v16, 1  ;;  %v710_v38 = vrot.slane %v552_v20, 1 }
 0x138   : > { %1385 = vrot.lane.b32.xlu0 %v6746_v51, %s6245_s24  ;;  %v6878_v39 = vpack.c.bf16 %v708_v36, %v706_v33  ;;  %v919_v46 = vrot.slane %v551_v16, 2  ;;  %v920_v47 = vrot.slane %v552_v20, 2  ;;  %v887_v52 = vrot.slane %v6839_v2, 2  ;;  %v556_v20 = vld [vmem:[%s6652_s12 + $0x130] sm:$0x3] }
 0x139   : > { %1387 = vrot.lane.b32.xlu1 %v6795_v21, %s6245_s24  ;;  %600 = vst.msk [vmem:[#allocation3 + $0x58] sm:$0xff] %vm588_vm0, %v6870_v35  ;;  %vm1616_vm3 = vcmask 1041408   ;;  %v711_v56 = vsel %vm653_vm1, %v709_v37, %v710_v38  ;;  %v712_v63 = vrot.slane %v553_v31, 1  ;;  %v922_v3 = vrot.slane %v553_v31, 2  ;;  %v557_v37 = vld [vmem:[%s6652_s12 + $0x138] sm:$0xff] }
 0x13a   : > { %5531 = vmatprep.subr.msk.bf16.mxu0 %vm1616_vm3, %v5677_v27  ;;  %v921_v0 = vsel %vm863_vm2, %v919_v46, %v920_v47  ;;  %v676_v2 = vsel %vm653_vm1, %v674_v19, %v675_v22  ;;  %v678_v5 = vsel %vm653_vm1, %v675_v22, %v677_v32  ;;  %v680_v14 = vrot.slane %v6742_v50, 1  ;;  %v535_v19 = vld [vmem:[%s6652_s12 + $0x88] sm:$0x3] }
 0x13b   : > { %v713_v6 = vsel %vm653_vm1, %v710_v38, %v712_v63  ;;  %v923_v7 = vsel %vm863_vm2, %v920_v47, %v922_v3  ;;  %v6911_v18 = vpack.c.bf16 %v555_v9, %v554_v8  ;;  %v770_v22 = vpack.c.bf16 %v678_v5, %v676_v2  ;;  %v558_v38 = vld [vmem:[%s6652_s12 + $0x140] sm:$0xff]  ;;  %v559_v46 = vld [vmem:[%s6652_s12 + $0x148] sm:$0x3] }
 0x13c   : > { %1459 = vrot.lane.b32.xlu0 %v6767_v59, %s6246_s4  ;;  %v6904_v15 = vpack.c.bf16 %v713_v6, %v711_v56  ;;  %v6906_v16 = vpack.c.bf16 %v923_v7, %v921_v0  ;;  %v714_v24 = vrot.slane %v554_v8, 1  ;;  %v715_v25 = vrot.slane %v555_v9, 1 }
 0x13d   : > { %802 = vrot.lane.b32.xlu1 %v6746_v51, %s6240_s22  ;;  %v915_v51 = vrot.slane %v549_v60, 2  ;;  %v1618_v60 = vsel %vm1616_vm3, %v5677_v27, 0  ;;  %v886_v27 = vsel %vm863_vm2, %v884_v10, %v885_v13  ;;  %v925_v30 = vrot.slane %v555_v9, 2  ;;  %601 = vst.msk [vmem:[#allocation3 + $0x60] sm:$0xff] %vm588_vm0, %v6911_v18  ;;  %v538_v9 = vld [vmem:[%s6652_s12 + $0xa0] sm:$0x3] }
 0x13e   : > { %5414 = vmatpush3.bf16.msra.mxu0 %v1618_v60  ;;  %v716_v31 = vsel %vm653_vm1, %v714_v24, %v715_v25  ;;  %v682_v43 = vrot.slane %v535_v19, 1  ;;  %v889_v56 = vrot.slane %v6739_v49, 2  ;;  %v890_v60 = vrot.slane %v6742_v50, 2 }
 0x13f   : > { %v916_v11 = vsel %vm863_vm2, %v914_v26, %v915_v51  ;;  %v918_v45 = vsel %vm863_vm2, %v915_v51, %v917_v34  ;;  %v924_v26 = vrot.slane %v554_v8, 2  ;;  %v888_v51 = vsel %vm863_vm2, %v885_v13, %v887_v52 }
 0x140   : > { %1461 = vrot.lane.b32.xlu0 %v6836_v1, %s6246_s4  ;;  %v6884_v53 = vpack.c.bf16 %v918_v45, %v916_v11  ;;  %v980_v42 = vpack.c.bf16 %v888_v51, %v886_v27  ;;  %v927_v13 = vrot.slane %v556_v20, 2  ;;  %v683_v11 = vsel %vm653_vm1, %v680_v14, %v682_v43  ;;  %v562_v43 = vld [vmem:[%s6652_s12 + $0x160] sm:$0x3] }
 0x141   : > { %804 = vrot.lane.b32.xlu1 %v6795_v21, %s6240_s22  ;;  %v926_v33 = vsel %vm863_vm2, %v924_v26, %v925_v30  ;;  %v6946_v45 = vpack.c.bf16 %v558_v38, %v557_v37  ;;  %v719_v52 = vrot.slane %v557_v37, 1  ;;  %v892_v63 = vrot.slane %v535_v19, 2 }
 0x142   : > { %v928_v34 = vsel %vm863_vm2, %v925_v30, %v927_v13  ;;  %v722_v0 = vrot.slane %v559_v46, 1  ;;  %v929_v5 = vrot.slane %v557_v37, 2  ;;  %v930_v6 = vrot.slane %v558_v38, 2 }
 0x143   : > { %v6937_v36 = vpack.c.bf16 %v928_v34, %v926_v33  ;;  %602 = vst.msk [vmem:[#allocation3 + $0x68] sm:$0xff] %vm588_vm0, %v6946_v45  ;;  %v893_v50 = vsel %vm863_vm2, %v890_v60, %v892_v63  ;;  %v932_v7 = vrot.slane %v559_v46, 2  ;;  %v685_v24 = vrot.slane %v6762_v58, 1  ;;  %v563_v63 = vld [vmem:[%s6652_s12 + $0x168] sm:$0xff] }
 0x144   : > { %1012 = vrot.lane.b32.xlu0 %v6767_v59, %s6241_s29  ;;  %v679_v59 = vrot.slane %v6739_v49, 1  ;;  %v891_v49 = vsel %vm863_vm2, %v889_v56, %v890_v60  ;;  %v895_v26 = vrot.slane %v6762_v58, 2  ;;  %v897_v30 = vrot.slane %v538_v9, 2 }
 0x145   : > { %1014 = vrot.lane.b32.xlu1 %v6836_v1, %s6241_s29  ;;  %v933_v8 = vsel %vm863_vm2, %v930_v6, %v932_v7  ;;  %v727_v34 = vrot.slane %v562_v43, 1  ;;  %vm846_vm4 = vcmask 64544   ;;  %vm1056_vm5 = vcmask 97344  }
 0x146   : > { %v898_v33 = vsel %vm863_vm2, %v895_v26, %v897_v30  ;;  %vm1138_vm6 = vcmask 130144   ;;  %vm1215_vm7 = vcmask 162944   ;;  %vm1289_vm8 = vcmask 195744  }
 0x147   : > { %vm1356_vm9 = vcmask 228544   ;;  %vm1433_vm10 = vcmask 261344   ;;  %vm1507_vm11 = vcmask 294144   ;;  %vm1567_vm12 = vcmask 293888  }
 0x148   : > { %1094 = vrot.lane.b32.xlu0 %v6722_v41, %s6239_s21  ;;  %v717_v41 = vrot.slane %v556_v20, 1  ;;  %v684_v20 = vrot.slane %v6759_v57, 1  ;;  %vm1813_vm13 = vcmask 523264   ;;  %vm6248_vm14 = vmmov 0  }
 0x149   : > { %1096 = vrot.lane.b32.xlu1 %v6736_v48, %s6239_s21  ;;  %vm1971_vm15 = vcmask 1043456   ;;  %vm2095_vm3 = vcmask 516096  }
 0x14a   : > { %v718_v32 = vsel %vm653_vm1, %v715_v25, %v717_v41  ;;  %v894_v25 = vrot.slane %v6759_v57, 2  ;;  %v686_v27 = vsel %vm653_vm1, %v684_v20, %v685_v24  ;;  %v560_v41 = vld [vmem:[%s6652_s12 + $0x150] sm:$0xff] }
 0x14b   : > { %v6933_v10 = vpack.c.bf16 %v718_v32, %v716_v31  ;;  %v561_v31 = vld [vmem:[%s6652_s12 + $0x158] sm:$0xff]  ;;  %v724_v57 = vrot.slane %v560_v41, 1 }
 0x14c   : > { %1171 = vrot.lane.b32.xlu0 %v6795_v21, %s6242_s25  ;;  %v681_v21 = vsel %vm653_vm1, %v679_v59, %v680_v14  ;;  %v981_v59 = vpack.c.bf16 %v893_v50, %v891_v49  ;;  %v931_v14 = vsel %vm863_vm2, %v929_v5, %v930_v6  ;;  %v6984_v32 = vpack.c.bf16 %v561_v31, %v560_v41 }
 0x14d   : > { %1173 = vrot.lane.b32.xlu1 %v770_v22, %s6242_s25  ;;  %v771_v47 = vpack.c.bf16 %v683_v11, %v681_v21  ;;  %v6970_v19 = vpack.c.bf16 %v933_v8, %v931_v14  ;;  %v725_v13 = vrot.slane %v561_v31, 1  ;;  %v896_v58 = vsel %vm863_vm2, %v894_v25, %v895_v26 }
 0x14e   : > { %603 = vst.msk [vmem:[#allocation3 + $0x70] sm:$0xff] %vm588_vm0, %v6984_v32  ;;  %v934_v21 = vrot.slane %v560_v41, 2  ;;  %v935_v11 = vrot.slane %v561_v31, 2 }
 0x14f   : > { %v728_v37 = vsel %vm653_vm1, %v725_v13, %v727_v34 }
 0x150   : > { %1245 = vrot.lane.b32.xlu0 %v6836_v1, %s6243_s26  ;;  %v720_v1 = vrot.slane %v558_v38, 1  ;;  %v982_v38 = vpack.c.bf16 %v898_v33, %v896_v58 }
 0x151   : > { %1247 = vrot.lane.b32.xlu1 %v980_v42, %s6243_s26 }
 0x152   : > { %v721_v3 = vsel %vm653_vm1, %v719_v52, %v720_v1  ;;  %v937_v52 = vrot.slane %v562_v43, 2 }
 0x154   : > { %1312 = vrot.lane.b32.xlu0 %v6736_v48, %s6244_s17  ;;  %v723_v48 = vsel %vm653_vm1, %v720_v1, %v722_v0  ;;  %v936_v1 = vsel %vm863_vm2, %v934_v21, %v935_v11  ;;  %v938_v56 = vsel %vm863_vm2, %v935_v11, %v937_v52  ;;  %v564_v0 = vld [vmem:[%s6652_s12 + $0x170] sm:$0xff] }
 0x155   : > { %1314 = vrot.lane.b32.xlu1 %v6755_v55, %s6244_s17  ;;  %v6961_v2 = vpack.c.bf16 %v723_v48, %v721_v3  ;;  %v7003_v60 = vpack.c.bf16 %v938_v56, %v936_v1  ;;  %v7009_v3 = vpack.c.bf16 %v564_v0, %v563_v63  ;;  %v729_v48 = vrot.slane %v563_v63, 1 }
 0x156   : > { %v730_v49 = vrot.slane %v564_v0, 1 }
 0x157   : > { %604 = vst.msk [vmem:[#allocation3 + $0x78] sm:$0xff] %vm588_vm0, %v7009_v3 }
 0x158   : > { %1389 = vrot.lane.b32.xlu0 %v770_v22, %s6245_s24  ;;  %v731_v5 = vsel %vm653_vm1, %v729_v48, %v730_v49 }
 0x159   : > { %1391 = vrot.lane.b32.xlu1 %v771_v47, %s6245_s24 }
 0x15c   : > { %1463 = vrot.lane.b32.xlu0 %v980_v42, %s6246_s4 }
 0x15d   : > { %806 = vrot.lane.b32.xlu1 %v770_v22, %s6240_s22  ;;  %v687_v22 = vrot.slane %v538_v9, 1 }
 0x15f   : > { %v688_v51 = vsel %vm653_vm1, %v685_v24, %v687_v22 }
 0x160   : > { %1465 = vrot.lane.b32.xlu0 %v981_v59, %s6246_s4 }
 0x161   : > { %808 = vrot.lane.b32.xlu1 %v771_v47, %s6240_s22 }
 0x164   : > { %1016 = vrot.lane.b32.xlu0 %v980_v42, %s6241_s29  ;;  %v772_v42 = vpack.c.bf16 %v688_v51, %v686_v27 }
 0x165   : > { %1018 = vrot.lane.b32.xlu1 %v981_v59, %s6241_s29 }
 0x168   : > { %1098 = vrot.lane.b32.xlu0 %v6755_v55, %s6239_s21  ;;  %v726_v55 = vsel %vm653_vm1, %v724_v57, %v725_v13 }
 0x169   : > { %1100 = vrot.lane.b32.xlu1 %v6778_v4, %s6239_s21  ;;  %v6999_v46 = vpack.c.bf16 %v728_v37, %v726_v55 }
 0x16c   : > { %1175 = vrot.lane.b32.xlu0 %v771_v47, %s6242_s25  ;;  %v565_v47 = vld [vmem:[%s6652_s12 + $0x178] sm:$0x3] }
 0x16d   : > { %1177 = vrot.lane.b32.xlu1 %v772_v42, %s6242_s25  ;;  %v732_v50 = vrot.slane %v565_v47, 1  ;;  %v942_v14 = vrot.slane %v565_v47, 2 }
 0x16f   : > { %v733_v6 = vsel %vm653_vm1, %v730_v49, %v732_v50 }
 0x170   : > { %1249 = vrot.lane.b32.xlu0 %v981_v59, %s6243_s26  ;;  %v7023_v7 = vpack.c.bf16 %v733_v6, %v731_v5  ;;  %v940_v59 = vrot.slane %v564_v0, 2 }
 0x171   : > { %1251 = vrot.lane.b32.xlu1 %v982_v38, %s6243_s26 }
 0x172   : > { %v943_v9 = vsel %vm863_vm2, %v940_v59, %v942_v14 }
 0x174   : > { %1316 = vrot.lane.b32.xlu0 %v6778_v4, %s6244_s17  ;;  %v939_v4 = vrot.slane %v563_v63, 2 }
 0x175   : > { %1318 = vrot.lane.b32.xlu1 %v6789_v12, %s6244_s17 }
 0x176   : > { %v941_v8 = vsel %vm863_vm2, %v939_v4, %v940_v59 }
 0x177   : > { %v7029_v20 = vpack.c.bf16 %v943_v9, %v941_v8 }
 0x178   : > { %1393 = vrot.lane.b32.xlu0 %v772_v42, %s6245_s24 }
 0x179   : > { %1395 = vrot.lane.b32.xlu1 %v6816_v40, %s6245_s24 }
 0x17c   : > { %1467 = vrot.lane.b32.xlu0 %v982_v38, %s6246_s4 }
 0x17d   : > { %810 = vrot.lane.b32.xlu1 %v772_v42, %s6240_s22 }
 0x180   : > { %1469 = vrot.lane.b32.xlu0 %v6818_v44, %s6246_s4 }
 0x181   : > { %812 = vrot.lane.b32.xlu1 %v6816_v40, %s6240_s22 }
 0x184   : > { %1020 = vrot.lane.b32.xlu0 %v982_v38, %s6241_s29 }
 0x185   : > { %1022 = vrot.lane.b32.xlu1 %v6818_v44, %s6241_s29 }
 0x188   : > { %1102 = vrot.lane.b32.xlu0 %v6789_v12, %s6239_s21 }
 0x189   : > { %1104 = vrot.lane.b32.xlu1 %v6806_v28, %s6239_s21 }
 0x18c   : > { %1179 = vrot.lane.b32.xlu0 %v6816_v40, %s6242_s25 }
 0x18d   : > { %1181 = vrot.lane.b32.xlu1 %v6832_v61, %s6242_s25 }
 0x190   : > { %1253 = vrot.lane.b32.xlu0 %v6818_v44, %s6243_s26  ;;  %v1091_v24 = vpop.permute.xlu0 %1090 }
 0x191   : > { %1255 = vrot.lane.b32.xlu1 %v6834_v62, %s6243_s26  ;;  %v1093_v22 = vpop.permute.xlu1 %1092 }
 0x194   : > { %1320 = vrot.lane.b32.xlu0 %v6806_v28, %s6244_s17 }
 0x195   : > { %1322 = vrot.lane.b32.xlu1 %v6829_v54, %s6244_s17 }
 0x196   : > { %v799_v12 = vpop.permute.xlu0 %798 }
 0x197   : > { %v1009_v40 = vpop.permute.xlu1 %1008  ;;  %847 = vst.msk [vmem:[#allocation3] sm:$0xff] %vm846_vm4, %v799_v12 }
 0x198   : > { %1057 = vst.msk [vmem:[#allocation3] sm:$0xff] %vm1056_vm5, %v1009_v40  ;;  %1397 = vrot.lane.b32.xlu0 %v6832_v61, %s6245_s24  ;;  %v566_v40 = vld [vmem:[%s6652_s12 + $0x180] sm:$0xff] }
 0x199   : > { %1399 = vrot.lane.b32.xlu1 %v6860_v23, %s6245_s24  ;;  %1139 = vst.msk [vmem:[#allocation3] sm:$0xff] %vm1138_vm6, %v1091_v24 }
 0x19a   : > { %v801_v28 = vpop.permute.xlu0 %800 }
 0x19b   : > { %v1011_v44 = vpop.permute.xlu1 %1010  ;;  %848 = vst.msk [vmem:[#allocation3 + $0x8] sm:$0xff] %vm846_vm4, %v801_v28  ;;  %v567_v28 = vld [vmem:[%s6652_s12 + $0x188] sm:$0xff] }
 0x19c   : > { %1058 = vst.msk [vmem:[#allocation3 + $0x8] sm:$0xff] %vm1056_vm5, %v1011_v44  ;;  %1471 = vrot.lane.b32.xlu0 %v6834_v62, %s6246_s4  ;;  %v568_v44 = vld [vmem:[%s6652_s12 + $0x190] sm:$0x3] }
 0x19d   : > { %814 = vrot.lane.b32.xlu1 %v6832_v61, %s6240_s22  ;;  %1140 = vst.msk [vmem:[#allocation3 + $0x8] sm:$0xff] %vm1138_vm6, %v1093_v22 }
 0x19e   : > { %v1168_v25 = vpop.permute.xlu0 %1167 }
 0x19f   : > { %v1170_v26 = vpop.permute.xlu1 %1169  ;;  %1216 = vst.msk [vmem:[#allocation3] sm:$0xff] %vm1215_vm7, %v1168_v25  ;;  %v1158_v25 = vrot.slane %v566_v40, 1 }
 0x1a0   : > { %1217 = vst.msk [vmem:[#allocation3 + $0x8] sm:$0xff] %vm1215_vm7, %v1170_v26  ;;  %1473 = vrot.lane.b32.xlu0 %v6863_v29, %s6246_s4  ;;  %v1159_v26 = vrot.slane %v567_v28, 1 }
 0x1a1   : > { %816 = vrot.lane.b32.xlu1 %v6860_v23, %s6240_s22 }
 0x1a2   : > { %v1242_v27 = vpop.permute.xlu0 %1241 }
 0x1a3   : > { %v1244_v51 = vpop.permute.xlu1 %1243  ;;  %1290 = vst.msk [vmem:[#allocation3] sm:$0xff] %vm1289_vm8, %v1242_v27  ;;  %v1161_v27 = vrot.slane %v568_v44, 1 }
 0x1a4   : > { %1291 = vst.msk [vmem:[#allocation3 + $0x8] sm:$0xff] %vm1289_vm8, %v1244_v51  ;;  %1024 = vrot.lane.b32.xlu0 %v6834_v62, %s6241_s29 }
 0x1a5   : > { %1026 = vrot.lane.b32.xlu1 %v6863_v29, %s6241_s29 }
 0x1a6   : > { %v1309_v61 = vpop.permute.xlu0 %1308 }
 0x1a7   : > { %v1311_v30 = vpop.permute.xlu1 %1310  ;;  %1357 = vst.msk [vmem:[#allocation3] sm:$0xff] %vm1356_vm9, %v1309_v61  ;;  %v1073_v61 = vpack.c.bf16 %v567_v28, %v566_v40 }
 0x1a8   : > { %1358 = vst.msk [vmem:[#allocation3 + $0x8] sm:$0xff] %vm1356_vm9, %v1311_v30  ;;  %1106 = vrot.lane.b32.xlu0 %v6829_v54, %s6239_s21  ;;  %v1232_v30 = vrot.slane %v566_v40, 2 }
 0x1a9   : > { %1108 = vrot.lane.b32.xlu1 %v6857_v17, %s6239_s21 }
 0x1aa   : > { %v1386_v41 = vpop.permute.xlu0 %1385 }
 0x1ab   : > { %v1388_v31 = vpop.permute.xlu1 %1387  ;;  %1434 = vst.msk [vmem:[#allocation3] sm:$0xff] %vm1433_vm10, %v1386_v41  ;;  %v1233_v41 = vrot.slane %v567_v28, 2 }
 0x1ac   : > { %1435 = vst.msk [vmem:[#allocation3 + $0x8] sm:$0xff] %vm1433_vm10, %v1388_v31  ;;  %1183 = vrot.lane.b32.xlu0 %v6860_v23, %s6242_s25  ;;  %v1160_v31 = vsel %vm653_vm1, %v1158_v25, %v1159_v26 }
 0x1ad   : > { %1185 = vrot.lane.b32.xlu1 %v6878_v39, %s6242_s25 }
 0x1ae   : > { %v1460_v62 = vpop.permute.xlu0 %1459 }
 0x1af   : > { %v803_v43 = vpop.permute.xlu1 %802  ;;  %1508 = vst.msk [vmem:[#allocation3] sm:$0xff] %vm1507_vm11, %v1460_v62  ;;  %v1162_v62 = vsel %vm653_vm1, %v1159_v26, %v1161_v27 }
 0x1b0   : > { %849 = vst.msk [vmem:[#allocation3 + $0x10] sm:$0xff] %vm846_vm4, %v803_v43  ;;  %1257 = vrot.lane.b32.xlu0 %v6863_v29, %s6243_s26  ;;  %v1235_v43 = vrot.slane %v568_v44, 2 }
 0x1b1   : > { %1259 = vrot.lane.b32.xlu1 %v6884_v53, %s6243_s26 }
 0x1b2   : > { %v1462_v54 = vpop.permute.xlu0 %1461 }
 0x1b3   : > { %v805_v42 = vpop.permute.xlu1 %804  ;;  %1509 = vst.msk [vmem:[#allocation3 + $0x8] sm:$0xff] %vm1507_vm11, %v1462_v54 }
 0x1b4   : > { %850 = vst.msk [vmem:[#allocation3 + $0x18] sm:$0xff] %vm846_vm4, %v805_v42  ;;  %1324 = vrot.lane.b32.xlu0 %v6857_v17, %s6244_s17 }
 0x1b5   : > { %1326 = vrot.lane.b32.xlu1 %v6870_v35, %s6244_s17 }
 0x1b6   : > { %v1013_v23 = vpop.permute.xlu0 %1012  ;;  %v1524_v13 = vld [vmem:[#allocation3] sm:$0xff] }
 0x1b7   : > { %v1015_v57 = vpop.permute.xlu1 %1014  ;;  %1059 = vst.msk [vmem:[#allocation3 + $0x10] sm:$0xff] %vm1056_vm5, %v1013_v23  ;;  %5415 = vmatprep.mubr.msk.bf16.mxu0 %vm1567_vm12, %v1524_v13  ;;  %v1234_v23 = vsel %vm863_vm2, %v1232_v30, %v1233_v41 }
 0x1b8   : > { %1060 = vst.msk [vmem:[#allocation3 + $0x18] sm:$0xff] %vm1056_vm5, %v1015_v57  ;;  %1401 = vrot.lane.b32.xlu0 %v6878_v39, %s6245_s24  ;;  %v1236_v57 = vsel %vm863_vm2, %v1233_v41, %v1235_v43 }
 0x1b9   : > { %1403 = vrot.lane.b32.xlu1 %v6904_v15, %s6245_s24 }
 0x1ba   : > { %v1095_v17 = vpop.permute.xlu0 %1094  ;;  %v1525_v58 = vld [vmem:[#allocation3 + $0x8] sm:$0xff] }
 0x1bb   : > { %v1097_v29 = vpop.permute.xlu1 %1096  ;;  %1141 = vst.msk [vmem:[#allocation3 + $0x10] sm:$0xff] %vm1138_vm6, %v1095_v17  ;;  %5416 = vmatmul.mubr.msk.bf16.vlgmr.msra.gmra.mrb[0].mxu0 %vm1567_vm12, %v1525_v58  ;;  %v570_v58 = vld [vmem:[%s6652_s12 + $0x1a0] sm:$0xff] }
 0x1bc   : > { %1142 = vst.msk [vmem:[#allocation3 + $0x18] sm:$0xff] %vm1138_vm6, %v1097_v29  ;;  %1475 = vrot.lane.b32.xlu0 %v6884_v53, %s6246_s4  ;;  %v569_v29 = vld [vmem:[%s6652_s12 + $0x198] sm:$0xff] }
 0x1bd   : > { %818 = vrot.lane.b32.xlu1 %v6878_v39, %s6240_s22 }
 0x1be   : > { %v1172_v33 = vpop.permute.xlu0 %1171 }
 0x1bf   : > { %v1174_v34 = vpop.permute.xlu1 %1173  ;;  %1218 = vst.msk [vmem:[#allocation3 + $0x10] sm:$0xff] %vm1215_vm7, %v1172_v33  ;;  %v571_v33 = vld [vmem:[%s6652_s12 + $0x1a8] sm:$0x3] }
 0x1c0   : > { %1219 = vst.msk [vmem:[#allocation3 + $0x18] sm:$0xff] %vm1215_vm7, %v1174_v34  ;;  %1477 = vrot.lane.b32.xlu0 %v6906_v16, %s6246_s4  ;;  %v1376_v34 = vrot.slane %v569_v29, 1 }
 0x1c1   : > { %820 = vrot.lane.b32.xlu1 %v6904_v15, %s6240_s22 }
 0x1c2   : > { %v1246_v21 = vpop.permute.xlu0 %1245 }
 0x1c3   : > { %v1248_v11 = vpop.permute.xlu1 %1247  ;;  %1292 = vst.msk [vmem:[#allocation3 + $0x10] sm:$0xff] %vm1289_vm8, %v1246_v21  ;;  %v1377_v21 = vrot.slane %v570_v58, 1 }
 0x1c4   : > { %1293 = vst.msk [vmem:[#allocation3 + $0x18] sm:$0xff] %vm1289_vm8, %v1248_v11  ;;  %1028 = vrot.lane.b32.xlu0 %v6884_v53, %s6241_s29  ;;  %v1379_v11 = vrot.slane %v571_v33, 1 }
 0x1c5   : > { %1030 = vrot.lane.b32.xlu1 %v6906_v16, %s6241_s29 }
 0x1c6   : > { %v1313_v39 = vpop.permute.xlu0 %1312 }
 0x1c7   : > { %v1315_v55 = vpop.permute.xlu1 %1314  ;;  %1359 = vst.msk [vmem:[#allocation3 + $0x10] sm:$0xff] %vm1356_vm9, %v1313_v39 }
 0x1c8   : > { %1360 = vst.msk [vmem:[#allocation3 + $0x18] sm:$0xff] %vm1356_vm9, %v1315_v55  ;;  %1110 = vrot.lane.b32.xlu0 %v6870_v35, %s6239_s21 }
 0x1c9   : > { %1112 = vrot.lane.b32.xlu1 %v6911_v18, %s6239_s21 }
 0x1ca   : > { %v1390_v37 = vpop.permute.xlu0 %1389 }
 0x1cb   : > { %v1392_v38 = vpop.permute.xlu1 %1391  ;;  %1436 = vst.msk [vmem:[#allocation3 + $0x10] sm:$0xff] %vm1433_vm10, %v1390_v37  ;;  %v1306_v37 = vpack.c.bf16 %v570_v58, %v569_v29 }
 0x1cc   : > { %1437 = vst.msk [vmem:[#allocation3 + $0x18] sm:$0xff] %vm1433_vm10, %v1392_v38  ;;  %1187 = vrot.lane.b32.xlu0 %v6904_v15, %s6242_s25  ;;  %v1450_v38 = vrot.slane %v569_v29, 2 }
 0x1cd   : > { %1189 = vrot.lane.b32.xlu1 %v6933_v10, %s6242_s25 }
 0x1ce   : > { %v1464_v53 = vpop.permute.xlu0 %1463 }
 0x1cf   : > { %v807_v52 = vpop.permute.xlu1 %806  ;;  %1510 = vst.msk [vmem:[#allocation3 + $0x10] sm:$0xff] %vm1507_vm11, %v1464_v53  ;;  %v1378_v53 = vsel %vm653_vm1, %v1376_v34, %v1377_v21 }
 0x1d0   : > { %851 = vst.msk [vmem:[#allocation3 + $0x20] sm:$0xff] %vm846_vm4, %v807_v52  ;;  %1261 = vrot.lane.b32.xlu0 %v6906_v16, %s6243_s26  ;;  %v1380_v52 = vsel %vm653_vm1, %v1377_v21, %v1379_v11 }
 0x1d1   : > { %1263 = vrot.lane.b32.xlu1 %v6937_v36, %s6243_s26 }
 0x1d2   : > { %v1466_v35 = vpop.permute.xlu0 %1465 }
 0x1d3   : > { %v809_v1 = vpop.permute.xlu1 %808  ;;  %1511 = vst.msk [vmem:[#allocation3 + $0x18] sm:$0xff] %vm1507_vm11, %v1466_v35  ;;  %v1453_v35 = vrot.slane %v571_v33, 2 }
 0x1d4   : > { %852 = vst.msk [vmem:[#allocation3 + $0x28] sm:$0xff] %vm846_vm4, %v809_v1  ;;  %1328 = vrot.lane.b32.xlu0 %v6911_v18, %s6244_s17 }
 0x1d5   : > { %1330 = vrot.lane.b32.xlu1 %v6946_v45, %s6244_s17 }
 0x1d6   : > { %v1017_v15 = vpop.permute.xlu0 %1016  ;;  %v1526_v63 = vld [vmem:[#allocation3 + $0x10] sm:$0xff] }
 0x1d7   : > { %v1019_v56 = vpop.permute.xlu1 %1018  ;;  %1061 = vst.msk [vmem:[#allocation3 + $0x20] sm:$0xff] %vm1056_vm5, %v1017_v15  ;;  %5419 = vmatprep.mubr.msk.bf16.mxu0 %vm1567_vm12, %v1526_v63 }
 0x1d8   : > { %1062 = vst.msk [vmem:[#allocation3 + $0x28] sm:$0xff] %vm1056_vm5, %v1019_v56  ;;  %1405 = vrot.lane.b32.xlu0 %v6933_v10, %s6245_s24 }
 0x1d9   : > { %1407 = vrot.lane.b32.xlu1 %v6961_v2, %s6245_s24 }
 0x1da   : > { %v1099_v16 = vpop.permute.xlu0 %1098  ;;  %v1527_v0 = vld [vmem:[#allocation3 + $0x18] sm:$0xff] }
 0x1db   : > { %v1101_v18 = vpop.permute.xlu1 %1100  ;;  %1143 = vst.msk [vmem:[#allocation3 + $0x20] sm:$0xff] %vm1138_vm6, %v1099_v16  ;;  %5420 = vmatmul.mubr.msk.bf16.gmra.mrb[4].mxu0 %vm1567_vm12, %v1527_v0 }
 0x1dc   : > { %1144 = vst.msk [vmem:[#allocation3 + $0x28] sm:$0xff] %vm1138_vm6, %v1101_v18  ;;  %1479 = vrot.lane.b32.xlu0 %v6937_v36, %s6246_s4 }
 0x1dd   : > { %822 = vrot.lane.b32.xlu1 %v6933_v10, %s6240_s22 }
 0x1de   : > { %v1176_v47 = vpop.permute.xlu0 %1175 }
 0x1df   : > { %v1178_v48 = vpop.permute.xlu1 %1177  ;;  %1220 = vst.msk [vmem:[#allocation3 + $0x20] sm:$0xff] %vm1215_vm7, %v1176_v47 }
 0x1e0   : > { %1221 = vst.msk [vmem:[#allocation3 + $0x28] sm:$0xff] %vm1215_vm7, %v1178_v48  ;;  %1481 = vrot.lane.b32.xlu0 %v6970_v19, %s6246_s4 }
 0x1e1   : > { %824 = vrot.lane.b32.xlu1 %v6961_v2, %s6240_s22 }
 0x1e2   : > { %v1250_v49 = vpop.permute.xlu0 %1249 }
 0x1e3   : > { %v1252_v50 = vpop.permute.xlu1 %1251  ;;  %1294 = vst.msk [vmem:[#allocation3 + $0x20] sm:$0xff] %vm1289_vm8, %v1250_v49 }
 0x1e4   : > { %1295 = vst.msk [vmem:[#allocation3 + $0x28] sm:$0xff] %vm1289_vm8, %v1252_v50  ;;  %1032 = vrot.lane.b32.xlu0 %v6937_v36, %s6241_s29 }
 0x1e5   : > { %1034 = vrot.lane.b32.xlu1 %v6970_v19, %s6241_s29 }
 0x1e6   : > { %v1317_v10 = vpop.permute.xlu0 %1316 }
 0x1e7   : > { %v1319_v5 = vpop.permute.xlu1 %1318  ;;  %1361 = vst.msk [vmem:[#allocation3 + $0x20] sm:$0xff] %vm1356_vm9, %v1317_v10 }
 0x1e8   : > { %1362 = vst.msk [vmem:[#allocation3 + $0x28] sm:$0xff] %vm1356_vm9, %v1319_v5  ;;  %1114 = vrot.lane.b32.xlu0 %v6946_v45, %s6239_s21 }
 0x1e9   : > { %1116 = vrot.lane.b32.xlu1 %v6984_v32, %s6239_s21 }
 0x1ea   : > { %v1394_v6 = vpop.permute.xlu0 %1393 }
 0x1eb   : > { %v1396_v4 = vpop.permute.xlu1 %1395  ;;  %1438 = vst.msk [vmem:[#allocation3 + $0x20] sm:$0xff] %vm1433_vm10, %v1394_v6 }
 0x1ec   : > { %1439 = vst.msk [vmem:[#allocation3 + $0x28] sm:$0xff] %vm1433_vm10, %v1396_v4  ;;  %1191 = vrot.lane.b32.xlu0 %v6961_v2, %s6242_s25 }
 0x1ed   : > { %1193 = vrot.lane.b32.xlu1 %v6999_v46, %s6242_s25 }
 0x1ee   : > { %v1468_v36 = vpop.permute.xlu0 %1467 }
 0x1ef   : > { %v811_v59 = vpop.permute.xlu1 %810  ;;  %1512 = vst.msk [vmem:[#allocation3 + $0x20] sm:$0xff] %vm1507_vm11, %v1468_v36 }
 0x1f0   : > { %853 = vst.msk [vmem:[#allocation3 + $0x30] sm:$0xff] %vm846_vm4, %v811_v59  ;;  %1265 = vrot.lane.b32.xlu0 %v6970_v19, %s6243_s26 }
 0x1f1   : > { %1267 = vrot.lane.b32.xlu1 %v7003_v60, %s6243_s26 }
 0x1f2   : > { %v1470_v45 = vpop.permute.xlu0 %1469 }
 0x1f3   : > { %v813_v14 = vpop.permute.xlu1 %812  ;;  %1513 = vst.msk [vmem:[#allocation3 + $0x28] sm:$0xff] %vm1507_vm11, %v1470_v45 }
 0x1f4   : > { %854 = vst.msk [vmem:[#allocation3 + $0x38] sm:$0xff] %vm846_vm4, %v813_v14  ;;  %1332 = vrot.lane.b32.xlu0 %v6984_v32, %s6244_s17 }
 0x1f5   : > { %1334 = vrot.lane.b32.xlu1 %v7009_v3, %s6244_s17 }
 0x1f6   : > { %v1021_v2 = vpop.permute.xlu0 %1020  ;;  %v1528_v9 = vld [vmem:[#allocation3 + $0x20] sm:$0xff] }
 0x1f7   : > { %v1023_v8 = vpop.permute.xlu1 %1022  ;;  %1063 = vst.msk [vmem:[#allocation3 + $0x30] sm:$0xff] %vm1056_vm5, %v1021_v2  ;;  %5423 = vmatprep.mubr.msk.bf16.mxu0 %vm1567_vm12, %v1528_v9 }
 0x1f8   : > { %1064 = vst.msk [vmem:[#allocation3 + $0x38] sm:$0xff] %vm1056_vm5, %v1023_v8  ;;  %1409 = vrot.lane.b32.xlu0 %v6999_v46, %s6245_s24 }
 0x1f9   : > { %1411 = vrot.lane.b32.xlu1 %v7023_v7, %s6245_s24 }
 0x1fa   : > { %v1103_v19 = vpop.permute.xlu0 %1102  ;;  %v1529_v24 = vld [vmem:[#allocation3 + $0x28] sm:$0xff] }
 0x1fb   : > { %v1105_v32 = vpop.permute.xlu1 %1104  ;;  %1145 = vst.msk [vmem:[#allocation3 + $0x30] sm:$0xff] %vm1138_vm6, %v1103_v19  ;;  %5424 = vmatmul.mubr.msk.bf16.gmra.mrb[8].mxu0 %vm1567_vm12, %v1529_v24 }
 0x1fc   : > { %1146 = vst.msk [vmem:[#allocation3 + $0x38] sm:$0xff] %vm1138_vm6, %v1105_v32  ;;  %1483 = vrot.lane.b32.xlu0 %v7003_v60, %s6246_s4 }
 0x1fd   : > { %826 = vrot.lane.b32.xlu1 %v6999_v46, %s6240_s22 }
 0x1fe   : > { %v1180_v22 = vpop.permute.xlu0 %1179 }
 0x1ff   : > { %v1182_v12 = vpop.permute.xlu1 %1181  ;;  %1222 = vst.msk [vmem:[#allocation3 + $0x30] sm:$0xff] %vm1215_vm7, %v1180_v22 }
 0x200   : > { %1223 = vst.msk [vmem:[#allocation3 + $0x38] sm:$0xff] %vm1215_vm7, %v1182_v12  ;;  %1485 = vrot.lane.b32.xlu0 %v7029_v20, %s6246_s4 }
 0x201   : > { %828 = vrot.lane.b32.xlu1 %v7023_v7, %s6240_s22 }
 0x202   : > { %v1254_v51 = vpop.permute.xlu0 %1253 }
 0x203   : > { %v1256_v46 = vpop.permute.xlu1 %1255  ;;  %1296 = vst.msk [vmem:[#allocation3 + $0x30] sm:$0xff] %vm1289_vm8, %v1254_v51 }
 0x204   : > { %1297 = vst.msk [vmem:[#allocation3 + $0x38] sm:$0xff] %vm1289_vm8, %v1256_v46  ;;  %1036 = vrot.lane.b32.xlu0 %v7003_v60, %s6241_s29  ;;  %v1165_v60 = vpack.c.bf16 %v1162_v62, %v1160_v31 }
 0x205   : > { %1038 = vrot.lane.b32.xlu1 %v7029_v20, %s6241_s29 }
 0x206   : > { %v1321_v54 = vpop.permute.xlu0 %1320 }
 0x207   : > { %v1323_v42 = vpop.permute.xlu1 %1322  ;;  %1363 = vst.msk [vmem:[#allocation3 + $0x30] sm:$0xff] %vm1356_vm9, %v1321_v54 }
 0x208   : > { %1364 = vst.msk [vmem:[#allocation3 + $0x38] sm:$0xff] %vm1356_vm9, %v1323_v42  ;;  %1118 = vrot.lane.b32.xlu0 %v7009_v3, %s6239_s21  ;;  %v1239_v3 = vpack.c.bf16 %v1236_v57, %v1234_v23 }
 0x209   : > { %1120 = vrot.lane.b32.xlu1 %v1073_v61, %s6239_s21  ;;  %s9408_s21 = scalar_lea.hbm %s9615_s8, %s5133_s23 }
 0x20a   : > { %v1398_v13 = vpop.permute.xlu0 %1397 }
 0x20b   : > { %v1400_v17 = vpop.permute.xlu1 %1399  ;;  %1440 = vst.msk [vmem:[#allocation3 + $0x30] sm:$0xff] %vm1433_vm10, %v1398_v13 }
 0x20c   : > { %1441 = vst.msk [vmem:[#allocation3 + $0x38] sm:$0xff] %vm1433_vm10, %v1400_v17  ;;  %1195 = vrot.lane.b32.xlu0 %v7023_v7, %s6242_s25  ;;  %v1451_v7 = vrot.slane %v570_v58, 2 }
 0x20d   : > { %1197 = vrot.lane.b32.xlu1 %v1165_v60, %s6242_s25  ;;  %s6252_s25 = smov [#allocation19]  }
 0x20e   : > { %v1472_v39 = vpop.permute.xlu0 %1471  ;;  %v1452_v56 = vsel %vm863_vm2, %v1450_v38, %v1451_v7  ;;  %v1454_v63 = vsel %vm863_vm2, %v1451_v7, %v1453_v35 }
 0x20f   : > { %v815_v55 = vpop.permute.xlu1 %814  ;;  %1514 = vst.msk [vmem:[#allocation3 + $0x30] sm:$0xff] %vm1507_vm11, %v1472_v39  ;;  %v1457_v47 = vpack.c.bf16 %v1454_v63, %v1452_v56 }
 0x210   : > { %855 = vst.msk [vmem:[#allocation3 + $0x40] sm:$0xff] %vm846_vm4, %v815_v55  ;;  %1269 = vrot.lane.b32.xlu0 %v7029_v20, %s6243_s26  ;;  %v1383_v20 = vpack.c.bf16 %v1380_v52, %v1378_v53 }
 0x211   : > { %1271 = vrot.lane.b32.xlu1 %v1239_v3, %s6243_s26  ;;  %s6083_s26 = sshll.u32 %s6252_s25, 4  ;;  %s6084_s26 = int_to_ptr.vmem [resolvable:$false] %s6083_s26 }
 0x212   : > { %v1474_v1 = vpop.permute.xlu0 %1473 }
 0x213   : > { %v817_v15 = vpop.permute.xlu1 %816  ;;  %1515 = vst.msk [vmem:[#allocation3 + $0x38] sm:$0xff] %vm1507_vm11, %v1474_v1 }
 0x214   : > { %856 = vst.msk [vmem:[#allocation3 + $0x48] sm:$0xff] %vm846_vm4, %v817_v15  ;;  %1336 = vrot.lane.b32.xlu0 %v1073_v61, %s6244_s17 }
 0x215   : > { %1338 = vrot.lane.b32.xlu1 %v1306_v37, %s6244_s17  ;;  %s6085_s17 = scalar_lea.vmem %s6084_s26, 8192 }
 0x216   : > { %v1025_v16 = vpop.permute.xlu0 %1024  ;;  %v1530_v0 = vld [vmem:[#allocation3 + $0x30] sm:$0xff] }
 0x217   : > { %v1027_v18 = vpop.permute.xlu1 %1026  ;;  %1065 = vst.msk [vmem:[#allocation3 + $0x40] sm:$0xff] %vm1056_vm5, %v1025_v16  ;;  %5427 = vmatprep.mubr.msk.bf16.mxu0 %vm1567_vm12, %v1530_v0 }
 0x218   : > { %1066 = vst.msk [vmem:[#allocation3 + $0x48] sm:$0xff] %vm1056_vm5, %v1027_v18  ;;  %1413 = vrot.lane.b32.xlu0 %v1165_v60, %s6245_s24 }
 0x219   : > { %1415 = vrot.lane.b32.xlu1 %v1383_v20, %s6245_s24 }
 0x21a   : > { %v1107_v48 = vpop.permute.xlu0 %1106  ;;  %v1531_v50 = vld [vmem:[#allocation3 + $0x38] sm:$0xff] }
 0x21b   : > { %v1109_v49 = vpop.permute.xlu1 %1108  ;;  %1147 = vst.msk [vmem:[#allocation3 + $0x40] sm:$0xff] %vm1138_vm6, %v1107_v48  ;;  %5428 = vmatmul.mubr.msk.bf16.gmra.mrb[12].mxu0 %vm1567_vm12, %v1531_v50 }
 0x21c   : > { %1148 = vst.msk [vmem:[#allocation3 + $0x48] sm:$0xff] %vm1138_vm6, %v1109_v49  ;;  %1487 = vrot.lane.b32.xlu0 %v1239_v3, %s6246_s4 }
 0x21d   : > { %1489 = vrot.lane.b32.xlu1 %v1457_v47, %s6246_s4 }
 0x21e   : > { %v1184_v10 = vpop.permute.xlu0 %1183 }
 0x21f   : > { %v1186_v5 = vpop.permute.xlu1 %1185  ;;  %1224 = vst.msk [vmem:[#allocation3 + $0x40] sm:$0xff] %vm1215_vm7, %v1184_v10 }
 0x220   : > { %1225 = vst.msk [vmem:[#allocation3 + $0x48] sm:$0xff] %vm1215_vm7, %v1186_v5 }
 0x222   : > { %v1258_v6 = vpop.permute.xlu0 %1257 }
 0x223   : > { %v1260_v4 = vpop.permute.xlu1 %1259  ;;  %1298 = vst.msk [vmem:[#allocation3 + $0x40] sm:$0xff] %vm1289_vm8, %v1258_v6 }
 0x224   : > { %1299 = vst.msk [vmem:[#allocation3 + $0x48] sm:$0xff] %vm1289_vm8, %v1260_v4 }
 0x226   : > { %v1325_v36 = vpop.permute.xlu0 %1324 }
 0x227   : > { %v1327_v59 = vpop.permute.xlu1 %1326  ;;  %1365 = vst.msk [vmem:[#allocation3 + $0x40] sm:$0xff] %vm1356_vm9, %v1325_v36 }
 0x228   : > { %1366 = vst.msk [vmem:[#allocation3 + $0x48] sm:$0xff] %vm1356_vm9, %v1327_v59 }
 0x22a   : > { %v1402_v45 = vpop.permute.xlu0 %1401 }
 0x22b   : > { %v1404_v14 = vpop.permute.xlu1 %1403  ;;  %1442 = vst.msk [vmem:[#allocation3 + $0x40] sm:$0xff] %vm1433_vm10, %v1402_v45 }
 0x22c   : > { %1443 = vst.msk [vmem:[#allocation3 + $0x48] sm:$0xff] %vm1433_vm10, %v1404_v14 }
 0x22e   : > { %v1476_v2 = vpop.permute.xlu0 %1475 }
 0x22f   : > { %v819_v8 = vpop.permute.xlu1 %818  ;;  %1516 = vst.msk [vmem:[#allocation3 + $0x40] sm:$0xff] %vm1507_vm11, %v1476_v2 }
 0x230   : > { %857 = vst.msk [vmem:[#allocation3 + $0x50] sm:$0xff] %vm846_vm4, %v819_v8 }
 0x232   : > { %v1478_v9 = vpop.permute.xlu0 %1477 }
 0x233   : > { %v821_v19 = vpop.permute.xlu1 %820  ;;  %1517 = vst.msk [vmem:[#allocation3 + $0x48] sm:$0xff] %vm1507_vm11, %v1478_v9 }
 0x234   : > { %858 = vst.msk [vmem:[#allocation3 + $0x58] sm:$0xff] %vm846_vm4, %v821_v19 }
 0x236   : > { %v1029_v32 = vpop.permute.xlu0 %1028  ;;  %v1532_v22 = vld [vmem:[#allocation3 + $0x40] sm:$0xff] }
 0x237   : > { %v1031_v24 = vpop.permute.xlu1 %1030  ;;  %1067 = vst.msk [vmem:[#allocation3 + $0x50] sm:$0xff] %vm1056_vm5, %v1029_v32  ;;  %5431 = vmatprep.mubr.msk.bf16.mxu0 %vm1567_vm12, %v1532_v22 }
 0x238   : > { %1068 = vst.msk [vmem:[#allocation3 + $0x58] sm:$0xff] %vm1056_vm5, %v1031_v24 }
 0x23a   : > { %v1111_v12 = vpop.permute.xlu0 %1110  ;;  %v1533_v28 = vld [vmem:[#allocation3 + $0x48] sm:$0xff] }
 0x23b   : > { %v1113_v40 = vpop.permute.xlu1 %1112  ;;  %1149 = vst.msk [vmem:[#allocation3 + $0x50] sm:$0xff] %vm1138_vm6, %v1111_v12  ;;  %5432 = vmatmul.mubr.msk.bf16.gmra.mrb[16].mxu0 %vm1567_vm12, %v1533_v28 }
 0x23c   : > { %1150 = vst.msk [vmem:[#allocation3 + $0x58] sm:$0xff] %vm1138_vm6, %v1113_v40 }
 0x23e   : > { %v1188_v44 = vpop.permute.xlu0 %1187 }
 0x23f   : > { %v1190_v25 = vpop.permute.xlu1 %1189  ;;  %1226 = vst.msk [vmem:[#allocation3 + $0x50] sm:$0xff] %vm1215_vm7, %v1188_v44  ;;  %v1885_v44 = vld [vmem:[#allocation13] sm:$0xff] }
 0x240   : > { %1227 = vst.msk [vmem:[#allocation3 + $0x58] sm:$0xff] %vm1215_vm7, %v1190_v25  ;;  %v1886_v25 = vld [vmem:[#allocation13 + $0x8] sm:$0xff] }
 0x242   : > { %v1262_v26 = vpop.permute.xlu0 %1261 }
 0x243   : > { %v1264_v27 = vpop.permute.xlu1 %1263  ;;  %1300 = vst.msk [vmem:[#allocation3 + $0x50] sm:$0xff] %vm1289_vm8, %v1262_v26  ;;  %v5512_v26 = vpack.c.bf16 %v1886_v25, %v1885_v44 }
 0x244   : > { %1301 = vst.msk [vmem:[#allocation3 + $0x58] sm:$0xff] %vm1289_vm8, %v1264_v27  ;;  %v6247_v27 = vmov 0.0|0.0  }
 0x245   : > { %5511 = vmatprep.subr.bf16.mxu1 %v6247_v27 }
 0x246   : > { %v1329_v51 = vpop.permute.xlu0 %1328  ;;  %5513 = vmatpush3.bf16.msra.mxu1 %v5512_v26 }
 0x247   : > { %v1331_v46 = vpop.permute.xlu1 %1330  ;;  %1367 = vst.msk [vmem:[#allocation3 + $0x50] sm:$0xff] %vm1356_vm9, %v1329_v51  ;;  %5514 = vmatprep.subr.bf16.mxu1 %v6247_v27  ;;  %v1887_v51 = vld [vmem:[#allocation13 + $0x10] sm:$0xff] }
 0x248   : > { %1368 = vst.msk [vmem:[#allocation3 + $0x58] sm:$0xff] %vm1356_vm9, %v1331_v46  ;;  %v1888_v46 = vld [vmem:[#allocation13 + $0x18] sm:$0xff] }
 0x24a   : > { %v1406_v61 = vpop.permute.xlu0 %1405 }
 0x24b   : > { %v1408_v30 = vpop.permute.xlu1 %1407  ;;  %1444 = vst.msk [vmem:[#allocation3 + $0x50] sm:$0xff] %vm1433_vm10, %v1406_v61  ;;  %v5515_v61 = vpack.c.bf16 %v1888_v46, %v1887_v51 }
 0x24c   : > { %1445 = vst.msk [vmem:[#allocation3 + $0x58] sm:$0xff] %vm1433_vm10, %v1408_v30  ;;  %v1889_v30 = vld [vmem:[#allocation13 + $0x20] sm:$0xff] }
 0x24d   : > { %5516 = vmatpush3.bf16.msra.mxu1 %v5515_v61 }
 0x24e   : > { %v1480_v41 = vpop.permute.xlu0 %1479  ;;  %5517 = vmatprep.subr.bf16.mxu1 %v6247_v27 }
 0x24f   : > { %v823_v31 = vpop.permute.xlu1 %822  ;;  %1518 = vst.msk [vmem:[#allocation3 + $0x50] sm:$0xff] %vm1507_vm11, %v1480_v41  ;;  %v1890_v41 = vld [vmem:[#allocation13 + $0x28] sm:$0xff] }
 0x250   : > { %859 = vst.msk [vmem:[#allocation3 + $0x60] sm:$0xff] %vm846_vm4, %v823_v31  ;;  %v5518_v31 = vpack.c.bf16 %v1890_v41, %v1889_v30 }
 0x252   : > { %v1482_v62 = vpop.permute.xlu0 %1481  ;;  %5519 = vmatpush3.bf16.msra.mxu1 %v5518_v31 }
 0x253   : > { %v825_v43 = vpop.permute.xlu1 %824  ;;  %1519 = vst.msk [vmem:[#allocation3 + $0x58] sm:$0xff] %vm1507_vm11, %v1482_v62  ;;  %v6249_v62 = vmov 0.0   ;;  %5520 = vmatprep.subr.bf16.mxu1 %v6247_v27 }
 0x254   : > { %860 = vst.msk [vmem:[#allocation3 + $0x68] sm:$0xff] %vm846_vm4, %v825_v43  ;;  %5463 = vmatprep.mubr.msk.f32.mxu1 %vm6248_vm14, %v6249_v62  ;;  %v1891_v43 = vld [vmem:[#allocation13 + $0x30] sm:$0xff] }
 0x255   : > { %2087 = vst.msk [vmem:[#allocation2] sm:$0xff] %vm1813_vm13, %v6249_v62  ;;  %2088 = vst.msk [vmem:[#allocation2 + $0x8] sm:$0xff] %vm1813_vm13, %v6249_v62 }
 0x256   : > { %v1033_v54 = vpop.permute.xlu0 %1032  ;;  %v1534_v60 = vld [vmem:[#allocation3 + $0x50] sm:$0xff]  ;;  %2092 = vst.msk [vmem:[#allocation2 + $0x198] sm:$0xff] %vm1813_vm13, %v6249_v62  ;;  %2093 = vst.msk [vmem:[#allocation2 + $0x1a0] sm:$0xff] %vm1813_vm13, %v6249_v62 }
 0x257   : > { %v1035_v42 = vpop.permute.xlu1 %1034  ;;  %1069 = vst.msk [vmem:[#allocation3 + $0x60] sm:$0xff] %vm1056_vm5, %v1033_v54  ;;  %5435 = vmatprep.mubr.msk.bf16.mxu0 %vm1567_vm12, %v1534_v60  ;;  %v1892_v54 = vld [vmem:[#allocation13 + $0x38] sm:$0xff] }
 0x258   : > { %1070 = vst.msk [vmem:[#allocation3 + $0x68] sm:$0xff] %vm1056_vm5, %v1035_v42  ;;  %v5521_v42 = vpack.c.bf16 %v1892_v54, %v1891_v43  ;;  %v7370_v60 = vld [vmem:[#allocation11] ss:$0 sm:$0xff] }
 0x259   : > { %2098 = vst.msk [vmem:[#allocation2 + $0x30] sm:$0x1] %vm2095_vm3, %v6249_v62  ;;  %2116 = vst.msk [vmem:[#allocation2 + $0x41] sm:$0x1] %vm2095_vm3, %v6249_v62 }
 0x25a   : > { %v1115_v23 = vpop.permute.xlu0 %1114  ;;  %v1535_v13 = vld [vmem:[#allocation3 + $0x58] sm:$0xff]  ;;  %5522 = vmatpush3.bf16.msra.mxu1 %v5521_v42  ;;  %2096 = vst.msk [vmem:[#allocation2] sm:$0x1] %vm2095_vm3, %v6249_v62  ;;  %2097 = vst.msk [vmem:[#allocation2 + $0x18] sm:$0x1] %vm2095_vm3, %v6249_v62 }
 0x25b   : > { %v1117_v57 = vpop.permute.xlu1 %1116  ;;  %1151 = vst.msk [vmem:[#allocation3 + $0x60] sm:$0xff] %vm1138_vm6, %v1115_v23  ;;  %5436 = vmatmul.mubr.msk.bf16.gmra.mrb[20].mxu0 %vm1567_vm12, %v1535_v13  ;;  %5466 = vmatprep.subr.mxu1 %v6249_v62 }
 0x25c   : > { %1152 = vst.msk [vmem:[#allocation3 + $0x68] sm:$0xff] %vm1138_vm6, %v1117_v57 }
 0x25d   : > { %2099 = vst.msk [vmem:[#allocation2 + $0x48] sm:$0x1] %vm2095_vm3, %v6249_v62  ;;  %2100 = vst.msk [vmem:[#allocation2 + $0x60] sm:$0x1] %vm2095_vm3, %v6249_v62 }
 0x25e   : > { %v1192_v17 = vpop.permute.xlu0 %1191  ;;  %2101 = vst.msk [vmem:[#allocation2 + $0x78] sm:$0x1] %vm2095_vm3, %v6249_v62  ;;  %2102 = vst.msk [vmem:[#allocation2 + $0x90] sm:$0x1] %vm2095_vm3, %v6249_v62 }
 0x25f   : > { %v1194_v29 = vpop.permute.xlu1 %1193  ;;  %1228 = vst.msk [vmem:[#allocation3 + $0x60] sm:$0xff] %vm1215_vm7, %v1192_v17 }
 0x260   : > { %1229 = vst.msk [vmem:[#allocation3 + $0x68] sm:$0xff] %vm1215_vm7, %v1194_v29 }
 0x261   : > { %2103 = vst.msk [vmem:[#allocation2 + $0xa8] sm:$0x1] %vm2095_vm3, %v6249_v62  ;;  %2104 = vst.msk [vmem:[#allocation2 + $0xc0] sm:$0x1] %vm2095_vm3, %v6249_v62 }
 0x262   : > { %v1266_v58 = vpop.permute.xlu0 %1265  ;;  %2105 = vst.msk [vmem:[#allocation2 + $0xd8] sm:$0x1] %vm2095_vm3, %v6249_v62  ;;  %2106 = vst.msk [vmem:[#allocation2 + $0xf0] sm:$0x1] %vm2095_vm3, %v6249_v62 }
 0x263   : > { %v1268_v33 = vpop.permute.xlu1 %1267  ;;  %1302 = vst.msk [vmem:[#allocation3 + $0x60] sm:$0xff] %vm1289_vm8, %v1266_v58 }
 0x264   : > { %1303 = vst.msk [vmem:[#allocation3 + $0x68] sm:$0xff] %vm1289_vm8, %v1268_v33 }
 0x265   : > { %2107 = vst.msk [vmem:[#allocation2 + $0x108] sm:$0x1] %vm2095_vm3, %v6249_v62  ;;  %2108 = vst.msk [vmem:[#allocation2 + $0x120] sm:$0x1] %vm2095_vm3, %v6249_v62 }
 0x266   : > { %v1333_v3 = vpop.permute.xlu0 %1332  ;;  %2109 = vst.msk [vmem:[#allocation2 + $0x138] sm:$0x1] %vm2095_vm3, %v6249_v62  ;;  %2110 = vst.msk [vmem:[#allocation2 + $0x150] sm:$0x1] %vm2095_vm3, %v6249_v62 }
 0x267   : > { %v1335_v34 = vpop.permute.xlu1 %1334  ;;  %1369 = vst.msk [vmem:[#allocation3 + $0x60] sm:$0xff] %vm1356_vm9, %v1333_v3 }
 0x268   : > { %1370 = vst.msk [vmem:[#allocation3 + $0x68] sm:$0xff] %vm1356_vm9, %v1335_v34 }
 0x269   : > { %2111 = vst.msk [vmem:[#allocation2 + $0x168] sm:$0x1] %vm2095_vm3, %v6249_v62  ;;  %2112 = vst.msk [vmem:[#allocation2 + $0x180] sm:$0x1] %vm2095_vm3, %v6249_v62 }
 0x26a   : > { %v1410_v21 = vpop.permute.xlu0 %1409  ;;  %2113 = vst.msk [vmem:[#allocation2 + $0x198] sm:$0x1] %vm2095_vm3, %v6249_v62  ;;  %2115 = vst.msk [vmem:[#allocation2 + $0x29] sm:$0x1] %vm2095_vm3, %v6249_v62 }
 0x26b   : > { %v1412_v11 = vpop.permute.xlu1 %1411  ;;  %1446 = vst.msk [vmem:[#allocation3 + $0x60] sm:$0xff] %vm1433_vm10, %v1410_v21 }
 0x26c   : > { %1447 = vst.msk [vmem:[#allocation3 + $0x68] sm:$0xff] %vm1433_vm10, %v1412_v11 }
 0x26d   : > { %2117 = vst.msk [vmem:[#allocation2 + $0x59] sm:$0x1] %vm2095_vm3, %v6249_v62  ;;  %2118 = vst.msk [vmem:[#allocation2 + $0x71] sm:$0x1] %vm2095_vm3, %v6249_v62 }
 0x26e   : > { %v1484_v39 = vpop.permute.xlu0 %1483  ;;  %2119 = vst.msk [vmem:[#allocation2 + $0x89] sm:$0x1] %vm2095_vm3, %v6249_v62  ;;  %2120 = vst.msk [vmem:[#allocation2 + $0xa1] sm:$0x1] %vm2095_vm3, %v6249_v62 }
 0x26f   : > { %v827_v55 = vpop.permute.xlu1 %826  ;;  %1520 = vst.msk [vmem:[#allocation3 + $0x60] sm:$0xff] %vm1507_vm11, %v1484_v39 }
 0x270   : > { %861 = vst.msk [vmem:[#allocation3 + $0x70] sm:$0xff] %vm846_vm4, %v827_v55 }
 0x271   : > { %2121 = vst.msk [vmem:[#allocation2 + $0xb9] sm:$0x1] %vm2095_vm3, %v6249_v62  ;;  %2122 = vst.msk [vmem:[#allocation2 + $0xd1] sm:$0x1] %vm2095_vm3, %v6249_v62 }
 0x272   : > { %v1486_v37 = vpop.permute.xlu0 %1485  ;;  %2123 = vst.msk [vmem:[#allocation2 + $0xe9] sm:$0x1] %vm2095_vm3, %v6249_v62  ;;  %2124 = vst.msk [vmem:[#allocation2 + $0x101] sm:$0x1] %vm2095_vm3, %v6249_v62 }
 0x273   : > { %v829_v38 = vpop.permute.xlu1 %828  ;;  %1521 = vst.msk [vmem:[#allocation3 + $0x68] sm:$0xff] %vm1507_vm11, %v1486_v37 }
 0x274   : > { %862 = vst.msk [vmem:[#allocation3 + $0x78] sm:$0xff] %vm846_vm4, %v829_v38 }
 0x275   : > { %2125 = vst.msk [vmem:[#allocation2 + $0x119] sm:$0x1] %vm2095_vm3, %v6249_v62  ;;  %2126 = vst.msk [vmem:[#allocation2 + $0x131] sm:$0x1] %vm2095_vm3, %v6249_v62 }
 0x276   : > { %v1037_v7 = vpop.permute.xlu0 %1036  ;;  %v1536_v52 = vld [vmem:[#allocation3 + $0x60] sm:$0xff]  ;;  %2127 = vst.msk [vmem:[#allocation2 + $0x149] sm:$0x1] %vm2095_vm3, %v6249_v62  ;;  %2128 = vst.msk [vmem:[#allocation2 + $0x161] sm:$0x1] %vm2095_vm3, %v6249_v62 }
 0x277   : > { %v1039_v53 = vpop.permute.xlu1 %1038  ;;  %1071 = vst.msk [vmem:[#allocation3 + $0x70] sm:$0xff] %vm1056_vm5, %v1037_v7  ;;  %5439 = vmatprep.mubr.msk.bf16.mxu0 %vm1567_vm12, %v1536_v52 }
 0x278   : > { %1072 = vst.msk [vmem:[#allocation3 + $0x78] sm:$0xff] %vm1056_vm5, %v1039_v53 }
 0x279   : > { %2129 = vst.msk [vmem:[#allocation2 + $0x179] sm:$0x1] %vm2095_vm3, %v6249_v62  ;;  %2130 = vst.msk [vmem:[#allocation2 + $0x191] sm:$0x1] %vm2095_vm3, %v6249_v62 }
 0x27a   : > { %v1119_v35 = vpop.permute.xlu0 %1118  ;;  %v1537_v15 = vld [vmem:[#allocation3 + $0x68] sm:$0xff] }
 0x27b   : > { %v1121_v1 = vpop.permute.xlu1 %1120  ;;  %1153 = vst.msk [vmem:[#allocation3 + $0x70] sm:$0xff] %vm1138_vm6, %v1119_v35  ;;  %5440 = vmatmul.mubr.msk.bf16.gmra.mrb[24].mxu0 %vm1567_vm12, %v1537_v15 }
 0x27c   : > { %1154 = vst.msk [vmem:[#allocation3 + $0x78] sm:$0xff] %vm1138_vm6, %v1121_v1 }
 0x27e   : > { %v1196_v20 = vpop.permute.xlu0 %1195 }
 0x27f   : > { %v1198_v56 = vpop.permute.xlu1 %1197  ;;  %1230 = vst.msk [vmem:[#allocation3 + $0x70] sm:$0xff] %vm1215_vm7, %v1196_v20 }
 0x280   : > { %1231 = vst.msk [vmem:[#allocation3 + $0x78] sm:$0xff] %vm1215_vm7, %v1198_v56 }
 0x282   : > { %v1270_v63 = vpop.permute.xlu0 %1269 }
 0x283   : > { %v1272_v16 = vpop.permute.xlu1 %1271  ;;  %1304 = vst.msk [vmem:[#allocation3 + $0x70] sm:$0xff] %vm1289_vm8, %v1270_v63 }
 0x284   : > { %1305 = vst.msk [vmem:[#allocation3 + $0x78] sm:$0xff] %vm1289_vm8, %v1272_v16 }
 0x286   : > { %v1337_v18 = vpop.permute.xlu0 %1336 }
 0x287   : > { %v1339_v0 = vpop.permute.xlu1 %1338  ;;  %1371 = vst.msk [vmem:[#allocation3 + $0x70] sm:$0xff] %vm1356_vm9, %v1337_v18 }
 0x288   : > { %1372 = vst.msk [vmem:[#allocation3 + $0x78] sm:$0xff] %vm1356_vm9, %v1339_v0 }
 0x28a   : > { %v1414_v47 = vpop.permute.xlu0 %1413 }
 0x28b   : > { %v1416_v48 = vpop.permute.xlu1 %1415  ;;  %1448 = vst.msk [vmem:[#allocation3 + $0x70] sm:$0xff] %vm1433_vm10, %v1414_v47 }
 0x28c   : > { %1449 = vst.msk [vmem:[#allocation3 + $0x78] sm:$0xff] %vm1433_vm10, %v1416_v48 }
 0x28e   : > { %v1488_v49 = vpop.permute.xlu0 %1487  ;;  %v5417_v50 = vpop.f32.mrb[0].mxu0 }
 0x28f   : > { %1522 = vst.msk [vmem:[#allocation3 + $0x70] sm:$0xff] %vm1507_vm11, %v1488_v49  ;;  %v1490_v10 = vpop.permute.xlu1 %1489  ;;  %v1654_v5 = vpop.f32.mrb[1].mxu0  ;;  %v7382_v29 = vadd.f32 %v5417_v50, %v7370_v60 }
 0x290   : > { %1523 = vst.msk [vmem:[#allocation3 + $0x78] sm:$0xff] %vm1507_vm11, %v1490_v10  ;;  %v5418_v6 = vpop.f32.mrb[2].mxu0  ;;  %v7376_v57 = vadd.f32 %v7370_v60, %v1654_v5 }
 0x291   : > { %v1657_v4 = vpop.f32.mrb[3].mxu0  ;;  %v1783_v11 = vmax.f32 %v7382_v29, 0.0  ;;  %v7395_v55 = vadd.f32 %v5418_v6, %v7370_v60 }
 0x292   : > { %v7373_v23 = vadd.f32 %v7370_v60, %v1657_v4  ;;  %v1781_v58 = vmax.f32 %v7376_v57, 0.0 }
 0x293   : > { %v1817_v7 = vsel %vm1813_vm13, %v1783_v11, 0.0  ;;  %v1784_v53 = vmax.f32 %v7395_v55, 0.0 }
 0x294   : > { %v1782_v13 = vmax.f32 %v7373_v23, 0.0  ;;  %v1814_v39 = vsel %vm1813_vm13, %v1781_v58, 0.0 }
 0x295   : > { %v1819_v15 = vsel %vm1813_vm13, %v1784_v53, 0.0 }
 0x296   : > { %v1538_v36 = vld [vmem:[#allocation3 + $0x70] sm:$0xff]  ;;  %v1815_v34 = vsel %vm1813_vm13, %v1782_v13, 0.0 }
 0x297   : > { %5443 = vmatprep.mubr.msk.bf16.mxu0 %vm1567_vm12, %v1538_v36  ;;  %v1539_v59 = vld [vmem:[#allocation3 + $0x78] sm:$0xff]  ;;  %v1816_v38 = vadd.f32 %v1815_v34, %v1814_v39 }
 0x298   : > { %5444 = vmatmul.mubr.msk.bf16.gmra.mrb[28].mxu0 %vm1567_vm12, %v1539_v59 }
 0x299   : > { %v1818_v1 = vadd.f32 %v1817_v7, %v1816_v38 }
 0x29b   : > { %v1820_v63 = vadd.f32 %v1819_v15, %v1818_v1 }
 0x2ae   : > { %v7339_v45 = vpop.f32.mrb[4].mxu0 }
 0x2af   : > { %v1670_v14 = vpop.f32.mrb[5].mxu0  ;;  %v7417_v16 = vadd.f32 %v7339_v45, %v7370_v60 }
 0x2b0   : > { %v7341_v2 = vpop.f32.mrb[6].mxu0  ;;  %v7398_v37 = vadd.f32 %v7370_v60, %v1670_v14 }
 0x2b1   : > { %v1673_v8 = vpop.f32.mrb[7].mxu0  ;;  %v1787_v47 = vmax.f32 %v7417_v16, 0.0  ;;  %v7425_v48 = vadd.f32 %v7341_v2, %v7370_v60 }
 0x2b2   : > { %v1785_v52 = vmax.f32 %v7398_v37, 0.0  ;;  %v7406_v35 = vadd.f32 %v7370_v60, %v1673_v8 }
 0x2b3   : > { %v1825_v10 = vsel %vm1813_vm13, %v1787_v47, 0.0  ;;  %v1788_v5 = vmax.f32 %v7425_v48, 0.0 }
 0x2b4   : > { %v1821_v20 = vsel %vm1813_vm13, %v1785_v52, 0.0  ;;  %v1786_v56 = vmax.f32 %v7406_v35, 0.0 }
 0x2b5   : > { %v1822_v18 = vadd.f32 %v1821_v20, %v1820_v63  ;;  %v1827_v59 = vsel %vm1813_vm13, %v1788_v5, 0.0 }
 0x2b6   : > { %v1823_v0 = vsel %vm1813_vm13, %v1786_v56, 0.0 }
 0x2b7   : > { %v1824_v50 = vadd.f32 %v1823_v0, %v1822_v18 }
 0x2b9   : > { %v1826_v36 = vadd.f32 %v1825_v10, %v1824_v50 }
 0x2bb   : > { %v1828_v2 = vadd.f32 %v1827_v59, %v1826_v36 }
 0x2ce   : > { %v7343_v9 = vpop.f32.mrb[8].mxu0 }
 0x2cf   : > { %v7345_v19 = vpop.f32.mrb[9].mxu0  ;;  %v7449_v8 = vadd.f32 %v7343_v9, %v7370_v60 }
 0x2d0   : > { %v7347_v32 = vpop.f32.mrb[10].mxu0  ;;  %v7429_v49 = vadd.f32 %v7370_v60, %v7345_v19 }
 0x2d1   : > { %v7349_v24 = vpop.f32.mrb[11].mxu0  ;;  %v1791_v25 = vmax.f32 %v7449_v8, 0.0  ;;  %v7457_v26 = vadd.f32 %v7347_v32, %v7370_v60 }
 0x2d2   : > { %v1789_v6 = vmax.f32 %v7429_v49, 0.0  ;;  %v7438_v4 = vadd.f32 %v7370_v60, %v7349_v24 }
 0x2d3   : > { %v1833_v30 = vsel %vm1813_vm13, %v1791_v25, 0.0  ;;  %v1792_v41 = vmax.f32 %v7457_v26, 0.0  ;;  %v5700_v26 = vld [vmem:[#allocation16 + $0xf0] sm:$0xff]  }
 0x2d4   : > { %v1829_v45 = vsel %vm1813_vm13, %v1789_v6, 0.0  ;;  %v1790_v14 = vmax.f32 %v7438_v4, 0.0 }
 0x2d5   : > { %v1830_v19 = vadd.f32 %v1829_v45, %v1828_v2 }
 0x2d6   : > { %v1831_v24 = vsel %vm1813_vm13, %v1790_v14, 0.0 }
 0x2d7   : > { %v1832_v46 = vadd.f32 %v1831_v24, %v1830_v19 }
 0x2d9   : > { %v1834_v43 = vadd.f32 %v1833_v30, %v1832_v46 }
 0x2ee   : > { %v7351_v22 = vpop.f32.mrb[12].mxu0 }
 0x2ef   : > { %v7353_v12 = vpop.f32.mrb[13].mxu0  ;;  %v7481_v39 = vadd.f32 %v7351_v22, %v7370_v60 }
 0x2f0   : > { %v7355_v40 = vpop.f32.mrb[14].mxu0  ;;  %v7461_v27 = vadd.f32 %v7370_v60, %v7353_v12  ;;  %v1835_v12 = vsel %vm1813_vm13, %v1792_v41, 0.0 }
 0x2f1   : > { %v7357_v28 = vpop.f32.mrb[15].mxu0  ;;  %v1836_v34 = vadd.f32 %v1835_v12, %v1834_v43  ;;  %v9644_v7 = vmax.f32 %v7481_v39, 0.0  ;;  %v7489_v1 = vadd.f32 %v7355_v40, %v7370_v60 }
 0x2f2   : > { %v1793_v31 = vmax.f32 %v7461_v27, 0.0  ;;  %v7470_v32 = vadd.f32 %v7370_v60, %v7357_v28  ;;  %v5701_v27 = vld [vmem:[#allocation16 + $0xb0] sm:$0xff]  }
 0x2f3   : > { %v1841_v22 = vsel %vm1813_vm13, %v9644_v7, 0.0  ;;  %v9643_v63 = vmax.f32 %v7489_v1, 0.0 }
 0x2f4   : > { %v1837_v54 = vsel %vm1813_vm13, %v1793_v31, 0.0  ;;  %v9645_v42 = vmax.f32 %v7470_v32, 0.0  ;;  %v9702_v37 = vmax.f32 %v7470_v32, 0.0 }
 0x2f5   : > { %v1838_v38 = vadd.f32 %v1837_v54, %v1836_v34  ;;  %v1843_v40 = vsel %vm1813_vm13, %v9643_v63, 0.0 }
 0x2f6   : > { %v1839_v28 = vsel %vm1813_vm13, %v9645_v42, 0.0  ;;  %v1967_v42 = vld [vmem:[#allocation14] sm:$0xf] }
 0x2f7   : > { %v1840_v20 = vadd.f32 %v1839_v28, %v1838_v38 }
 0x2f9   : > { %v1842_v50 = vadd.f32 %v1841_v22, %v1840_v20 }
 0x2fb   : > { %v1844_v36 = vadd.f32 %v1843_v40, %v1842_v50 }
 0x30e   : > { %v7379_v17 = vpop.f32.mrb[16].mxu0 }
 0x30f   : > { %v1718_v33 = vpop.f32.mrb[17].mxu0  ;;  %v7511_v59 = vadd.f32 %v7379_v17, %v7370_v60 }
 0x310   : > { %v7385_v3 = vpop.f32.mrb[18].mxu0  ;;  %v7492_v15 = vadd.f32 %v7370_v60, %v1718_v33 }
 0x311   : > { %v1721_v21 = vpop.f32.mrb[19].mxu0  ;;  %v9639_v2 = vmax.f32 %v7511_v59, 0.0  ;;  %v7519_v19 = vadd.f32 %v7385_v3, %v7370_v60 }
 0x312   : > { %v9642_v18 = vmax.f32 %v7492_v15, 0.0  ;;  %v7500_v0 = vadd.f32 %v7370_v60, %v1721_v21 }
 0x313   : > { %v1849_v17 = vsel %vm1813_vm13, %v9639_v2, 0.0  ;;  %v9637_v43 = vmax.f32 %v7519_v19, 0.0 }
 0x314   : > { %v1845_v33 = vsel %vm1813_vm13, %v9642_v18, 0.0  ;;  %v9641_v10 = vmax.f32 %v7500_v0, 0.0  ;;  %v9706_v49 = vmax.f32 %v7500_v0, 0.0 }
 0x315   : > { %v1846_v45 = vadd.f32 %v1845_v33, %v1844_v36 }
 0x316   : > { %v1847_v21 = vsel %vm1813_vm13, %v9641_v10, 0.0 }
 0x317   : > { %v1848_v46 = vadd.f32 %v1847_v21, %v1846_v45 }
 0x319   : > { %v1850_v38 = vadd.f32 %v1849_v17, %v1848_v46 }
 0x32e   : > { %v5437_v44 = vpop.f32.mrb[20].mxu0 }
 0x32f   : > { %v1734_v51 = vpop.f32.mrb[21].mxu0  ;;  %v7540_v40 = vadd.f32 %v5437_v44, %v7370_v60 }
 0x330   : > { %v5438_v9 = vpop.f32.mrb[22].mxu0  ;;  %v7522_v24 = vadd.f32 %v7370_v60, %v1734_v51  ;;  %v1851_v51 = vsel %vm1813_vm13, %v9637_v43, 0.0 }
 0x331   : > { %v1737_v61 = vpop.f32.mrb[23].mxu0  ;;  %v1852_v50 = vadd.f32 %v1851_v51, %v1850_v38  ;;  %v9630_v36 = vmax.f32 %v7540_v40, 0.0  ;;  %v7547_v45 = vadd.f32 %v5438_v9, %v7370_v60 }
 0x332   : > { %v9635_v12 = vmax.f32 %v7522_v24, 0.0  ;;  %v7530_v54 = vadd.f32 %v7370_v60, %v1737_v61 }
 0x333   : > { %v1857_v17 = vsel %vm1813_vm13, %v9630_v36, 0.0  ;;  %v9631_v44 = vmax.f32 %v7547_v45, 0.0  ;;  %v9712_v0 = vmax.f32 %v7547_v45, 0.0 }
 0x334   : > { %v1853_v20 = vsel %vm1813_vm13, %v9635_v12, 0.0  ;;  %v9633_v22 = vmax.f32 %v7530_v54, 0.0  ;;  %v9710_v32 = vmax.f32 %v7530_v54, 0.0 }
 0x335   : > { %v1854_v61 = vadd.f32 %v1853_v20, %v1852_v50  ;;  %v1859_v9 = vsel %vm1813_vm13, %v9631_v44, 0.0 }
 0x336   : > { %v1855_v33 = vsel %vm1813_vm13, %v9633_v22, 0.0 }
 0x337   : > { %v1856_v46 = vadd.f32 %v1855_v33, %v1854_v61 }
 0x339   : > { %v1858_v20 = vadd.f32 %v1857_v17, %v1856_v46 }
 0x33b   : > { %v1860_v61 = vadd.f32 %v1859_v9, %v1858_v20 }
 0x34e   : > { %v5441_v30 = vpop.f32.mrb[24].mxu0 }
 0x34f   : > { %v1750_v34 = vpop.f32.mrb[25].mxu0  ;;  %v7568_v33 = vadd.f32 %v5441_v30, %v7370_v60 }
 0x350   : > { %v5442_v3 = vpop.f32.mrb[26].mxu0  ;;  %v7550_v21 = vadd.f32 %v7370_v60, %v1750_v34 }
 0x351   : > { %v1753_v28 = vpop.f32.mrb[27].mxu0  ;;  %v9636_v46 = vmax.f32 %v7568_v33, 0.0  ;;  %v7575_v17 = vadd.f32 %v5442_v3, %v7370_v60 }
 0x352   : > { %v9632_v38 = vmax.f32 %v7550_v21, 0.0  ;;  %v7558_v51 = vadd.f32 %v7370_v60, %v1753_v28 }
 0x353   : > { %v9638_v20 = vmax.f32 %v7575_v17, 0.0  ;;  %v9716_v45 = vmax.f32 %v7575_v17, 0.0 }
 0x354   : > { %v1861_v34 = vsel %vm1813_vm13, %v9632_v38, 0.0  ;;  %v9634_v50 = vmax.f32 %v7558_v51, 0.0  ;;  %v1865_v38 = vsel %vm1813_vm13, %v9636_v46, 0.0  ;;  %v9714_v54 = vmax.f32 %v7558_v51, 0.0 }
 0x355   : > { %v1862_v36 = vadd.f32 %v1861_v34, %v1860_v61  ;;  %v1867_v3 = vsel %vm1813_vm13, %v9638_v20, 0.0 }
 0x356   : > { %v1863_v28 = vsel %vm1813_vm13, %v9634_v50, 0.0 }
 0x357   : > { %v1864_v44 = vadd.f32 %v1863_v28, %v1862_v36 }
 0x359   : > { %v1866_v30 = vadd.f32 %v1865_v38, %v1864_v44 }
 0x35b   : > { %v1868_v38 = vadd.f32 %v1867_v3, %v1866_v30 }
 0x36b   : > { %v5445_v9 = vpop.f32.mrb[28].mxu0 }
 0x36c   : > { %v1766_v22 = vpop.f32.mrb[29].mxu0  ;;  %v7582_v34 = vadd.f32 %v5445_v9, %v7370_v60 }
 0x36d   : > { %v7585_v61 = vadd.f32 %v7370_v60, %v1766_v22  ;;  %v5446_v50 = vpop.f32.mrb[30].mxu0 }
 0x36e   : > { %v1769_v12 = vpop.f32.mrb[31].mxu0  ;;  %v7592_v28 = vadd.f32 %v5446_v50, %v7370_v60  ;;  %v9647_v9 = vmax.f32 %v7582_v34, 0.0 }
 0x36f   : > { %v9640_v36 = vmax.f32 %v7585_v61, 0.0  ;;  %v7595_v44 = vadd.f32 %v7370_v60, %v1769_v12 }
 0x370   : > { %v9646_v20 = vmax.f32 %v7592_v28, 0.0  ;;  %v1873_v60 = vsel %vm1813_vm13, %v9647_v9, 0.0  ;;  %v5698_v9 = vld [vmem:[#allocation16 + $0x60] sm:$0xff]   ;;  %v9719_v17 = vmax.f32 %v7592_v28, 0.0  ;;  %v5705_v28 = vld [vmem:[#allocation16 + $0xb8] sm:$0xff]  }
 0x371   : > { %v1869_v22 = vsel %vm1813_vm13, %v9640_v36, 0.0  ;;  %v1810_v46 = vmax.f32 %v7595_v44, 0.0 }
 0x372   : > { %v1870_v43 = vadd.f32 %v1869_v22, %v1868_v38  ;;  %v1875_v30 = vsel %vm1813_vm13, %v9646_v20, 0.0  ;;  %v2051_v20 = vlaneseq }
 0x373   : > { %v1871_v50 = vsel %vm1813_vm13, %v1810_v46, 0.0 }
 0x374   : > { %v1872_v2 = vadd.f32 %v1871_v50, %v1870_v43 }
 0x376   : > { %v1874_v12 = vadd.f32 %v1873_v60, %v1872_v2 }
 0x378   : > { %v1876_v3 = vadd.f32 %v1875_v30, %v1874_v12  ;;  %v5682_v12 = vld [vmem:[#allocation16 + $0xd0] sm:$0xff]  }
 0x379   : > { %v5683_v30 = vld [vmem:[#allocation16 + $0x90] sm:$0xff]  }
 0x37a   : > { %v1877_v36 = vrot.slane %v1876_v3, 4 }
 0x37c   : > { %v1878_v10 = vadd.f32 %v1877_v36, %v1876_v3  ;;  %v2216_v3 = vld [vmem:[#allocation2 + $0x198] sm:$0xff] }
 0x37e   : > { %v1879_v38 = vrot.slane %v1878_v10, 2 }
 0x380   : > { %v1880_v22 = vadd.f32 %v1879_v38, %v1878_v10  ;;  %v2217_v38 = vld [vmem:[#allocation2 + $0x1a0] sm:$0xff] }
 0x382   : > { %v1881_v18 = vrot.slane %v1880_v22, 1 }
 0x384   : > { %v1882_v63 = vadd.f32 %v1881_v18, %v1880_v22  ;;  %v5681_v18 = vld [vmem:[#allocation16 + $0x88] sm:$0xff]  }
 0x386   : > { %v1884_v7 = vmul.f32 0.00390625, %v1882_v63  ;;  %v5680_v63 = vld [vmem:[#allocation16 + $0xc8] sm:$0xff]  }
 0x388   : > { %5464 = vmatmul.mubr.msk.f32.vlgmr.msra.gmra.mrb[0].mxu1 %vm1813_vm13, %v1884_v7  ;;  %v5679_v7 = vld [vmem:[#allocation16 + $0x80] sm:$0xff]  }
 0x389   : > { %5467 = vmatpush3.msk.msra.mxu1 %vm1971_vm15, %v1967_v42  ;;  %5468 = vmatprep.mubr.msk.f32.mxu1 %vm6248_vm14, %v6249_v62  ;;  %v5678_v42 = vld [vmem:[#allocation16 + $0xc0] sm:$0xff]  }
 0x38a   : > { %5277 = vmatprep.subr.bf16.mxu0 %v5678_v42 }
 0x38b   : > { %5278 = vmatpush3.bf16.msra.mxu0 %v5679_v7 }
 0x38c   : > { %5279 = vmatprep.subr.bf16.mxu0 %v5680_v63 }
 0x38f   : > { %5280 = vmatpush3.bf16.msra.mxu0 %v5681_v18  ;;  %v5685_v18 = vld [vmem:[#allocation16 + $0xd8] sm:$0xff]  }
 0x390   : > { %5281 = vmatprep.subr.bf16.mxu0 %v5682_v12  ;;  %v5687_v12 = vld [vmem:[#allocation16 + $0x98] sm:$0xff]  }
 0x393   : > { %5282 = vmatpush3.bf16.msra.mxu0 %v5683_v30  ;;  %v5688_v30 = vld [vmem:[#allocation16 + $0x48] sm:$0xff]  }
 0x394   : > { %5283 = vmatprep.subr.bf16.mxu0 %v5685_v18 }
 0x397   : > { %5284 = vmatpush3.bf16.msra.mxu0 %v5687_v12 }
 0x45b   : > { %v1962_v2 = vpop.f32.mrb[0].mxu1 }
 0x45c   : > { %v1966_v43 = vmax.f32 %v1962_v2, 0.0  ;;  %v5465_v50 = vpop.f32.mrb[1].mxu1  ;;  %v2901_v2 = vrot.slane %v2217_v38, 2  ;;  %v5689_v38 = vld [vmem:[#allocation16 + $0x8] sm:$0xff]  }
 0x45e   : > { %5469 = vmatmul.mubr.msk.f32.vlgmr.msra.gmra.mrb[2].mxu1 %vm588_vm0, %v1966_v43  ;;  %vm2089_vm0 = vcmask 517120  }
 0x45f   : > { %2090 = vst.msk [vmem:[#allocation2 + $0x10] sm:$0x3] %vm2089_vm0, %v6249_v62  ;;  %2094 = vst.msk [vmem:[#allocation2 + $0x1a8] sm:$0x3] %vm2089_vm0, %v6249_v62 }
 0x460   : > { %2114 = vst.msk [vmem:[#allocation2 + $0x11] sm:$0x1] %vm2095_vm3, %v6249_v62  ;;  %2131 = vst.msk [vmem:[#allocation2 + $0x1a9] sm:$0x1] %vm2095_vm3, %v6249_v62  ;;  %v2900_v62 = vrot.slane %v2216_v3, 2  ;;  %v5691_v3 = vld [vmem:[#allocation16 + $0xe0] sm:$0xff]  }
 0x461   : > { %5285 = vmatprep.subr.bf16.mxu0 %v5691_v3 }
 0x462   : > { %v2902_v50 = vsel %vm863_vm2, %v2900_v62, %v2901_v2  ;;  %v5690_v62 = vld [vmem:[#allocation16 + $0x50] sm:$0xff]  }
 0x467   : > { %v2218_v22 = vld [vmem:[#allocation2 + $0x1a8] sm:$0x3] }
 0x468   : > { %v2903_v43 = vrot.slane %v2218_v22, 2  ;;  %v5693_v22 = vld [vmem:[#allocation16 + $0xa0] sm:$0xff]  }
 0x469   : > { %5286 = vmatpush3.bf16.msra.mxu0 %v5693_v22 }
 0x46a   : > { %v2904_v42 = vsel %vm863_vm2, %v2901_v2, %v2903_v43  ;;  %v5696_v2 = vld [vmem:[#allocation16 + $0xe8] sm:$0xff]   ;;  %v2052_v43 = vshrl.u32 %v2051_v20, 7 }
 0x46b   : > { %v2907_v63 = vpack.c.bf16 %v2904_v42, %v2902_v50  ;;  %v7693_v50 = vld [vmem:[#allocation2] sm:$0xff]  ;;  %v7695_v42 = vld [vmem:[#allocation2 + $0x8] sm:$0xff]  ;;  %5287 = vmatprep.subr.bf16.mxu0 %v5696_v2 }
 0x46c   : > { %v2053_v18 = vsub.s32 0, %v2052_v43  ;;  %v2300_v12 = vrot.slane %v7695_v42, 1  ;;  %v2219_v44 = vpack.c.bf16 %v7695_v42, %v7693_v50 }
 0x46d   : > { %2923 = vst.msk [vmem:[#allocation4 + $0x278] sm:$0xff] %vm1813_vm13, %v2907_v63  ;;  %v5692_v63 = vld [vmem:[#allocation16 + $0x10] sm:$0xff]  }
 0x46e   : > { %2235 = vst.msk [vmem:[#allocation4] sm:$0xff] %vm1813_vm13, %v2219_v44 }
 0x531   : > { %v2041_v10 = vpop.f32.mrb[2].mxu1 }
 0x532   : > { %v5036_v36 = vmul.f32 -1.442695, %v2041_v10  ;;  %v5470_v60 = vpop.f32.mrb[3].mxu1 }
 0x533   : > { %v5684_v60 = vld [vmem:[#allocation16 + $0x40] sm:$0xff]  }
 0x534   : > { %5714 = vpow2.f32 %v5036_v36  ;;  %v5686_v36 = vld [vmem:[#allocation16] sm:$0xff]   ;;  %5165 = vmatprep.subr.bf16.mxu1 %v5684_v60  ;;  %v5694_v60 = vld [vmem:[#allocation16 + $0x58] sm:$0xff]  }
 0x535   : > { %5166 = vmatpush3.bf16.msra.mxu1 %v5686_v36  ;;  %v2299_v36 = vrot.slane %v7693_v50, 1 }
 0x536   : > { %5167 = vmatprep.subr.bf16.mxu1 %v5688_v30  ;;  %v5695_v30 = vld [vmem:[#allocation16 + $0x18] sm:$0xff]  }
 0x537   : > { %v7703_v22 = vsel %vm653_vm1, %v2299_v36, %v2300_v12 }
 0x539   : > { %5168 = vmatpush3.bf16.msra.mxu1 %v5689_v38 }
 0x53a   : > { %5169 = vmatprep.subr.bf16.mxu1 %v5690_v62 }
 0x53d   : > { %5170 = vmatpush3.bf16.msra.mxu1 %v5692_v63 }
 0x53e   : > { %v5715_v7 = vpop.eup %5714  ;;  %5171 = vmatprep.subr.bf16.mxu1 %v5694_v60 }
 0x53f   : > { %v2048_v10 = vadd.f32 1.0, %v5715_v7  ;;  %v7697_v7 = vld [vmem:[#allocation2 + $0x10] sm:$0x3] }
 0x540   : > { %v2302_v20 = vrot.slane %v7697_v7, 1 }
 0x541   : > { %5716 = vrcp.f32 %v2048_v10  ;;  %v5697_v10 = vld [vmem:[#allocation16 + $0xa8] sm:$0xff]   ;;  %5172 = vmatpush3.bf16.msra.mxu1 %v5695_v30 }
 0x542   : > { %5288 = vmatpush3.bf16.msra.mxu0 %v5697_v10  ;;  %v7706_v62 = vsel %vm653_vm1, %v2300_v12, %v2302_v20  ;;  %5173 = vmatprep.subr.bf16.mxu1 %v5698_v9 }
 0x543   : > { %5289 = vmatprep.subr.bf16.mxu0 %v5700_v26 }
 0x546   : > { %5290 = vmatpush3.bf16.msra.mxu0 %v5701_v27 }
 0x54b   : > { %v5717_v3 = vpop.eup %5716 }
 0x54c   : > { %v2054_v38 = vrot.slane %v5717_v3, %v2053_v18 }
 0x54e   : > { %v2055_v2 = vmul.f32 %v2054_v38, %v1781_v58  ;;  %v2056_v43 = vmul.f32 %v2054_v38, %v1782_v13  ;;  %v2057_v63 = vmul.f32 %v2054_v38, %v1783_v11  ;;  %v2058_v10 = vmul.f32 %v2054_v38, %v1784_v53 }
 0x54f   : > { %v2059_v60 = vmul.f32 %v2054_v38, %v1785_v52  ;;  %v2060_v18 = vmul.f32 %v2054_v38, %v1786_v56  ;;  %v2061_v57 = vmul.f32 %v2054_v38, %v1787_v47  ;;  %v2062_v23 = vmul.f32 %v2054_v38, %v1788_v5 }
 0x550   : > { %v2063_v13 = vmul.f32 %v2054_v38, %v1789_v6  ;;  %v2064_v29 = vmul.f32 %v2054_v38, %v1790_v14  ;;  %v2065_v58 = vmul.f32 %v2054_v38, %v1791_v25  ;;  %v2066_v11 = vmul.f32 %v2054_v38, %v1792_v41  ;;  %2133 = vst.msk [vmem:[#allocation2 + $0x19] sm:$0xff] %vm1813_vm13, %v2055_v2  ;;  %v5699_v25 = vld [vmem:[#allocation16 + $0x20] sm:$0xff]  }
 0x551   : > { %2134 = vst.msk [vmem:[#allocation2 + $0x21] sm:$0xff] %vm1813_vm13, %v2056_v43  ;;  %2135 = vst.msk [vmem:[#allocation2 + $0x31] sm:$0xff] %vm1813_vm13, %v2057_v63  ;;  %v2067_v55 = vmul.f32 %v2054_v38, %v1793_v31  ;;  %v2068_v53 = vmul.f32 %v2054_v38, %v9702_v37  ;;  %v9703_v52 = vmax.f32 %v7481_v39, 0.0  ;;  %v9704_v56 = vmax.f32 %v7489_v1, 0.0  ;;  %5174 = vmatpush3.bf16.msra.mxu1 %v5699_v25 }
 0x552   : > { %2136 = vst.msk [vmem:[#allocation2 + $0x39] sm:$0xff] %vm1813_vm13, %v2058_v10  ;;  %2137 = vst.msk [vmem:[#allocation2 + $0x49] sm:$0xff] %vm1813_vm13, %v2059_v60  ;;  %v9705_v47 = vmax.f32 %v7492_v15, 0.0  ;;  %v2072_v5 = vmul.f32 %v2054_v38, %v9706_v49  ;;  %v9707_v6 = vmax.f32 %v7511_v59, 0.0  ;;  %v9708_v14 = vmax.f32 %v7519_v19, 0.0  ;;  %v5702_v19 = vld [vmem:[#allocation16 + $0x68] sm:$0xff]  }
 0x553   : > { %v2069_v35 = vmul.f32 %v2054_v38, %v9703_v52  ;;  %v2070_v16 = vmul.f32 %v2054_v38, %v9704_v56  ;;  %2138 = vst.msk [vmem:[#allocation2 + $0x51] sm:$0xff] %vm1813_vm13, %v2060_v18  ;;  %2139 = vst.msk [vmem:[#allocation2 + $0x61] sm:$0xff] %vm1813_vm13, %v2061_v57  ;;  %v9709_v41 = vmax.f32 %v7522_v24, 0.0  ;;  %v2076_v39 = vmul.f32 %v2054_v38, %v9710_v32 }
 0x554   : > { %2140 = vst.msk [vmem:[#allocation2 + $0x69] sm:$0xff] %vm1813_vm13, %v2062_v23  ;;  %v2071_v48 = vmul.f32 %v2054_v38, %v9705_v47  ;;  %v2073_v4 = vmul.f32 %v2054_v38, %v9707_v6  ;;  %v2074_v8 = vmul.f32 %v2054_v38, %v9708_v14  ;;  %2141 = vst.msk [vmem:[#allocation2 + $0x79] sm:$0xff] %vm1813_vm13, %v2063_v13  ;;  %v9711_v1 = vmax.f32 %v7540_v40, 0.0 }
 0x555   : > { %2142 = vst.msk [vmem:[#allocation2 + $0x81] sm:$0xff] %vm1813_vm13, %v2064_v29  ;;  %2143 = vst.msk [vmem:[#allocation2 + $0x91] sm:$0xff] %vm1813_vm13, %v2065_v58  ;;  %v2075_v31 = vmul.f32 %v2054_v38, %v9709_v41  ;;  %v2078_v59 = vmul.f32 %v2054_v38, %v9712_v0  ;;  %v9713_v24 = vmax.f32 %v7550_v21, 0.0  ;;  %v2080_v36 = vmul.f32 %v2054_v38, %v9714_v54 }
 0x556   : > { %2144 = vst.msk [vmem:[#allocation2 + $0x99] sm:$0xff] %vm1813_vm13, %v2066_v11  ;;  %v2077_v15 = vmul.f32 %v2054_v38, %v9711_v1  ;;  %2145 = vst.msk [vmem:[#allocation2 + $0xa9] sm:$0xff] %vm1813_vm13, %v2067_v55  ;;  %v9715_v40 = vmax.f32 %v7568_v33, 0.0  ;;  %v2082_v20 = vmul.f32 %v2054_v38, %v9716_v45  ;;  %v9717_v21 = vmax.f32 %v7585_v61, 0.0  ;;  %5175 = vmatprep.subr.bf16.mxu1 %v5702_v19  ;;  %v5704_v61 = vld [vmem:[#allocation16 + $0xf8] sm:$0xff]  }
 0x557   : > { %2146 = vst.msk [vmem:[#allocation2 + $0xb1] sm:$0xff] %vm1813_vm13, %v2068_v53  ;;  %2147 = vst.msk [vmem:[#allocation2 + $0xc1] sm:$0xff] %vm1813_vm13, %v2069_v35  ;;  %v2079_v9 = vmul.f32 %v2054_v38, %v9713_v24  ;;  %v2084_v51 = vmul.f32 %v2054_v38, %v1810_v46  ;;  %v9718_v33 = vmax.f32 %v7582_v34, 0.0  ;;  %v2086_v2 = vmul.f32 %v2054_v38, %v9719_v17  ;;  %v5703_v34 = vld [vmem:[#allocation16 + $0x28] sm:$0xff]  }
 0x558   : > { %2148 = vst.msk [vmem:[#allocation2 + $0xc9] sm:$0xff] %vm1813_vm13, %v2070_v16  ;;  %v2081_v12 = vmul.f32 %v2054_v38, %v9715_v40  ;;  %2149 = vst.msk [vmem:[#allocation2 + $0xd9] sm:$0xff] %vm1813_vm13, %v2071_v48  ;;  %v2083_v30 = vmul.f32 %v2054_v38, %v9717_v21  ;;  %v2511_v46 = vrot.slane %v7697_v7, 2  ;;  %v2411_v10 = vpack.c.bf16 %v7706_v62, %v7703_v22  ;;  %v7811_v29 = vld [vmem:[#allocation2 + $0x18] sm:$0xff]  ;;  %v7813_v58 = vld [vmem:[#allocation2 + $0x20] sm:$0xff] }
 0x559   : > { %2150 = vst.msk [vmem:[#allocation2 + $0xe1] sm:$0xff] %vm1813_vm13, %v2072_v5  ;;  %2151 = vst.msk [vmem:[#allocation2 + $0xf1] sm:$0xff] %vm1813_vm13, %v2073_v4  ;;  %v2085_v3 = vmul.f32 %v2054_v38, %v9718_v33  ;;  %v2171_v38 = vld [vmem:[#allocation2 + $0x30] sm:$0xff]  ;;  %v2172_v43 = vld [vmem:[#allocation2 + $0x38] sm:$0xff]  ;;  %v2508_v60 = vrot.slane %v7693_v50, 2  ;;  %v2509_v18 = vrot.slane %v7695_v42, 2  ;;  %5176 = vmatpush3.bf16.msra.mxu1 %v5703_v34  ;;  %5291 = vmatprep.subr.bf16.mxu0 %v5704_v61 }
 0x55a   : > { %2152 = vst.msk [vmem:[#allocation2 + $0xf9] sm:$0xff] %vm1813_vm13, %v2074_v8  ;;  %2153 = vst.msk [vmem:[#allocation2 + $0x109] sm:$0xff] %vm1813_vm13, %v2075_v31  ;;  %v2173_v63 = vld [vmem:[#allocation2 + $0x40] sm:$0x3]  ;;  %v2309_v57 = vrot.slane %v2171_v38, 1  ;;  %v2310_v23 = vrot.slane %v2172_v43, 1  ;;  %v7817_v55 = vpack.c.bf16 %v2172_v43, %v2171_v38  ;;  %v2220_v16 = vpack.c.bf16 %v7813_v58, %v7811_v29  ;;  %5292 = vmatpush3.bf16.msra.mxu0 %v5705_v28 }
 0x55b   : > { %2154 = vst.msk [vmem:[#allocation2 + $0x111] sm:$0xff] %vm1813_vm13, %v2076_v39  ;;  %2155 = vst.msk [vmem:[#allocation2 + $0x121] sm:$0xff] %vm1813_vm13, %v2077_v15  ;;  %v2312_v13 = vrot.slane %v2173_v63, 1  ;;  %v7815_v11 = vld [vmem:[#allocation2 + $0x48] sm:$0xff]  ;;  %v2513_v53 = vrot.slane %v7811_v29, 2  ;;  %v2514_v52 = vrot.slane %v7813_v58, 2 }
 0x55c   : > { %2156 = vst.msk [vmem:[#allocation2 + $0x129] sm:$0xff] %vm1813_vm13, %v2078_v59  ;;  %2157 = vst.msk [vmem:[#allocation2 + $0x139] sm:$0xff] %vm1813_vm13, %v2079_v9  ;;  %v2170_v37 = vld [vmem:[#allocation2 + $0x28] sm:$0x3]  ;;  %v7822_v35 = vld [vmem:[#allocation2 + $0x50] sm:$0xff]  ;;  %v2314_v56 = vrot.slane %v7815_v11, 1  ;;  %v2311_v47 = vsel %vm653_vm1, %v2309_v57, %v2310_v23 }
 0x55d   : > { %2158 = vst.msk [vmem:[#allocation2 + $0x141] sm:$0xff] %vm1813_vm13, %v2080_v36  ;;  %2159 = vst.msk [vmem:[#allocation2 + $0x151] sm:$0xff] %vm1813_vm13, %v2081_v12  ;;  %v2313_v48 = vsel %vm653_vm1, %v2310_v23, %v2312_v13  ;;  %v2516_v49 = vrot.slane %v2170_v37, 2  ;;  %v2176_v5 = vld [vmem:[#allocation2 + $0x58] sm:$0x3]  ;;  %v2315_v6 = vrot.slane %v7822_v35, 1  ;;  %v2515_v25 = vsel %vm863_vm2, %v2513_v53, %v2514_v52 }
 0x55e   : > { %2160 = vst.msk [vmem:[#allocation2 + $0x159] sm:$0xff] %vm1813_vm13, %v2082_v20  ;;  %2161 = vst.msk [vmem:[#allocation2 + $0x169] sm:$0xff] %vm1813_vm13, %v2083_v30  ;;  %v7830_v4 = vld [vmem:[#allocation2 + $0x60] sm:$0xff]  ;;  %v7832_v14 = vld [vmem:[#allocation2 + $0x68] sm:$0xff]  ;;  %v2413_v8 = vpack.c.bf16 %v2313_v48, %v2311_v47  ;;  %v2317_v26 = vrot.slane %v2176_v5, 1  ;;  %v2518_v27 = vrot.slane %v2171_v38, 2 }
 0x55f   : > { %2162 = vst.msk [vmem:[#allocation2 + $0x171] sm:$0xff] %vm1813_vm13, %v2084_v51  ;;  %2163 = vst.msk [vmem:[#allocation2 + $0x181] sm:$0xff] %vm1813_vm13, %v2085_v3  ;;  %v7840_v41 = vld [vmem:[#allocation2 + $0x70] sm:$0x3]  ;;  %v2517_v31 = vsel %vm863_vm2, %v2514_v52, %v2516_v49  ;;  %v2316_v32 = vsel %vm653_vm1, %v2314_v56, %v2315_v6  ;;  %v2519_v39 = vrot.slane %v2172_v43, 2  ;;  %v2521_v1 = vrot.slane %v2173_v63, 2 }
 0x560   : > { %2164 = vst.msk [vmem:[#allocation2 + $0x189] sm:$0xff] %vm1813_vm13, %v2086_v2  ;;  %2237 = vst.msk [vmem:[#allocation4 + $0x50] sm:$0xff] %vm1813_vm13, %v7817_v55  ;;  %2447 = vrot.lane.b32.xlu0 %v2413_v8, %s6250_s30  ;;  %v2621_v15 = vpack.c.bf16 %v2517_v31, %v2515_v25  ;;  %v2318_v0 = vsel %vm653_vm1, %v2315_v6, %v2317_v26  ;;  %v2319_v59 = vrot.slane %v7830_v4, 1  ;;  %v2320_v19 = vrot.slane %v7832_v14, 1  ;;  %v7852_v40 = vld [vmem:[#allocation2 + $0x78] sm:$0xff]  ;;  %v7859_v30 = vld [vmem:[#allocation2 + $0x80] sm:$0xff] }
 0x561   : > { %2849 = vst.msk [vmem:[#allocation4 + $0x18] sm:$0xff] %vm1813_vm13, %v7817_v55  ;;  %2236 = vst.msk [vmem:[#allocation4 + $0x28] sm:$0xff] %vm1813_vm13, %v2220_v16  ;;  %v2414_v24 = vpack.c.bf16 %v2318_v0, %v2316_v32  ;;  %v2520_v9 = vsel %vm863_vm2, %v2518_v27, %v2519_v39  ;;  %v2522_v54 = vsel %vm863_vm2, %v2519_v39, %v2521_v1  ;;  %v2322_v36 = vrot.slane %v7840_v41, 1  ;;  %v7861_v51 = vld [vmem:[#allocation2 + $0x88] sm:$0x3]  ;;  %v7876_v23 = vld [vmem:[#allocation2 + $0x90] sm:$0xff] }
 0x562   : > { %2745 = vst.msk [vmem:[#allocation4 + $0x38] sm:$0xff] %vm1813_vm13, %v2413_v8  ;;  %2784 = vrot.lane.b32.xlu1 %v2621_v15, %s6250_s30  ;;  %2637 = vst.msk [vmem:[#allocation4 + $0x30] sm:$0xff] %vm1813_vm13, %v2621_v15  ;;  %v2622_v12 = vpack.c.bf16 %v2522_v54, %v2520_v9  ;;  %v2321_v45 = vsel %vm653_vm1, %v2319_v59, %v2320_v19  ;;  %v2304_v20 = vrot.slane %v7811_v29, 1  ;;  %v2305_v21 = vrot.slane %v7813_v58, 1  ;;  %v7878_v13 = vld [vmem:[#allocation2 + $0x98] sm:$0xff]  ;;  %v7912_v6 = vld [vmem:[#allocation2 + $0xa8] sm:$0xff] }
 0x563   : > { %2746 = vst.msk [vmem:[#allocation4 + $0x60] sm:$0xff] %vm1813_vm13, %v2414_v24  ;;  %v2323_v33 = vsel %vm653_vm1, %v2320_v19, %v2322_v36  ;;  %v2307_v3 = vrot.slane %v2170_v37, 1  ;;  %v2523_v17 = vrot.slane %v7815_v11, 2  ;;  %v2524_v2 = vrot.slane %v7822_v35, 2  ;;  %v7890_v52 = vld [vmem:[#allocation2 + $0xa0] sm:$0x3] }
 0x564   : > { %2449 = vrot.lane.b32.xlu0 %v2414_v24, %s6250_s30  ;;  %2908 = vst.msk [vmem:[#allocation4 + $0x20] sm:$0xff] %vm1813_vm13, %v2622_v12  ;;  %2638 = vst.msk [vmem:[#allocation4 + $0x58] sm:$0xff] %vm1813_vm13, %v2622_v12  ;;  %v2415_v34 = vpack.c.bf16 %v2323_v33, %v2321_v45  ;;  %v2306_v61 = vsel %vm653_vm1, %v2304_v20, %v2305_v21  ;;  %v2526_v28 = vrot.slane %v2176_v5, 2  ;;  %v2324_v44 = vrot.slane %v7852_v40, 1  ;;  %v7914_v22 = vld [vmem:[#allocation2 + $0xb0] sm:$0xff]  ;;  %v7936_v39 = vld [vmem:[#allocation2 + $0xc0] sm:$0xff] }
 0x565   : > { %v2308_v38 = vsel %vm653_vm1, %v2305_v21, %v2307_v3  ;;  %v2525_v43 = vsel %vm863_vm2, %v2523_v17, %v2524_v2  ;;  %v2325_v63 = vrot.slane %v7859_v30, 1  ;;  %v2327_v57 = vrot.slane %v7861_v51, 1  ;;  %v7927_v26 = vld [vmem:[#allocation2 + $0xb8] sm:$0x3]  ;;  %v5706_v0 = vld [vmem:[#allocation16 + $0x70] sm:$0xff]   ;;  %v5708_v19 = vld [vmem:[#allocation16 + $0x78] sm:$0xff]  }
 0x566   : > { %2669 = vrot.lane.b32.xlu1 %v2220_v16, %s6250_s30  ;;  %2747 = vst.msk [vmem:[#allocation4 + $0x88] sm:$0xff] %vm1813_vm13, %v2415_v34  ;;  %v7882_v29 = vpack.c.bf16 %v2308_v38, %v2306_v61  ;;  %v2527_v58 = vsel %vm863_vm2, %v2524_v2, %v2526_v28  ;;  %v7887_v37 = vpack.c.bf16 %v7822_v35, %v7815_v11  ;;  %v2528_v53 = vrot.slane %v7830_v4, 2  ;;  %v5707_v59 = vld [vmem:[#allocation16 + $0x30] sm:$0xff]   ;;  %v7955_v45 = vld [vmem:[#allocation2 + $0xd0] sm:$0x3] }
 0x567   : > { %v7892_v56 = vpack.c.bf16 %v2527_v58, %v2525_v43  ;;  %v2326_v47 = vsel %vm653_vm1, %v2324_v44, %v2325_v63  ;;  %v2328_v16 = vsel %vm653_vm1, %v2325_v63, %v2327_v57  ;;  %v2529_v48 = vrot.slane %v7832_v14, 2  ;;  %v7957_v20 = vld [vmem:[#allocation16 + $0x100] sm:$0xff]   ;;  %5177 = vmatprep.subr.bf16.mxu1 %v5706_v0  ;;  %v7995_v38 = vld [vmem:[#allocation2 + $0xd8] sm:$0xff]  ;;  %v7997_v43 = vld [vmem:[#allocation2 + $0xe0] sm:$0xff] }
 0x568   : > { %2443 = vrot.lane.b32.xlu0 %v2411_v10, %s6250_s30  ;;  %2744 = vst.msk [vmem:[#allocation4 + $0x10] sm:$0xff] %vm1813_vm13, %v7882_v29  ;;  %v7903_v11 = vpack.c.bf16 %v2328_v16, %v2326_v47  ;;  %2238 = vst.msk [vmem:[#allocation4 + $0x78] sm:$0xff] %vm1813_vm13, %v7887_v37  ;;  %v2531_v35 = vrot.slane %v7840_v41, 2  ;;  %v2329_v49 = vrot.slane %v7876_v23, 1  ;;  %v2330_v5 = vrot.slane %v7878_v13, 1  ;;  %5178 = vmatpush3.bf16.msra.mxu1 %v5707_v59  ;;  %v5848_v42 = vld [vmem:[#allocation2 + $0x198] sm:$0xff] }
 0x569   : > { %2850 = vst.msk [vmem:[#allocation4 + $0x40] sm:$0xff] %vm1813_vm13, %v7887_v37  ;;  %2909 = vst.msk [vmem:[#allocation4 + $0x48] sm:$0xff] %vm1813_vm13, %v7892_v56  ;;  %v2530_v62 = vsel %vm863_vm2, %v2528_v53, %v2529_v48  ;;  %v2332_v10 = vrot.slane %v7890_v52, 1  ;;  %v7924_v8 = vpack.c.bf16 %v7832_v14, %v7830_v4  ;;  %v2533_v25 = vrot.slane %v7852_v40, 2  ;;  %5179 = vmatprep.subr.bf16.mxu1 %v5708_v19  ;;  %v5849_v7 = vld [vmem:[#allocation2 + $0x1a0] sm:$0xff] }
 0x56a   : > { %2639 = vst.msk [vmem:[#allocation4 + $0x80] sm:$0xff] %vm1813_vm13, %v7892_v56  ;;  %2786 = vrot.lane.b32.xlu1 %v2622_v12, %s6250_s30  ;;  %2748 = vst.msk [vmem:[#allocation4 + $0xb0] sm:$0xff] %vm1813_vm13, %v7903_v11  ;;  %v2532_v27 = vsel %vm863_vm2, %v2529_v48, %v2531_v35  ;;  %v2331_v41 = vsel %vm653_vm1, %v2329_v49, %v2330_v5  ;;  %v2534_v31 = vrot.slane %v7859_v30, 2  ;;  %v2536_v32 = vrot.slane %v7861_v51, 2  ;;  %v7953_v12 = vld [vmem:[#allocation2 + $0xc8] sm:$0xff] }
 0x56b   : > { %v7938_v4 = vpack.c.bf16 %v2532_v27, %v2530_v62  ;;  %v2333_v14 = vsel %vm653_vm1, %v2330_v5, %v2332_v10  ;;  %2239 = vst.msk [vmem:[#allocation4 + $0xa0] sm:$0xff] %vm1813_vm13, %v7924_v8  ;;  %2851 = vst.msk [vmem:[#allocation4 + $0x68] sm:$0xff] %vm1813_vm13, %v7924_v8  ;;  %v2334_v1 = vrot.slane %v7912_v6, 1  ;;  %v2335_v15 = vrot.slane %v7914_v22, 1  ;;  %5471 = vmatprep.subr.bf16.mxu0 %v7957_v20  ;;  %v8026_v5 = vld [vmem:[#allocation2 + $0xf0] sm:$0xff]  ;;  %v8028_v62 = vld [vmem:[#allocation2 + $0xf8] sm:$0xff] }
 0x56c   : > { %2451 = vrot.lane.b32.xlu0 %v2415_v34, %s6250_s30  ;;  %v7948_v24 = vpack.c.bf16 %v2333_v14, %v2331_v41  ;;  %v2535_v9 = vsel %vm863_vm2, %v2533_v25, %v2534_v31  ;;  %v2537_v54 = vsel %vm863_vm2, %v2534_v31, %v2536_v32  ;;  %v2337_v36 = vrot.slane %v7927_v26, 1  ;;  %v8030_v10 = vld [vmem:[#allocation2 + $0x100] sm:$0x3] }
 0x56d   : > { %2910 = vst.msk [vmem:[#allocation4 + $0x70] sm:$0xff] %vm1813_vm13, %v7938_v4  ;;  %2640 = vst.msk [vmem:[#allocation4 + $0xa8] sm:$0xff] %vm1813_vm13, %v7938_v4  ;;  %v7963_v21 = vpack.c.bf16 %v2537_v54, %v2535_v9  ;;  %v2336_v51 = vsel %vm653_vm1, %v2334_v1, %v2335_v15  ;;  %v7968_v33 = vpack.c.bf16 %v7859_v30, %v7852_v40  ;;  %v2538_v3 = vrot.slane %v7876_v23, 2  ;;  %v5709_v40 = vld [vmem:[#allocation16 + $0x38] sm:$0xff]   ;;  %v8077_v54 = vld [vmem:[#allocation2 + $0x110] sm:$0xff] }
 0x56e   : > { %2671 = vrot.lane.b32.xlu1 %v7817_v55, %s6250_s30  ;;  %2749 = vst.msk [vmem:[#allocation4 + $0xd8] sm:$0xff] %vm1813_vm13, %v7948_v24  ;;  %v2338_v17 = vsel %vm653_vm1, %v2335_v15, %v2337_v36  ;;  %v2539_v2 = vrot.slane %v7878_v13, 2  ;;  %v2541_v34 = vrot.slane %v7890_v52, 2  ;;  %v2339_v61 = vrot.slane %v7936_v39, 1  ;;  %5180 = vmatpush3.bf16.msra.mxu1 %v5709_v40  ;;  %v8061_v15 = vld [vmem:[#allocation2 + $0x108] sm:$0xff] }
 0x56f   : > { %2911 = vst.msk [vmem:[#allocation4 + $0x98] sm:$0xff] %vm1813_vm13, %v7963_v21  ;;  %2641 = vst.msk [vmem:[#allocation4 + $0xd0] sm:$0xff] %vm1813_vm13, %v7963_v21  ;;  %v7983_v55 = vpack.c.bf16 %v2338_v17, %v2336_v51  ;;  %v2340_v30 = vrot.slane %v7953_v12, 1  ;;  %v2342_v28 = vrot.slane %v7955_v45, 1  ;;  %v7993_v44 = vpack.c.bf16 %v7878_v13, %v7876_v23  ;;  %v8006_v23 = vld [vmem:[#allocation2 + $0xe8] sm:$0x3]  ;;  %5523 = vmatprep.subr.bf16.mxu1 %v7957_v20 }
 0x570   : > { %2240 = vst.msk [vmem:[#allocation4 + $0xc8] sm:$0xff] %vm1813_vm13, %v7968_v33  ;;  %2852 = vst.msk [vmem:[#allocation4 + $0x90] sm:$0xff] %vm1813_vm13, %v7968_v33  ;;  %2445 = vrot.lane.b32.xlu0 %v7882_v29, %s6250_s30  ;;  %v2540_v63 = vsel %vm863_vm2, %v2538_v3, %v2539_v2  ;;  %v2542_v57 = vsel %vm863_vm2, %v2539_v2, %v2541_v34  ;;  %v2543_v58 = vrot.slane %v7912_v6, 2  ;;  %v2544_v53 = vrot.slane %v7914_v22, 2  ;;  %v8079_v36 = vld [vmem:[#allocation2 + $0x118] sm:$0x3] }
 0x571   : > { %2750 = vst.msk [vmem:[#allocation4 + $0x100] sm:$0xff] %vm1813_vm13, %v7983_v55  ;;  %v8010_v13 = vpack.c.bf16 %v2542_v57, %v2540_v63  ;;  %v2341_v52 = vsel %vm653_vm1, %v2339_v61, %v2340_v30  ;;  %v2343_v47 = vsel %vm653_vm1, %v2340_v30, %v2342_v28  ;;  %2241 = vst.msk [vmem:[#allocation4 + $0xf0] sm:$0xff] %vm1813_vm13, %v7993_v44  ;;  %v2546_v29 = vrot.slane %v7927_v26, 2  ;;  %v8099_v34 = vld [vmem:[#allocation2 + $0x120] sm:$0xff]  ;;  %v8112_v28 = vld [vmem:[#allocation2 + $0x128] sm:$0xff] }
 0x572   : > { %2853 = vst.msk [vmem:[#allocation4 + $0xb8] sm:$0xff] %vm1813_vm13, %v7993_v44  ;;  %2788 = vrot.lane.b32.xlu1 %v7892_v56, %s6250_s30  ;;  %v8021_v16 = vpack.c.bf16 %v2343_v47, %v2341_v52  ;;  %v2545_v48 = vsel %vm863_vm2, %v2543_v58, %v2544_v53  ;;  %v2344_v35 = vrot.slane %v7995_v38, 1  ;;  %v2345_v49 = vrot.slane %v7997_v43, 1  ;;  %v8133_v47 = vld [vmem:[#allocation2 + $0x138] sm:$0xff] }
 0x573   : > { %2912 = vst.msk [vmem:[#allocation4 + $0xc0] sm:$0xff] %vm1813_vm13, %v8010_v13  ;;  %2642 = vst.msk [vmem:[#allocation4 + $0xf8] sm:$0xff] %vm1813_vm13, %v8010_v13  ;;  %v2547_v56 = vsel %vm863_vm2, %v2544_v53, %v2546_v29  ;;  %v2347_v25 = vrot.slane %v8006_v23, 1  ;;  %v8040_v26 = vpack.c.bf16 %v7914_v22, %v7912_v6  ;;  %v2548_v27 = vrot.slane %v7936_v39, 2 }
 0x574   : > { %2453 = vrot.lane.b32.xlu0 %v7903_v11, %s6250_s30  ;;  %2751 = vst.msk [vmem:[#allocation4 + $0x128] sm:$0xff] %vm1813_vm13, %v8021_v16  ;;  %v8048_v41 = vpack.c.bf16 %v2547_v56, %v2545_v48  ;;  %v2346_v31 = vsel %vm653_vm1, %v2344_v35, %v2345_v49  ;;  %v2549_v32 = vrot.slane %v7953_v12, 2  ;;  %v2551_v14 = vrot.slane %v7955_v45, 2  ;;  %v8144_v56 = vld [vmem:[#allocation2 + $0x148] sm:$0x3] }
 0x575   : > { %v2348_v6 = vsel %vm653_vm1, %v2345_v49, %v2347_v25  ;;  %2242 = vst.msk [vmem:[#allocation4 + $0x118] sm:$0xff] %vm1813_vm13, %v8040_v26  ;;  %2854 = vst.msk [vmem:[#allocation4 + $0xe0] sm:$0xff] %vm1813_vm13, %v8040_v26  ;;  %v2349_v11 = vrot.slane %v8026_v5, 1  ;;  %v2350_v22 = vrot.slane %v8028_v62, 1  ;;  %v2352_v1 = vrot.slane %v8030_v10, 1 }
 0x576   : > { %2673 = vrot.lane.b32.xlu1 %v7887_v37, %s6250_s30  ;;  %2913 = vst.msk [vmem:[#allocation4 + $0xe8] sm:$0xff] %vm1813_vm13, %v8048_v41  ;;  %2643 = vst.msk [vmem:[#allocation4 + $0x120] sm:$0xff] %vm1813_vm13, %v8048_v41  ;;  %v8069_v0 = vpack.c.bf16 %v2348_v6, %v2346_v31  ;;  %v2550_v59 = vsel %vm863_vm2, %v2548_v27, %v2549_v32  ;;  %v2552_v19 = vsel %vm863_vm2, %v2549_v32, %v2551_v14 }
 0x577   : > { %v8075_v9 = vpack.c.bf16 %v7953_v12, %v7936_v39  ;;  %v8081_v37 = vpack.c.bf16 %v2552_v19, %v2550_v59  ;;  %v2351_v45 = vsel %vm653_vm1, %v2349_v11, %v2350_v22  ;;  %v2353_v51 = vsel %vm653_vm1, %v2350_v22, %v2352_v1  ;;  %v8181_v1 = vld [vmem:[#allocation2 + $0x150] sm:$0xff]  ;;  %v8183_v59 = vld [vmem:[#allocation2 + $0x158] sm:$0xff] }
 0x578   : > { %v2553_v3 = vrot.slane %v7995_v38, 2  ;;  %2790 = vrot.lane.b32.xlu0 %v7938_v4, %s6250_s30  ;;  %2752 = vst.msk [vmem:[#allocation4 + $0x150] sm:$0xff] %vm1813_vm13, %v8069_v0  ;;  %v8090_v39 = vpack.c.bf16 %v2353_v51, %v2351_v45  ;;  %v2554_v12 = vrot.slane %v7997_v43, 2  ;;  %v2556_v17 = vrot.slane %v8006_v23, 2 }
 0x579   : > { %2243 = vst.msk [vmem:[#allocation4 + $0x140] sm:$0xff] %vm1813_vm13, %v8075_v9  ;;  %2855 = vst.msk [vmem:[#allocation4 + $0x108] sm:$0xff] %vm1813_vm13, %v8075_v9  ;;  %v2354_v2 = vrot.slane %v8061_v15, 1  ;;  %v2355_v4 = vrot.slane %v8077_v54, 1  ;;  %v2357_v61 = vrot.slane %v8079_v36, 1  ;;  %v8109_v40 = vpack.c.bf16 %v7997_v43, %v7995_v38 }
 0x57a   : > { %2914 = vst.msk [vmem:[#allocation4 + $0x110] sm:$0xff] %vm1813_vm13, %v8081_v37  ;;  %2644 = vst.msk [vmem:[#allocation4 + $0x148] sm:$0xff] %vm1813_vm13, %v8081_v37  ;;  %v2558_v30 = vrot.slane %v8026_v5, 2  ;;  %2455 = vrot.lane.b32.xlu1 %v7948_v24, %s6250_s30  ;;  %v2555_v63 = vsel %vm863_vm2, %v2553_v3, %v2554_v12  ;;  %v2557_v57 = vsel %vm863_vm2, %v2554_v12, %v2556_v17  ;;  %v2559_v58 = vrot.slane %v8028_v62, 2  ;;  %v8122_v38 = vld [vmem:[#allocation2 + $0x130] sm:$0x3] }
 0x57b   : > { %2753 = vst.msk [vmem:[#allocation4 + $0x178] sm:$0xff] %vm1813_vm13, %v8090_v39  ;;  %v2561_v53 = vrot.slane %v8030_v10, 2  ;;  %v8124_v43 = vpack.c.bf16 %v2557_v57, %v2555_v63  ;;  %v2356_v23 = vsel %vm653_vm1, %v2354_v2, %v2355_v4  ;;  %v2358_v52 = vsel %vm653_vm1, %v2355_v4, %v2357_v61  ;;  %2244 = vst.msk [vmem:[#allocation4 + $0x168] sm:$0xff] %vm1813_vm13, %v8109_v40  ;;  %v8142_v10 = vld [vmem:[#allocation2 + $0x140] sm:$0xff]  ;;  %v8214_v63 = vld [vmem:[#allocation2 + $0x170] sm:$0xff] }
 0x57c   : > { %2856 = vst.msk [vmem:[#allocation4 + $0x130] sm:$0xff] %vm1813_vm13, %v8109_v40  ;;  %v2359_v24 = vrot.slane %v8099_v34, 1  ;;  %2675 = vrot.lane.b32.xlu0 %v7924_v8, %s6250_s30  ;;  %v8137_v29 = vpack.c.bf16 %v2358_v52, %v2356_v23  ;;  %v2560_v48 = vsel %vm863_vm2, %v2558_v30, %v2559_v58  ;;  %v2360_v49 = vrot.slane %v8112_v28, 1  ;;  %v8192_v3 = vld [vmem:[#allocation2 + $0x160] sm:$0x3]  ;;  %v8212_v30 = vld [vmem:[#allocation2 + $0x168] sm:$0xff] }
 0x57d   : > { %v2562_v35 = vsel %vm863_vm2, %v2559_v58, %v2561_v53  ;;  %2915 = vst.msk [vmem:[#allocation4 + $0x138] sm:$0xff] %vm1813_vm13, %v8124_v43  ;;  %2645 = vst.msk [vmem:[#allocation4 + $0x170] sm:$0xff] %vm1813_vm13, %v8124_v43  ;;  %v2362_v8 = vrot.slane %v8122_v38, 1  ;;  %v8155_v27 = vpack.c.bf16 %v8028_v62, %v8026_v5  ;;  %v2563_v31 = vrot.slane %v8061_v15, 2 }
 0x57e   : > { %v8150_v25 = vpack.c.bf16 %v2562_v35, %v2560_v48  ;;  %2792 = vrot.lane.b32.xlu1 %v7963_v21, %s6250_s30  ;;  %2754 = vst.msk [vmem:[#allocation4 + $0x1a0] sm:$0xff] %vm1813_vm13, %v8137_v29  ;;  %v2361_v32 = vsel %vm653_vm1, %v2359_v24, %v2360_v49  ;;  %v2564_v14 = vrot.slane %v8077_v54, 2  ;;  %v2566_v6 = vrot.slane %v8079_v36, 2 }
 0x57f   : > { %v2364_v11 = vrot.slane %v8133_v47, 1  ;;  %v2363_v5 = vsel %vm653_vm1, %v2360_v49, %v2362_v8  ;;  %2245 = vst.msk [vmem:[#allocation4 + $0x190] sm:$0xff] %vm1813_vm13, %v8155_v27  ;;  %2857 = vst.msk [vmem:[#allocation4 + $0x158] sm:$0xff] %vm1813_vm13, %v8155_v27  ;;  %v2365_v21 = vrot.slane %v8142_v10, 1  ;;  %v2367_v62 = vrot.slane %v8144_v56, 1 }
 0x580   : > { %2916 = vst.msk [vmem:[#allocation4 + $0x160] sm:$0xff] %vm1813_vm13, %v8150_v25  ;;  %2646 = vst.msk [vmem:[#allocation4 + $0x198] sm:$0xff] %vm1813_vm13, %v8150_v25  ;;  %v8179_v22 = vpack.c.bf16 %v8077_v54, %v8061_v15  ;;  %2457 = vrot.lane.b32.xlu0 %v7983_v55, %s6250_s30  ;;  %v8187_v19 = vpack.c.bf16 %v2363_v5, %v2361_v32  ;;  %v2565_v36 = vsel %vm863_vm2, %v2563_v31, %v2564_v14  ;;  %v2213_v32 = vld [vmem:[#allocation2 + $0x180] sm:$0xff] }
 0x581   : > { %v2567_v45 = vsel %vm863_vm2, %v2564_v14, %v2566_v6  ;;  %v2568_v51 = vrot.slane %v8099_v34, 2  ;;  %v2366_v15 = vsel %vm653_vm1, %v2364_v11, %v2365_v21  ;;  %v2368_v54 = vsel %vm653_vm1, %v2365_v21, %v2367_v62  ;;  %v2214_v14 = vld [vmem:[#allocation2 + $0x188] sm:$0xff]  ;;  %v2215_v6 = vld [vmem:[#allocation2 + $0x190] sm:$0x3] }
 0x582   : > { %v8194_v12 = vpack.c.bf16 %v2567_v45, %v2565_v36  ;;  %2246 = vst.msk [vmem:[#allocation4 + $0x1b8] sm:$0xff] %vm1813_vm13, %v8179_v22  ;;  %2858 = vst.msk [vmem:[#allocation4 + $0x180] sm:$0xff] %vm1813_vm13, %v8179_v22  ;;  %v2569_v55 = vrot.slane %v8112_v28, 2  ;;  %2677 = vrot.lane.b32.xlu1 %v7968_v33, %s6250_s30  ;;  %v8207_v17 = vpack.c.bf16 %v2368_v54, %v2366_v15  ;;  %v2571_v2 = vrot.slane %v8122_v38, 2  ;;  %v2212_v38 = vld [vmem:[#allocation2 + $0x178] sm:$0x3] }
 0x583   : > { %2755 = vst.msk [vmem:[#allocation4 + $0x1c8] sm:$0xff] %vm1813_vm13, %v8187_v19  ;;  %v2369_v4 = vrot.slane %v8181_v1, 1  ;;  %v2370_v61 = vrot.slane %v8183_v59, 1  ;;  %v2372_v57 = vrot.slane %v8192_v3, 1  ;;  %v8224_v58 = vpack.c.bf16 %v8112_v28, %v8099_v34 }
 0x584   : > { %2917 = vst.msk [vmem:[#allocation4 + $0x188] sm:$0xff] %vm1813_vm13, %v8194_v12  ;;  %2647 = vst.msk [vmem:[#allocation4 + $0x1c0] sm:$0xff] %vm1813_vm13, %v8194_v12  ;;  %v2570_v33 = vsel %vm863_vm2, %v2568_v51, %v2569_v55  ;;  %v2573_v53 = vrot.slane %v8133_v47, 2  ;;  %2794 = vrot.lane.b32.xlu0 %v8010_v13, %s6250_s30  ;;  %v2572_v23 = vsel %vm863_vm2, %v2569_v55, %v2571_v2  ;;  %v2574_v24 = vrot.slane %v8142_v10, 2 }
 0x585   : > { %2756 = vst.msk [vmem:[#allocation4 + $0x1f0] sm:$0xff] %vm1813_vm13, %v8207_v17  ;;  %v2371_v52 = vsel %vm653_vm1, %v2369_v4, %v2370_v61  ;;  %v2576_v48 = vrot.slane %v8144_v56, 2  ;;  %v8235_v35 = vpack.c.bf16 %v2572_v23, %v2570_v33  ;;  %v2373_v34 = vsel %vm653_vm1, %v2370_v61, %v2372_v57  ;;  %2247 = vst.msk [vmem:[#allocation4 + $0x1e0] sm:$0xff] %vm1813_vm13, %v8224_v58 }
 0x586   : > { %2859 = vst.msk [vmem:[#allocation4 + $0x1a8] sm:$0xff] %vm1813_vm13, %v8224_v58  ;;  %v2374_v13 = vrot.slane %v8212_v30, 1  ;;  %v2375_v28 = vrot.slane %v8214_v63, 1  ;;  %2459 = vrot.lane.b32.xlu1 %v8021_v16, %s6250_s30  ;;  %v8246_v49 = vpack.c.bf16 %v2373_v34, %v2371_v52  ;;  %v2575_v56 = vsel %vm863_vm2, %v2573_v53, %v2574_v24 }
 0x587   : > { %v2577_v8 = vsel %vm863_vm2, %v2574_v24, %v2576_v48  ;;  %v2377_v31 = vrot.slane %v2212_v38, 1  ;;  %2918 = vst.msk [vmem:[#allocation4 + $0x1b0] sm:$0xff] %vm1813_vm13, %v8235_v35  ;;  %2648 = vst.msk [vmem:[#allocation4 + $0x1e8] sm:$0xff] %vm1813_vm13, %v8235_v35  ;;  %v8259_v5 = vpack.c.bf16 %v8142_v10, %v8133_v47  ;;  %v2578_v21 = vrot.slane %v8181_v1, 2 }
 0x588   : > { %v8254_v11 = vpack.c.bf16 %v2577_v8, %v2575_v56  ;;  %v2376_v16 = vsel %vm653_vm1, %v2374_v13, %v2375_v28  ;;  %2679 = vrot.lane.b32.xlu0 %v7993_v44, %s6250_s30  ;;  %2757 = vst.msk [vmem:[#allocation4 + $0x218] sm:$0xff] %vm1813_vm13, %v8246_v49  ;;  %v2579_v36 = vrot.slane %v8183_v59, 2  ;;  %v2581_v45 = vrot.slane %v8192_v3, 2 }
 0x589   : > { %v2378_v62 = vsel %vm653_vm1, %v2375_v28, %v2377_v31  ;;  %v8271_v51 = vpack.c.bf16 %v8183_v59, %v8181_v1  ;;  %2248 = vst.msk [vmem:[#allocation4 + $0x208] sm:$0xff] %vm1813_vm13, %v8259_v5  ;;  %2860 = vst.msk [vmem:[#allocation4 + $0x1d0] sm:$0xff] %vm1813_vm13, %v8259_v5  ;;  %v2736_v47 = vrot.slane %v2213_v32, 1  ;;  %v2737_v10 = vrot.slane %v2214_v14, 1 }
 0x58a   : > { %2919 = vst.msk [vmem:[#allocation4 + $0x1d8] sm:$0xff] %vm1813_vm13, %v8254_v11  ;;  %2649 = vst.msk [vmem:[#allocation4 + $0x210] sm:$0xff] %vm1813_vm13, %v8254_v11  ;;  %v8277_v44 = vpack.c.bf16 %v2378_v62, %v2376_v16  ;;  %v2739_v3 = vrot.slane %v2215_v6, 1  ;;  %2796 = vrot.lane.b32.xlu1 %v8048_v41, %s6250_s30  ;;  %v2580_v1 = vsel %vm863_vm2, %v2578_v21, %v2579_v36  ;;  %v2583_v15 = vrot.slane %v8212_v30, 2 }
 0x58b   : > { %v2582_v59 = vsel %vm863_vm2, %v2579_v36, %v2581_v45  ;;  %2249 = vst.msk [vmem:[#allocation4 + $0x230] sm:$0xff] %vm1813_vm13, %v8271_v51  ;;  %2861 = vst.msk [vmem:[#allocation4 + $0x1f8] sm:$0xff] %vm1813_vm13, %v8271_v51  ;;  %v2584_v54 = vrot.slane %v8214_v63, 2  ;;  %v2738_v41 = vsel %vm653_vm1, %v2736_v47, %v2737_v10  ;;  %v2586_v4 = vrot.slane %v2212_v38, 2 }
 0x58c   : > { %2758 = vst.msk [vmem:[#allocation4 + $0x240] sm:$0xff] %vm1813_vm13, %v8277_v44  ;;  %v2634_v55 = vpack.c.bf16 %v2582_v59, %v2580_v1  ;;  %v2740_v2 = vsel %vm653_vm1, %v2737_v10, %v2739_v3  ;;  %2461 = vrot.lane.b32.xlu0 %v8069_v0, %s6250_s30  ;;  %v2234_v57 = vpack.c.bf16 %v8214_v63, %v8212_v30  ;;  %v2760_v53 = vrot.slane %v2213_v32, 2 }
 0x58d   : > { %v2743_v61 = vpack.c.bf16 %v2740_v2, %v2738_v41  ;;  %v2585_v33 = vsel %vm863_vm2, %v2583_v15, %v2584_v54  ;;  %v2587_v23 = vsel %vm863_vm2, %v2584_v54, %v2586_v4  ;;  %v2761_v52 = vrot.slane %v2214_v14, 2 }
 0x58e   : > { %2920 = vst.msk [vmem:[#allocation4 + $0x200] sm:$0xff] %vm1813_vm13, %v2634_v55  ;;  %2650 = vst.msk [vmem:[#allocation4 + $0x238] sm:$0xff] %vm1813_vm13, %v2634_v55  ;;  %v2763_v24 = vrot.slane %v2215_v6, 2  ;;  %v2652_v48 = vpack.c.bf16 %v2214_v14, %v2213_v32  ;;  %2681 = vrot.lane.b32.xlu1 %v8040_v26, %s6250_s30  ;;  %v2635_v0 = vpack.c.bf16 %v2587_v23, %v2585_v33  ;;  %v5713_v14 = vld [vmem:[#allocation16 + $0x118] sm:$0xff]  }
 0x58f   : > { %2759 = vst.msk [vmem:[#allocation4 + $0x268] sm:$0xff] %vm1813_vm13, %v2743_v61  ;;  %2250 = vst.msk [vmem:[#allocation4 + $0x258] sm:$0xff] %vm1813_vm13, %v2234_v57  ;;  %v2510_v30 = vsel %vm863_vm2, %v2508_v60, %v2509_v18  ;;  %v2512_v63 = vsel %vm863_vm2, %v2509_v18, %v2511_v46  ;;  %v2762_v26 = vsel %vm863_vm2, %v2760_v53, %v2761_v52  ;;  %v2868_v60 = vrot.slane %v5848_v42, 1 }
 0x590   : > { %2862 = vst.msk [vmem:[#allocation4 + $0x220] sm:$0xff] %vm1813_vm13, %v2234_v57  ;;  %v2764_v38 = vsel %vm863_vm2, %v2761_v52, %v2763_v24  ;;  %2863 = vst.msk [vmem:[#allocation4 + $0x248] sm:$0xff] %vm1813_vm13, %v2652_v48  ;;  %v2620_v34 = vpack.c.bf16 %v2512_v63, %v2510_v30  ;;  %2798 = vrot.lane.b32.xlu0 %v8081_v37, %s6250_s30  ;;  %v2848_v46 = vpack.c.bf16 %v5849_v7, %v5848_v42  ;;  %vm2491_vm2 = vcmask 1048064  }
 0x591   : > { %2921 = vst.msk [vmem:[#allocation4 + $0x228] sm:$0xff] %vm1813_vm13, %v2635_v0  ;;  %2651 = vst.msk [vmem:[#allocation4 + $0x260] sm:$0xff] %vm1813_vm13, %v2635_v0  ;;  %v2767_v50 = vpack.c.bf16 %v2764_v38, %v2762_v26  ;;  %v2869_v18 = vrot.slane %v5849_v7, 1 }
 0x592   : > { %2636 = vst.msk [vmem:[#allocation4 + $0x8] sm:$0xff] %vm1813_vm13, %v2620_v34  ;;  %2463 = vrot.lane.b32.xlu1 %v8090_v39, %s6250_s30  ;;  %2864 = vst.msk [vmem:[#allocation4 + $0x270] sm:$0xff] %vm1813_vm13, %v2848_v46 }
 0x593   : > { %2922 = vst.msk [vmem:[#allocation4 + $0x250] sm:$0xff] %vm1813_vm13, %v2767_v50  ;;  %v2870_v39 = vsel %vm653_vm1, %v2868_v60, %v2869_v18 }
 0x594   : > { %2683 = vrot.lane.b32.xlu0 %v8075_v9, %s6250_s30  ;;  %v5850_v9 = vld [vmem:[#allocation2 + $0x1a8] sm:$0x3] }
 0x595   : > { %v2871_v37 = vrot.slane %v5850_v9, 1 }
 0x596   : > { %2800 = vrot.lane.b32.xlu1 %v8124_v43, %s6250_s30 }
 0x598   : > { %2465 = vrot.lane.b32.xlu0 %v8137_v29, %s6250_s30 }
 0x59a   : > { %2685 = vrot.lane.b32.xlu1 %v8109_v40, %s6250_s30  ;;  %v2872_v40 = vsel %vm653_vm1, %v2869_v18, %v2871_v37  ;;  %vm4054_vm1 = vcmask 64512  }
 0x59b   : > { %v2875_v43 = vpack.c.bf16 %v2872_v40, %v2870_v39 }
 0x59c   : > { %2802 = vrot.lane.b32.xlu0 %v8150_v25, %s6250_s30 }
 0x59e   : > { %2467 = vrot.lane.b32.xlu1 %v8187_v19, %s6250_s30 }
 0x5a0   : > { %2687 = vrot.lane.b32.xlu0 %v8155_v27, %s6250_s30 }
 0x5a2   : > { %2804 = vrot.lane.b32.xlu1 %v8194_v12, %s6250_s30 }
 0x5a4   : > { %2469 = vrot.lane.b32.xlu0 %v8207_v17, %s6250_s30  ;;  %v5711_v17 = vld [vmem:[#allocation16 + $0x108] sm:$0xff]  }
 0x5a6   : > { %2689 = vrot.lane.b32.xlu1 %v8179_v22, %s6250_s30 }
 0x5a8   : > { %2806 = vrot.lane.b32.xlu0 %v8235_v35, %s6250_s30 }
 0x5aa   : > { %2471 = vrot.lane.b32.xlu1 %v8246_v49, %s6250_s30  ;;  %v5712_v49 = vld [vmem:[#allocation16 + $0x110] sm:$0xff]  }
 0x5ac   : > { %2691 = vrot.lane.b32.xlu0 %v8224_v58, %s6250_s30 }
 0x5ae   : > { %2808 = vrot.lane.b32.xlu1 %v8254_v11, %s6250_s30 }
 0x5b0   : > { %2473 = vrot.lane.b32.xlu0 %v8277_v44, %s6250_s30 }
 0x5b2   : > { %2693 = vrot.lane.b32.xlu1 %v8259_v5, %s6250_s30 }
 0x5b4   : > { %2810 = vrot.lane.b32.xlu0 %v2634_v55, %s6250_s30 }
 0x5b6   : > { %2695 = vrot.lane.b32.xlu1 %v8271_v51, %s6250_s30 }
 0x5b8   : > { %2878 = vrot.lane.b32.xlu0 %v2743_v61, %s6250_s30 }
 0x5ba   : > { %2812 = vrot.lane.b32.xlu1 %v2635_v0, %s6250_s30 }
 0x5bc   : > { %2697 = vrot.lane.b32.xlu0 %v2234_v57, %s6250_s30 }
 0x5be   : > { %2880 = vrot.lane.b32.xlu1 %v2875_v43, %s6250_s30 }
 0x5c0   : > { %2814 = vrot.lane.b32.xlu0 %v2767_v50, %s6250_s30 }
 0x5c2   : > { %2699 = vrot.lane.b32.xlu1 %v2652_v48, %s6250_s30 }
 0x5d2   : > { %v2448_v29 = vpop.permute.xlu0 %2447 }
 0x5d3   : > { %2494 = vst.msk [vmem:[#allocation4 + $0x50] sm:$0xff] %vm2491_vm2, %v2448_v29  ;;  %2884 = vst.msk [vmem:[#allocation4 + $0x18] sm:$0xff] %vm2491_vm2, %v2448_v29 }
 0x5d4   : > { %v2785_v25 = vpop.permute.xlu1 %2784 }
 0x5d5   : > { %2832 = vst.msk [vmem:[#allocation4 + $0x10] sm:$0xff] %vm2491_vm2, %v2785_v25 }
 0x5d6   : > { %v2450_v27 = vpop.permute.xlu0 %2449 }
 0x5d7   : > { %2495 = vst.msk [vmem:[#allocation4 + $0x78] sm:$0xff] %vm2491_vm2, %v2450_v27  ;;  %2885 = vst.msk [vmem:[#allocation4 + $0x40] sm:$0xff] %vm2491_vm2, %v2450_v27 }
 0x5d8   : > { %v2670_v22 = vpop.permute.xlu1 %2669 }
 0x5d9   : > { %2717 = vst.msk [vmem:[#allocation4 + $0x8] sm:$0xff] %vm2491_vm2, %v2670_v22 }
 0x5da   : > { %v2444_v19 = vpop.permute.xlu0 %2443  ;;  %v2927_v12 = vld [vmem:[#allocation4 + $0x18] sm:$0xff]  ;;  %v2934_v59 = vld [vmem:[#allocation4 + $0x50] sm:$0xff] }
 0x5db   : > { %2492 = vst.msk [vmem:[#allocation4] sm:$0xff] %vm2491_vm2, %v2444_v19  ;;  %3540 = vmatprep.mubr.bf16.mxu0 %v2927_v12 }
 0x5dc   : > { %v2787_v58 = vpop.permute.xlu1 %2786  ;;  %v2926_v35 = vld [vmem:[#allocation4 + $0x10] sm:$0xff] }
 0x5dd   : > { %2833 = vst.msk [vmem:[#allocation4 + $0x38] sm:$0xff] %vm2491_vm2, %v2787_v58  ;;  %3541 = vmatmul.mubr.bf16.vlgmr.msra.gmra.mrb[32].mxu0 %v2926_v35 }
 0x5de   : > { %v2452_v13 = vpop.permute.xlu0 %2451  ;;  %v2932_v28 = vld [vmem:[#allocation4 + $0x40] sm:$0xff]  ;;  %5472 = vmatpush3.bf16.msra.mxu0 %v7957_v20  ;;  %v2939_v33 = vld [vmem:[#allocation4 + $0x78] sm:$0xff] }
 0x5df   : > { %2496 = vst.msk [vmem:[#allocation4 + $0xa0] sm:$0xff] %vm2491_vm2, %v2452_v13  ;;  %2886 = vst.msk [vmem:[#allocation4 + $0x68] sm:$0xff] %vm2491_vm2, %v2452_v13  ;;  %3548 = vmatprep.mubr.bf16.mxu0 %v2932_v28  ;;  %5473 = vmatprep.subr.bf16.mxu0 %v5711_v17 }
 0x5e0   : > { %v2672_v56 = vpop.permute.xlu1 %2671  ;;  %v2925_v8 = vld [vmem:[#allocation4 + $0x8] sm:$0xff] }
 0x5e1   : > { %2718 = vst.msk [vmem:[#allocation4 + $0x30] sm:$0xff] %vm2491_vm2, %v2672_v56  ;;  %3379 = vmatprep.mubr.bf16.mxu1 %v2925_v8 }
 0x5e2   : > { %v2446_v31 = vpop.permute.xlu0 %2445  ;;  %v2924_v32 = vld [vmem:[#allocation4] sm:$0xff]  ;;  %5474 = vmatpush3.bf16.msra.mxu0 %v5711_v17 }
 0x5e3   : > { %2493 = vst.msk [vmem:[#allocation4 + $0x28] sm:$0xff] %vm2491_vm2, %v2446_v31  ;;  %3380 = vmatmul.mubr.bf16.vlgmr.msra.gmra.mrb[4].mxu1 %v2924_v32  ;;  %5475 = vmatprep.subr.bf16.mxu0 %v5712_v49 }
 0x5e4   : > { %v2789_v6 = vpop.permute.xlu1 %2788  ;;  %5527 = vmatpush3.bf16.msra.mxu1 %v7957_v20  ;;  %v2931_v11 = vld [vmem:[#allocation4 + $0x38] sm:$0xff] }
 0x5e5   : > { %2834 = vst.msk [vmem:[#allocation4 + $0x60] sm:$0xff] %vm2491_vm2, %v2789_v6  ;;  %3549 = vmatmul.mubr.bf16.gmra.mrb[36].mxu0 %v2931_v11  ;;  %5524 = vmatprep.subr.bf16.mxu1 %v5711_v17 }
 0x5e6   : > { %v2454_v16 = vpop.permute.xlu0 %2453  ;;  %v2937_v5 = vld [vmem:[#allocation4 + $0x68] sm:$0xff]  ;;  %5476 = vmatpush3.bf16.msra.mxu0 %v5712_v49  ;;  %v2944_v30 = vld [vmem:[#allocation4 + $0xa0] sm:$0xff] }
 0x5e7   : > { %2497 = vst.msk [vmem:[#allocation4 + $0xc8] sm:$0xff] %vm2491_vm2, %v2454_v16  ;;  %2887 = vst.msk [vmem:[#allocation4 + $0x90] sm:$0xff] %vm2491_vm2, %v2454_v16  ;;  %3556 = vmatprep.mubr.bf16.mxu0 %v2937_v5  ;;  %5477 = vmatprep.subr.bf16.mxu0 %v5713_v14 }
 0x5e8   : > { %v2674_v21 = vpop.permute.xlu1 %2673  ;;  %v2930_v62 = vld [vmem:[#allocation4 + $0x30] sm:$0xff]  ;;  %5528 = vmatpush3.bf16.msra.mxu1 %v5711_v17 }
 0x5e9   : > { %2719 = vst.msk [vmem:[#allocation4 + $0x58] sm:$0xff] %vm2491_vm2, %v2674_v21  ;;  %3387 = vmatprep.mubr.bf16.mxu1 %v2930_v62  ;;  %5525 = vmatprep.subr.bf16.mxu1 %v5712_v49 }
 0x5ea   : > { %v2791_v20 = vpop.permute.xlu0 %2790  ;;  %v2929_v36 = vld [vmem:[#allocation4 + $0x28] sm:$0xff]  ;;  %5478 = vmatpush3.bf16.msra.mxu0 %v5713_v14 }
 0x5eb   : > { %2835 = vst.msk [vmem:[#allocation4 + $0x88] sm:$0xff] %vm2491_vm2, %v2791_v20  ;;  %3388 = vmatmul.mubr.bf16.gmra.mrb[8].mxu1 %v2929_v36 }
 0x5ec   : > { %v2456_v45 = vpop.permute.xlu1 %2455  ;;  %v2936_v51 = vld [vmem:[#allocation4 + $0x60] sm:$0xff]  ;;  %5529 = vmatpush3.bf16.msra.mxu1 %v5712_v49 }
 0x5ed   : > { %2498 = vst.msk [vmem:[#allocation4 + $0xf0] sm:$0xff] %vm2491_vm2, %v2456_v45  ;;  %2888 = vst.msk [vmem:[#allocation4 + $0xb8] sm:$0xff] %vm2491_vm2, %v2456_v45  ;;  %3557 = vmatmul.mubr.bf16.gmra.mrb[40].mxu0 %v2936_v51  ;;  %5526 = vmatprep.subr.bf16.mxu1 %v5713_v14 }
 0x5ee   : > { %v2676_v44 = vpop.permute.xlu0 %2675  ;;  %v2942_v47 = vld [vmem:[#allocation4 + $0x90] sm:$0xff]  ;;  %v2949_v46 = vld [vmem:[#allocation4 + $0xc8] sm:$0xff] }
 0x5ef   : > { %2720 = vst.msk [vmem:[#allocation4 + $0x80] sm:$0xff] %vm2491_vm2, %v2676_v44  ;;  %3564 = vmatprep.mubr.bf16.mxu0 %v2942_v47 }
 0x5f0   : > { %v2793_v10 = vpop.permute.xlu1 %2792  ;;  %v2935_v3 = vld [vmem:[#allocation4 + $0x58] sm:$0xff]  ;;  %5530 = vmatpush3.bf16.msra.mxu1 %v5713_v14 }
 0x5f1   : > { %2836 = vst.msk [vmem:[#allocation4 + $0xb0] sm:$0xff] %vm2491_vm2, %v2793_v10  ;;  %3395 = vmatprep.mubr.bf16.mxu1 %v2935_v3 }
 0x5f2   : > { %v2458_v1 = vpop.permute.xlu0 %2457  ;;  %v2941_v15 = vld [vmem:[#allocation4 + $0x88] sm:$0xff] }
 0x5f3   : > { %2499 = vst.msk [vmem:[#allocation4 + $0x118] sm:$0xff] %vm2491_vm2, %v2458_v1  ;;  %2889 = vst.msk [vmem:[#allocation4 + $0xe0] sm:$0xff] %vm2491_vm2, %v2458_v1  ;;  %3396 = vmatmul.mubr.bf16.gmra.mrb[12].mxu1 %v2934_v59 }
 0x5f4   : > { %v2678_v54 = vpop.permute.xlu1 %2677  ;;  %v2947_v55 = vld [vmem:[#allocation4 + $0xb8] sm:$0xff]  ;;  %v2954_v29 = vld [vmem:[#allocation4 + $0xf0] sm:$0xff] }
 0x5f5   : > { %2721 = vst.msk [vmem:[#allocation4 + $0xa8] sm:$0xff] %vm2491_vm2, %v2678_v54  ;;  %3565 = vmatmul.mubr.bf16.gmra.mrb[44].mxu0 %v2941_v15 }
 0x5f6   : > { %3572 = vmatprep.mubr.bf16.mxu0 %v2947_v55  ;;  %v2795_v41 = vpop.permute.xlu0 %2794  ;;  %v2940_v2 = vld [vmem:[#allocation4 + $0x80] sm:$0xff] }
 0x5f7   : > { %2837 = vst.msk [vmem:[#allocation4 + $0xd8] sm:$0xff] %vm2491_vm2, %v2795_v41  ;;  %3403 = vmatprep.mubr.bf16.mxu1 %v2940_v2 }
 0x5f8   : > { %v2460_v4 = vpop.permute.xlu1 %2459  ;;  %v2946_v23 = vld [vmem:[#allocation4 + $0xb0] sm:$0xff] }
 0x5f9   : > { %2500 = vst.msk [vmem:[#allocation4 + $0x140] sm:$0xff] %vm2491_vm2, %v2460_v4  ;;  %2890 = vst.msk [vmem:[#allocation4 + $0x108] sm:$0xff] %vm2491_vm2, %v2460_v4 }
 0x5fa   : > { %v2680_v61 = vpop.permute.xlu0 %2679  ;;  %v2952_v52 = vld [vmem:[#allocation4 + $0xe0] sm:$0xff]  ;;  %v2959_v35 = vld [vmem:[#allocation4 + $0x118] sm:$0xff] }
 0x5fb   : > { %2722 = vst.msk [vmem:[#allocation4 + $0xd0] sm:$0xff] %vm2491_vm2, %v2680_v61  ;;  %3404 = vmatmul.mubr.bf16.gmra.mrb[16].mxu1 %v2939_v33 }
 0x5fc   : > { %v2797_v57 = vpop.permute.xlu1 %2796  ;;  %v2945_v53 = vld [vmem:[#allocation4 + $0xa8] sm:$0xff] }
 0x5fd   : > { %2838 = vst.msk [vmem:[#allocation4 + $0x100] sm:$0xff] %vm2491_vm2, %v2797_v57  ;;  %3411 = vmatprep.mubr.bf16.mxu1 %v2945_v53  ;;  %3573 = vmatmul.mubr.bf16.gmra.mrb[48].mxu0 %v2946_v23 }
 0x5fe   : > { %3580 = vmatprep.mubr.bf16.mxu0 %v2952_v52  ;;  %v2462_v24 = vpop.permute.xlu0 %2461  ;;  %v2951_v38 = vld [vmem:[#allocation4 + $0xd8] sm:$0xff] }
 0x5ff   : > { %2501 = vst.msk [vmem:[#allocation4 + $0x168] sm:$0xff] %vm2491_vm2, %v2462_v24  ;;  %2891 = vst.msk [vmem:[#allocation4 + $0x130] sm:$0xff] %vm2491_vm2, %v2462_v24 }
 0x600   : > { %v2682_v48 = vpop.permute.xlu1 %2681  ;;  %v2957_v34 = vld [vmem:[#allocation4 + $0x108] sm:$0xff]  ;;  %v2964_v14 = vld [vmem:[#allocation4 + $0x140] sm:$0xff] }
 0x601   : > { %2723 = vst.msk [vmem:[#allocation4 + $0xf8] sm:$0xff] %vm2491_vm2, %v2682_v48 }
 0x602   : > { %v2799_v0 = vpop.permute.xlu0 %2798  ;;  %v2950_v63 = vld [vmem:[#allocation4 + $0xd0] sm:$0xff] }
 0x603   : > { %2839 = vst.msk [vmem:[#allocation4 + $0x128] sm:$0xff] %vm2491_vm2, %v2799_v0  ;;  %3412 = vmatmul.mubr.bf16.gmra.mrb[20].mxu1 %v2944_v30 }
 0x604   : > { %v2464_v26 = vpop.permute.xlu1 %2463  ;;  %3419 = vmatprep.mubr.bf16.mxu1 %v2950_v63  ;;  %v2956_v9 = vld [vmem:[#allocation4 + $0x100] sm:$0xff] }
 0x605   : > { %2502 = vst.msk [vmem:[#allocation4 + $0x190] sm:$0xff] %vm2491_vm2, %v2464_v26  ;;  %2892 = vst.msk [vmem:[#allocation4 + $0x158] sm:$0xff] %vm2491_vm2, %v2464_v26  ;;  %3581 = vmatmul.mubr.bf16.gmra.mrb[52].mxu0 %v2951_v38  ;;  %v8442_v26 = vld [vmem:[%s6642_s2] sm:$0xff]  ;;  %v8445_v38 = vld [vmem:[%s6642_s2 + $0x8] sm:$0xff] }
 0x606   : > { %3588 = vmatprep.mubr.bf16.mxu0 %v2957_v34  ;;  %v2684_v50 = vpop.permute.xlu0 %2683  ;;  %v2962_v37 = vld [vmem:[#allocation4 + $0x130] sm:$0xff]  ;;  %v2969_v36 = vld [vmem:[#allocation4 + $0x168] sm:$0xff] }
 0x607   : > { %2724 = vst.msk [vmem:[#allocation4 + $0x120] sm:$0xff] %vm2491_vm2, %v2684_v50  ;;  %v4055_v50 = vsel %vm4054_vm1, %v8442_v26, 0.0 }
 0x608   : > { %v2801_v42 = vpop.permute.xlu1 %2800  ;;  %v2955_v60 = vld [vmem:[#allocation4 + $0xf8] sm:$0xff] }
 0x609   : > { %2840 = vst.msk [vmem:[#allocation4 + $0x150] sm:$0xff] %vm2491_vm2, %v2801_v42  ;;  %v4056_v42 = vsel %vm4054_vm1, %v8445_v38, 0.0 }
 0x60a   : > { %v2466_v7 = vpop.permute.xlu0 %2465  ;;  %v2961_v22 = vld [vmem:[#allocation4 + $0x128] sm:$0xff] }
 0x60b   : > { %2503 = vst.msk [vmem:[#allocation4 + $0x1b8] sm:$0xff] %vm2491_vm2, %v2466_v7  ;;  %2893 = vst.msk [vmem:[#allocation4 + $0x180] sm:$0xff] %vm2491_vm2, %v2466_v7  ;;  %3420 = vmatmul.mubr.bf16.gmra.mrb[24].mxu1 %v2949_v46  ;;  %v8452_v46 = vld [vmem:[%s6642_s2 + $0x10] sm:$0xff] }
 0x60c   : > { %v2686_v18 = vpop.permute.xlu1 %2685  ;;  %3427 = vmatprep.mubr.bf16.mxu1 %v2955_v60  ;;  %v2967_v19 = vld [vmem:[#allocation4 + $0x158] sm:$0xff]  ;;  %v2974_v59 = vld [vmem:[#allocation4 + $0x190] sm:$0xff]  ;;  %v4057_v60 = vadd.f32 %v4056_v42, %v4055_v50 }
 0x60d   : > { %2725 = vst.msk [vmem:[#allocation4 + $0x148] sm:$0xff] %vm2491_vm2, %v2686_v18  ;;  %3589 = vmatmul.mubr.bf16.gmra.mrb[56].mxu0 %v2956_v9  ;;  %v2928_v18 = vld [vmem:[#allocation4 + $0x20] sm:$0xff]  ;;  %v4058_v9 = vsel %vm4054_vm1, %v8452_v46, 0.0  ;;  %v8543_v42 = vld [vmem:[%s6642_s2 + $0x90] sm:$0xff] }
 0x60e   : > { %3596 = vmatprep.mubr.bf16.mxu0 %v2962_v37  ;;  %v2803_v39 = vpop.permute.xlu0 %2802  ;;  %v2960_v25 = vld [vmem:[#allocation4 + $0x120] sm:$0xff]  ;;  %v8458_v37 = vld [vmem:[%s6642_s2 + $0x18] sm:$0xff] }
 0x60f   : > { %2841 = vst.msk [vmem:[#allocation4 + $0x178] sm:$0xff] %vm2491_vm2, %v2803_v39  ;;  %v4059_v39 = vadd.f32 %v4058_v9, %v4057_v60  ;;  %v4090_v60 = vsel %vm4054_vm1, %v8543_v42, 0.0 }
 0x610   : > { %v2468_v40 = vpop.permute.xlu1 %2467  ;;  %v2966_v49 = vld [vmem:[#allocation4 + $0x150] sm:$0xff] }
 0x611   : > { %2504 = vst.msk [vmem:[#allocation4 + $0x1e0] sm:$0xff] %vm2491_vm2, %v2468_v40  ;;  %2894 = vst.msk [vmem:[#allocation4 + $0x1a8] sm:$0xff] %vm2491_vm2, %v2468_v40  ;;  %v4060_v40 = vsel %vm4054_vm1, %v8458_v37, 0.0 }
 0x612   : > { %v2688_v43 = vpop.permute.xlu0 %2687  ;;  %v2972_v56 = vld [vmem:[#allocation4 + $0x180] sm:$0xff]  ;;  %v2979_v2 = vld [vmem:[#allocation4 + $0x1b8] sm:$0xff] }
 0x613   : > { %2726 = vst.msk [vmem:[#allocation4 + $0x170] sm:$0xff] %vm2491_vm2, %v2688_v43  ;;  %3428 = vmatmul.mubr.bf16.gmra.mrb[28].mxu1 %v2954_v29  ;;  %v8463_v43 = vld [vmem:[%s6642_s2 + $0x20] sm:$0xff]  ;;  %v4061_v29 = vadd.f32 %v4060_v40, %v4059_v39 }
 0x614   : > { %v2805_v27 = vpop.permute.xlu1 %2804  ;;  %3435 = vmatprep.mubr.bf16.mxu1 %v2960_v25  ;;  %v2965_v13 = vld [vmem:[#allocation4 + $0x148] sm:$0xff]  ;;  %v4062_v25 = vsel %vm4054_vm1, %v8463_v43, 0.0  ;;  %v8553_v40 = vld [vmem:[%s6642_s2 + $0xa0] sm:$0xff] }
 0x615   : > { %2842 = vst.msk [vmem:[#allocation4 + $0x1a0] sm:$0xff] %vm2491_vm2, %v2805_v27  ;;  %3597 = vmatmul.mubr.bf16.gmra.mrb[60].mxu0 %v2961_v22  ;;  %v8468_v22 = vld [vmem:[%s6642_s2 + $0x28] sm:$0xff] }
 0x616   : > { %3604 = vmatprep.mubr.bf16.mxu0 %v2967_v19  ;;  %v2470_v12 = vpop.permute.xlu0 %2469  ;;  %v2971_v16 = vld [vmem:[#allocation4 + $0x178] sm:$0xff]  ;;  %v4063_v19 = vadd.f32 %v4062_v25, %v4061_v29  ;;  %v4094_v25 = vsel %vm4054_vm1, %v8553_v40, 0.0 }
 0x617   : > { %2505 = vst.msk [vmem:[#allocation4 + $0x208] sm:$0xff] %vm2491_vm2, %v2470_v12  ;;  %2895 = vst.msk [vmem:[#allocation4 + $0x1d0] sm:$0xff] %vm2491_vm2, %v2470_v12  ;;  %v2948_v12 = vld [vmem:[#allocation4 + $0xc0] sm:$0xff] }
 0x618   : > { %v2690_v17 = vpop.permute.xlu1 %2689  ;;  %v2977_v5 = vld [vmem:[#allocation4 + $0x1a8] sm:$0xff]  ;;  %v2984_v57 = vld [vmem:[#allocation4 + $0x1e0] sm:$0xff] }
 0x619   : > { %2727 = vst.msk [vmem:[#allocation4 + $0x198] sm:$0xff] %vm2491_vm2, %v2690_v17  ;;  %v4064_v17 = vsel %vm4054_vm1, %v8468_v22, 0.0 }
 0x61a   : > { %v2807_v58 = vpop.permute.xlu0 %2806  ;;  %v2970_v6 = vld [vmem:[#allocation4 + $0x170] sm:$0xff] }
 0x61b   : > { %2843 = vst.msk [vmem:[#allocation4 + $0x1c8] sm:$0xff] %vm2491_vm2, %v2807_v58  ;;  %3436 = vmatmul.mubr.bf16.gmra.mrb[32].mxu1 %v2959_v35  ;;  %v2933_v58 = vld [vmem:[#allocation4 + $0x48] sm:$0xff]  ;;  %v8474_v35 = vld [vmem:[%s6642_s2 + $0x30] sm:$0xff] }
 0x61c   : > { %v2472_v28 = vpop.permute.xlu1 %2471  ;;  %3443 = vmatprep.mubr.bf16.mxu1 %v2965_v13  ;;  %v2976_v44 = vld [vmem:[#allocation4 + $0x1a0] sm:$0xff]  ;;  %v4065_v13 = vadd.f32 %v4064_v17, %v4063_v19  ;;  %v8558_v19 = vld [vmem:[%s6642_s2 + $0xa8] sm:$0xff] }
 0x61d   : > { %2506 = vst.msk [vmem:[#allocation4 + $0x230] sm:$0xff] %vm2491_vm2, %v2472_v28  ;;  %2896 = vst.msk [vmem:[#allocation4 + $0x1f8] sm:$0xff] %vm2491_vm2, %v2472_v28  ;;  %3605 = vmatmul.mubr.bf16.gmra.mrb[64].mxu0 %v2966_v49  ;;  %v2938_v28 = vld [vmem:[#allocation4 + $0x70] sm:$0xff]  ;;  %v4066_v49 = vsel %vm4054_vm1, %v8474_v35, 0.0  ;;  %v2988_v17 = vld [vmem:[#allocation4 + $0x200] sm:$0xff] }
 0x61e   : > { %3612 = vmatprep.mubr.bf16.mxu0 %v2972_v56  ;;  %v2692_v8 = vpop.permute.xlu0 %2691  ;;  %v2982_v47 = vld [vmem:[#allocation4 + $0x1d0] sm:$0xff]  ;;  %v2989_v24 = vld [vmem:[#allocation4 + $0x208] sm:$0xff]  ;;  %v8481_v56 = vld [vmem:[%s6642_s2 + $0x38] sm:$0xff] }
 0x61f   : > { %2728 = vst.msk [vmem:[#allocation4 + $0x1c0] sm:$0xff] %vm2491_vm2, %v2692_v8  ;;  %v4067_v8 = vadd.f32 %v4066_v49, %v4065_v13  ;;  %v8565_v13 = vld [vmem:[%s6642_s2 + $0xb0] sm:$0xff] }
 0x620   : > { %v2809_v31 = vpop.permute.xlu1 %2808  ;;  %v2975_v45 = vld [vmem:[#allocation4 + $0x198] sm:$0xff]  ;;  %v4098_v49 = vsel %vm4054_vm1, %v8565_v13, 0.0 }
 0x621   : > { %2844 = vst.msk [vmem:[#allocation4 + $0x1f0] sm:$0xff] %vm2491_vm2, %v2809_v31  ;;  %v4068_v31 = vsel %vm4054_vm1, %v8481_v56, 0.0 }
 0x622   : > { %v2474_v32 = vpop.permute.xlu0 %2473  ;;  %v2981_v55 = vld [vmem:[#allocation4 + $0x1c8] sm:$0xff] }
 0x623   : > { %2507 = vst.msk [vmem:[#allocation4 + $0x258] sm:$0xff] %vm2491_vm2, %v2474_v32  ;;  %2897 = vst.msk [vmem:[#allocation4 + $0x220] sm:$0xff] %vm2491_vm2, %v2474_v32  ;;  %3444 = vmatmul.mubr.bf16.gmra.mrb[36].mxu1 %v2964_v14  ;;  %v8486_v32 = vld [vmem:[%s6642_s2 + $0x40] sm:$0xff]  ;;  %v4069_v14 = vadd.f32 %v4068_v31, %v4067_v8  ;;  %v8570_v8 = vld [vmem:[%s6642_s2 + $0xb8] sm:$0xff] }
 0x624   : > { %v2694_v11 = vpop.permute.xlu1 %2693  ;;  %3451 = vmatprep.mubr.bf16.mxu1 %v2970_v6  ;;  %v2987_v41 = vld [vmem:[#allocation4 + $0x1f8] sm:$0xff]  ;;  %v2994_v63 = vld [vmem:[#allocation4 + $0x230] sm:$0xff]  ;;  %v4070_v6 = vsel %vm4054_vm1, %v8486_v32, 0.0 }
 0x625   : > { %2729 = vst.msk [vmem:[#allocation4 + $0x1e8] sm:$0xff] %vm2491_vm2, %v2694_v11  ;;  %3613 = vmatmul.mubr.bf16.gmra.mrb[68].mxu0 %v2971_v16  ;;  %v2953_v11 = vld [vmem:[#allocation4 + $0xe8] sm:$0xff] }
 0x626   : > { %3620 = vmatprep.mubr.bf16.mxu0 %v2977_v5  ;;  %v2811_v21 = vpop.permute.xlu0 %2810  ;;  %v2980_v15 = vld [vmem:[#allocation4 + $0x1c0] sm:$0xff]  ;;  %v8491_v16 = vld [vmem:[%s6642_s2 + $0x48] sm:$0xff]  ;;  %v4071_v5 = vadd.f32 %v4070_v6, %v4069_v14  ;;  %v4100_v14 = vsel %vm4054_vm1, %v8570_v8, 0.0 }
 0x627   : > { %2845 = vst.msk [vmem:[#allocation4 + $0x218] sm:$0xff] %vm2491_vm2, %v2811_v21  ;;  %v2958_v21 = vld [vmem:[#allocation4 + $0x110] sm:$0xff]  ;;  %v8575_v6 = vld [vmem:[%s6642_s2 + $0xc0] sm:$0xff] }
 0x628   : > { %v2696_v62 = vpop.permute.xlu1 %2695  ;;  %v2986_v61 = vld [vmem:[#allocation4 + $0x1f0] sm:$0xff] }
 0x629   : > { %2730 = vst.msk [vmem:[#allocation4 + $0x210] sm:$0xff] %vm2491_vm2, %v2696_v62  ;;  %v4072_v62 = vsel %vm4054_vm1, %v8491_v16, 0.0 }
 0x62a   : > { %v2879_v20 = vpop.permute.xlu0 %2878  ;;  %v2992_v33 = vld [vmem:[#allocation4 + $0x220] sm:$0xff]  ;;  %v2999_v27 = vld [vmem:[#allocation4 + $0x258] sm:$0xff] }
 0x62b   : > { %2898 = vst.msk [vmem:[#allocation4 + $0x248] sm:$0xff] %vm2491_vm2, %v2879_v20  ;;  %3452 = vmatmul.mubr.bf16.gmra.mrb[40].mxu1 %v2969_v36  ;;  %v2943_v20 = vld [vmem:[#allocation4 + $0x98] sm:$0xff]  ;;  %v8498_v36 = vld [vmem:[%s6642_s2 + $0x50] sm:$0xff] }
 0x62c   : > { %v2813_v51 = vpop.permute.xlu1 %2812  ;;  %3459 = vmatprep.mubr.bf16.mxu1 %v2975_v45  ;;  %v2985_v4 = vld [vmem:[#allocation4 + $0x1e8] sm:$0xff]  ;;  %v4073_v45 = vadd.f32 %v4072_v62, %v4071_v5  ;;  %v4102_v5 = vsel %vm4054_vm1, %v8575_v6, 0.0 }
 0x62d   : > { %2846 = vst.msk [vmem:[#allocation4 + $0x240] sm:$0xff] %vm2491_vm2, %v2813_v51  ;;  %3621 = vmatmul.mubr.bf16.gmra.mrb[72].mxu0 %v2976_v44  ;;  %v4074_v51 = vsel %vm4054_vm1, %v8498_v36, 0.0  ;;  %v8504_v44 = vld [vmem:[%s6642_s2 + $0x58] sm:$0xff]  ;;  %v8580_v62 = vld [vmem:[%s6642_s2 + $0xc8] sm:$0xff] }
 0x62e   : > { %3628 = vmatprep.mubr.bf16.mxu0 %v2982_v47  ;;  %v2698_v10 = vpop.permute.xlu0 %2697  ;;  %v2991_v23 = vld [vmem:[#allocation4 + $0x218] sm:$0xff]  ;;  %v4075_v47 = vadd.f32 %v4074_v51, %v4073_v45  ;;  %v2998_v45 = vld [vmem:[#allocation4 + $0x250] sm:$0xff]  ;;  %v4104_v51 = vsel %vm4054_vm1, %v8580_v62, 0.0 }
 0x62f   : > { %2731 = vst.msk [vmem:[#allocation4 + $0x238] sm:$0xff] %vm2491_vm2, %v2698_v10  ;;  %v4076_v10 = vsel %vm4054_vm1, %v8504_v44, 0.0 }
 0x630   : > { %v2881_v3 = vpop.permute.xlu1 %2880  ;;  %v2990_v53 = vld [vmem:[#allocation4 + $0x210] sm:$0xff] }
 0x631   : > { %2899 = vst.msk [vmem:[#allocation4 + $0x270] sm:$0xff] %vm2491_vm2, %v2881_v3  ;;  %v8509_v3 = vld [vmem:[%s6642_s2 + $0x60] sm:$0xff] }
 0x632   : > { %v2815_v1 = vpop.permute.xlu0 %2814  ;;  %v2997_v52 = vld [vmem:[#allocation4 + $0x248] sm:$0xff] }
 0x633   : > { %2847 = vst.msk [vmem:[#allocation4 + $0x268] sm:$0xff] %vm2491_vm2, %v2815_v1  ;;  %3460 = vmatmul.mubr.bf16.gmra.mrb[44].mxu1 %v2974_v59  ;;  %v4077_v1 = vadd.f32 %v4076_v10, %v4075_v47  ;;  %v4078_v59 = vsel %vm4054_vm1, %v8509_v3, 0.0  ;;  %v8587_v47 = vld [vmem:[%s6642_s2 + $0xd0] sm:$0xff] }
 0x634   : > { %v2700_v54 = vpop.permute.xlu1 %2699  ;;  %3467 = vmatprep.mubr.bf16.mxu1 %v2980_v15  ;;  %v2996_v30 = vld [vmem:[#allocation4 + $0x240] sm:$0xff]  ;;  %v2963_v15 = vld [vmem:[#allocation4 + $0x138] sm:$0xff] }
 0x635   : > { %2732 = vst.msk [vmem:[#allocation4 + $0x260] sm:$0xff] %vm2491_vm2, %v2700_v54  ;;  %3629 = vmatmul.mubr.bf16.gmra.mrb[76].mxu0 %v2981_v55  ;;  %v8514_v54 = vld [vmem:[%s6642_s2 + $0x68] sm:$0xff]  ;;  %v4079_v55 = vadd.f32 %v4078_v59, %v4077_v1  ;;  %v4106_v1 = vsel %vm4054_vm1, %v8587_v47, 0.0  ;;  %v8592_v59 = vld [vmem:[%s6642_s2 + $0xd8] sm:$0xff] }
 0x636   : > { %3636 = vmatprep.mubr.bf16.mxu0 %v2987_v41  ;;  %v2995_v48 = vld [vmem:[#allocation4 + $0x238] sm:$0xff]  ;;  %v2968_v41 = vld [vmem:[#allocation4 + $0x160] sm:$0xff] }
 0x638   : > { %v3002_v0 = vld [vmem:[#allocation4 + $0x270] sm:$0xff] }
 0x63a   : > { %v3001_v7 = vld [vmem:[#allocation4 + $0x268] sm:$0xff] }
 0x63b   : > { %3468 = vmatmul.mubr.bf16.gmra.mrb[48].mxu1 %v2979_v2  ;;  %v4080_v2 = vsel %vm4054_vm1, %v8514_v54, 0.0 }
 0x63c   : > { %3475 = vmatprep.mubr.bf16.mxu1 %v2985_v4  ;;  %v3000_v34 = vld [vmem:[#allocation4 + $0x260] sm:$0xff]  ;;  %v8521_v4 = vld [vmem:[%s6642_s2 + $0x70] sm:$0xff] }
 0x63d   : > { %3637 = vmatmul.mubr.bf16.gmra.mrb[80].mxu0 %v2986_v61  ;;  %v4081_v61 = vadd.f32 %v4080_v2, %v4079_v55  ;;  %v4108_v55 = vsel %vm4054_vm1, %v8592_v59, 0.0  ;;  %v8597_v2 = vld [vmem:[%s6642_s2 + $0xe0] sm:$0xff] }
 0x63e   : > { %3644 = vmatprep.mubr.bf16.mxu0 %v2992_v33  ;;  %v4082_v33 = vsel %vm4054_vm1, %v8521_v4, 0.0 }
 0x643   : > { %3476 = vmatmul.mubr.bf16.gmra.mrb[52].mxu1 %v2984_v57  ;;  %v8526_v57 = vld [vmem:[%s6642_s2 + $0x78] sm:$0xff] }
 0x644   : > { %3483 = vmatprep.mubr.bf16.mxu1 %v2990_v53  ;;  %v4083_v53 = vadd.f32 %v4082_v33, %v4081_v61  ;;  %v4110_v33 = vsel %vm4054_vm1, %v8597_v2, 0.0 }
 0x645   : > { %3645 = vmatmul.mubr.bf16.gmra.mrb[84].mxu0 %v2991_v23  ;;  %v4084_v23 = vsel %vm4054_vm1, %v8526_v57, 0.0 }
 0x646   : > { %3652 = vmatprep.mubr.bf16.mxu0 %v2997_v52  ;;  %v8531_v52 = vld [vmem:[%s6642_s2 + $0x80] sm:$0xff] }
 0x64b   : > { %3484 = vmatmul.mubr.bf16.gmra.mrb[56].mxu1 %v2989_v24  ;;  %v4085_v24 = vadd.f32 %v4084_v23, %v4083_v53  ;;  %v8602_v53 = vld [vmem:[%s6642_s2 + $0xe8] sm:$0xff] }
 0x64c   : > { %3491 = vmatprep.mubr.bf16.mxu1 %v2995_v48  ;;  %v4086_v48 = vsel %vm4054_vm1, %v8531_v52, 0.0 }
 0x64d   : > { %3653 = vmatmul.mubr.bf16.gmra.mrb[88].mxu0 %v2996_v30  ;;  %v8536_v30 = vld [vmem:[%s6642_s2 + $0x88] sm:$0xff] }
 0x64e   : > { %3660 = vmatprep.mubr.bf16.mxu0 %v3002_v0  ;;  %v2973_v0 = vld [vmem:[#allocation4 + $0x188] sm:$0xff]  ;;  %v4088_v50 = vsel %vm4054_vm1, %v8536_v30, 0.0 }
 0x653   : > { %3492 = vmatmul.mubr.bf16.gmra.mrb[60].mxu1 %v2994_v63  ;;  %v4087_v63 = vadd.f32 %v4086_v48, %v4085_v24  ;;  %v4112_v24 = vsel %vm4054_vm1, %v8602_v53, 0.0  ;;  %v8608_v48 = vld [vmem:[%s6642_s2 + $0xf0] sm:$0xff] }
 0x654   : > { %3499 = vmatprep.mubr.bf16.mxu1 %v3000_v34  ;;  %v2978_v34 = vld [vmem:[#allocation4 + $0x1b0] sm:$0xff] }
 0x655   : > { %3661 = vmatmul.mubr.bf16.gmra.mrb[92].mxu0 %v3001_v7  ;;  %v4089_v7 = vadd.f32 %v4088_v50, %v4087_v63  ;;  %v4114_v63 = vsel %vm4054_vm1, %v8608_v48, 0.0 }
 0x656   : > { %5479 = vmatprep.mubr.msk.bf16.mxu0 %vm1813_vm13, %v2928_v18  ;;  %v8548_v18 = vld [vmem:[%s6642_s2 + $0x98] sm:$0xff] }
 0x657   : > { %v4091_v9 = vadd.f32 %v4090_v60, %v4089_v7  ;;  %v4092_v39 = vsel %vm4054_vm1, %v8548_v18, 0.0 }
 0x659   : > { %v4093_v29 = vadd.f32 %v4092_v39, %v4091_v9 }
 0x65b   : > { %3500 = vmatmul.mubr.bf16.gmra.mrb[64].mxu1 %v2999_v27  ;;  %v2983_v27 = vld [vmem:[#allocation4 + $0x1d8] sm:$0xff] }
 0x65c   : > { %5487 = vmatprep.mubr.msk.bf16.mxu1 %vm1813_vm13, %v2948_v12  ;;  %v4095_v12 = vadd.f32 %v4094_v25, %v4093_v29 }
 0x65d   : > { %5480 = vmatmul.mubr.msk.bf16.vlgmr.msra.gmra.mrb[96].mxu0 %vm1813_vm13, %v2933_v58  ;;  %v4096_v58 = vsel %vm4054_vm1, %v8558_v19, 0.0 }
 0x65e   : > { %5483 = vmatprep.mubr.msk.bf16.mxu0 %vm1813_vm13, %v2938_v28  ;;  %v4097_v28 = vadd.f32 %v4096_v58, %v4095_v12 }
 0x660   : > { %v4099_v31 = vadd.f32 %v4098_v49, %v4097_v28 }
 0x663   : > { %5488 = vmatmul.mubr.msk.bf16.vlgmr.msra.gmra.mrb[68].mxu1 %vm1813_vm13, %v2953_v11  ;;  %v4101_v11 = vadd.f32 %v4100_v14, %v4099_v31 }
 0x664   : > { %5491 = vmatprep.mubr.msk.bf16.mxu1 %vm1813_vm13, %v2958_v21  ;;  %v2993_v21 = vld [vmem:[#allocation4 + $0x228] sm:$0xff] }
 0x665   : > { %5484 = vmatmul.mubr.msk.bf16.gmra.mrb[100].mxu0 %vm1813_vm13, %v2943_v20  ;;  %v4103_v20 = vadd.f32 %v4102_v5, %v4101_v11 }
 0x667   : > { %v4105_v10 = vadd.f32 %v4104_v51, %v4103_v20 }
 0x66b   : > { %5492 = vmatmul.mubr.msk.bf16.gmra.mrb[72].mxu1 %vm1813_vm13, %v2963_v15  ;;  %v4107_v15 = vadd.f32 %v4106_v1, %v4105_v10 }
 0x66c   : > { %5495 = vmatprep.mubr.msk.bf16.mxu1 %vm1813_vm13, %v2968_v41  ;;  %v3003_v41 = vld [vmem:[#allocation4 + $0x278] sm:$0xff] }
 0x66d   : > { %v4109_v61 = vadd.f32 %v4108_v55, %v4107_v15 }
 0x66f   : > { %v4111_v23 = vadd.f32 %v4110_v33, %v4109_v61 }
 0x673   : > { %5496 = vmatmul.mubr.msk.bf16.gmra.mrb[76].mxu1 %vm1813_vm13, %v2973_v0  ;;  %v4113_v0 = vadd.f32 %v4112_v24, %v4111_v23 }
 0x674   : > { %5499 = vmatprep.mubr.msk.bf16.mxu1 %vm1813_vm13, %v2978_v34  ;;  %v8613_v34 = vld [vmem:[%s6642_s2 + $0xf8] sm:$0xff]  ;;  %s4746_s2 = sshll.u32 %s9051_s27, 4  ;;  %s9410_s2 = int_to_ptr.vmem [resolvable:$true] %s4746_s2 }
 0x675   : > { %v4115_v50 = vadd.f32 %v4114_v63, %v4113_v0  ;;  %v4116_v7 = vsel %vm4054_vm1, %v8613_v34, 0.0  ;;  %s6079_s22 = scalar_lea.vmem %s9410_s2, 4096  ;;  %p6086_p9 = scmp.lt.s32.totalorder %s9410_s2, %s6084_s26 }
 0x676   : > { %p6080_p4 = scmp.ne.s32.totalorder %s9410_s2, %s6079_s22  ;;  %p6087_p8 = scmp.lt.s32.totalorder %s6085_s17, %s6079_s22 }
 0x677   : > { %v4117_v60 = vadd.f32 %v4116_v7, %v4115_v50 }
 0x678   : > { %p6081_p5 = pnand %p6080_p4, %p9762_p10  ;;  %p6088_p11 = por %p6087_p8, %p6086_p9 }
 0x679   : > { %v4118_v9 = vrot.slane %v4117_v60, 4 }
 0x67a   : > { %p6082_p7 = pneg %p6081_p5 }
 0x67b   : > { %5500 = vmatmul.mubr.msk.bf16.gmra.mrb[80].mxu1 %vm1813_vm13, %v2983_v27  ;;  %v4119_v39 = vadd.f32 %v4118_v9, %v4117_v60 }
 0x67c   : > { %5503 = vmatprep.mubr.msk.bf16.mxu1 %vm1813_vm13, %v2988_v17  ;;  %p6089_p3 = pnand %p6088_p11, %p6082_p7 }
 0x67d   : > { %v4120_v29 = vrot.slane %v4119_v39, 2 }
 0x67f   : > { %v4121_v25 = vadd.f32 %v4120_v29, %v4119_v39 }
 0x681   : > { %v4122_v27 = vrot.slane %v4121_v25, 1 }
 0x683   : > { %5504 = vmatmul.mubr.msk.bf16.gmra.mrb[84].mxu1 %vm1813_vm13, %v2993_v21  ;;  %v4123_v12 = vadd.f32 %v4122_v27, %v4121_v25 }
 0x684   : > { %5507 = vmatprep.mubr.msk.bf16.mxu1 %vm1813_vm13, %v2998_v45 }
 0x685   : > { %v8617_v17 = vmul.f32 0.00390625, %v4123_v12 }
 0x687   : > { %v8621_v58 = vsub.f32 %v8442_v26, %v8617_v17  ;;  %v8625_v28 = vsub.f32 %v8445_v38, %v8617_v17  ;;  %v8629_v49 = vsub.f32 %v8452_v46, %v8617_v17  ;;  %v8637_v11 = vsub.f32 %v8458_v37, %v8617_v17 }
 0x688   : > { %v8645_v46 = vsub.f32 %v8463_v43, %v8617_v17  ;;  %v8652_v37 = vsub.f32 %v8468_v22, %v8617_v17  ;;  %v8659_v43 = vsub.f32 %v8474_v35, %v8617_v17  ;;  %v8666_v22 = vsub.f32 %v8481_v56, %v8617_v17 }
 0x689   : > { %v4157_v31 = vmul.f32 %v8621_v58, %v8621_v58  ;;  %v4158_v14 = vmul.f32 %v8625_v28, %v8625_v28  ;;  %v4159_v26 = vmul.f32 %v8629_v49, %v8629_v49  ;;  %v4160_v20 = vmul.f32 %v8637_v11, %v8637_v11 }
 0x68a   : > { %v4161_v10 = vmul.f32 %v8645_v46, %v8645_v46  ;;  %v4162_v55 = vmul.f32 %v8652_v37, %v8652_v37  ;;  %v4163_v33 = vmul.f32 %v8659_v43, %v8659_v43  ;;  %v8673_v35 = vsub.f32 %v8486_v32, %v8617_v17 }
 0x68b   : > { %5508 = vmatmul.mubr.msk.bf16.gmra.mrb[88].mxu1 %vm1813_vm13, %v3003_v41  ;;  %v4189_v38 = vsel %vm4054_vm1, %v4157_v31, 0.0  ;;  %v4190_v5 = vsel %vm4054_vm1, %v4158_v14, 0.0  ;;  %v4192_v45 = vsel %vm4054_vm1, %v4159_v26, 0.0  ;;  %v4194_v1 = vsel %vm4054_vm1, %v4160_v20, 0.0 }
 0x68c   : > { %v4191_v21 = vadd.f32 %v4190_v5, %v4189_v38  ;;  %v4196_v41 = vsel %vm4054_vm1, %v4161_v10, 0.0  ;;  %v4198_v23 = vsel %vm4054_vm1, %v4162_v55, 0.0  ;;  %v4164_v0 = vmul.f32 %v8666_v22, %v8666_v22 }
 0x68d   : > { %v4200_v63 = vsel %vm4054_vm1, %v4163_v33, 0.0  ;;  %v8680_v39 = vsub.f32 %v8491_v16, %v8617_v17  ;;  %v4165_v29 = vmul.f32 %v8673_v35, %v8673_v35  ;;  %v8687_v12 = vsub.f32 %v8498_v36, %v8617_v17  ;;  %v8692_v16 = vld [vmem:[#allocation17] ss:$0 sm:$0xff] }
 0x68e   : > { %v4193_v51 = vadd.f32 %v4192_v45, %v4191_v21  ;;  %v4202_v32 = vsel %vm4054_vm1, %v4164_v0, 0.0 }
 0x68f   : > { %v4166_v26 = vmul.f32 %v8680_v39, %v8680_v39  ;;  %v4204_v38 = vsel %vm4054_vm1, %v4165_v29, 0.0  ;;  %v4167_v36 = vmul.f32 %v8687_v12, %v8687_v12 }
 0x690   : > { %v4195_v15 = vadd.f32 %v4194_v1, %v4193_v51  ;;  %v8696_v1 = vsub.f32 %v8504_v44, %v8617_v17 }
 0x691   : > { %v4208_v29 = vsel %vm4054_vm1, %v4167_v36, 0.0 }
 0x692   : > { %v4197_v61 = vadd.f32 %v4196_v41, %v4195_v15 }
 0x694   : > { %v4199_v24 = vadd.f32 %v4198_v23, %v4197_v61  ;;  %v4206_v23 = vsel %vm4054_vm1, %v4166_v26, 0.0 }
 0x696   : > { %v4201_v60 = vadd.f32 %v4200_v63, %v4199_v24 }
 0x698   : > { %v4203_v31 = vadd.f32 %v4202_v32, %v4201_v60 }
 0x69a   : > { %v4205_v15 = vadd.f32 %v4204_v38, %v4203_v31 }
 0x69c   : > { %v4207_v44 = vadd.f32 %v4206_v23, %v4205_v15 }
 0x6b0   : > { %v5293_v50 = vpop.f32.mrb[32].mxu0 }
 0x6b1   : > { %v5294_v7 = vpop.f32.mrb[33].mxu0 }
 0x6b2   : > { %v5295_v56 = vadd.f32 %v5294_v7, %v5293_v50  ;;  %v5296_v9 = vpop.f32.mrb[34].mxu0  ;;  %v8705_v50 = vsub.f32 %v8509_v3, %v8617_v17  ;;  %v8716_v3 = vsub.f32 %v8514_v54, %v8617_v17  ;;  %v8726_v54 = vsub.f32 %v8521_v4, %v8617_v17 }
 0x6b3   : > { %v5297_v25 = vpop.f32.mrb[35].mxu0 }
 0x6b4   : > { %v5298_v27 = vadd.f32 %v5297_v25, %v5296_v9  ;;  %v4168_v9 = vmul.f32 %v8696_v1, %v8696_v1  ;;  %9720 = vst [vmem:[#allocation31_spill] sm:$0xff] %v8716_v3  ;;  %v4170_v23 = vmul.f32 %v8716_v3, %v8716_v3 }
 0x6b6   : > { %v5181_v14 = vpop.f32.mrb[4].mxu1  ;;  %v4214_v4 = vsel %vm4054_vm1, %v4170_v23, 0.0  ;;  %v8744_v23 = vsub.f32 %v8531_v52, %v8617_v17 }
 0x6b7   : > { %v5182_v5 = vpop.f32.mrb[5].mxu1 }
 0x6b8   : > { %v5183_v21 = vadd.f32 %v5182_v5, %v5181_v14  ;;  %v5299_v20 = vpop.f32.mrb[36].mxu0  ;;  %v5184_v45 = vpop.f32.mrb[6].mxu1  ;;  %9721 = vst [vmem:[#allocation32_spill] sm:$0xff] %v8744_v23 }
 0x6b9   : > { %v5300_v51 = vpop.f32.mrb[37].mxu0  ;;  %v5185_v10 = vpop.f32.mrb[7].mxu1 }
 0x6ba   : > { %v3382_v55 = vadd.f32 %v5183_v21, %v8692_v16  ;;  %v5301_v41 = vadd.f32 %v5300_v51, %v5299_v20  ;;  %v5186_v61 = vadd.f32 %v5185_v10, %v5184_v45  ;;  %v5302_v33 = vpop.f32.mrb[38].mxu0  ;;  %v4209_v21 = vadd.f32 %v4208_v29, %v4207_v44 }
 0x6bb   : > { %v5303_v24 = vpop.f32.mrb[39].mxu0  ;;  %v4210_v10 = vsel %vm4054_vm1, %v4168_v9, 0.0 }
 0x6bc   : > { %v3385_v0 = vadd.f32 %v5186_v61, %v8692_v16  ;;  %v5304_v63 = vadd.f32 %v5303_v24, %v5302_v33  ;;  %v8707_v7 = vadd.f32 %v5295_v56, %v3382_v55  ;;  %v4169_v56 = vmul.f32 %v8705_v50, %v8705_v50 }
 0x6bd   : > { %v4211_v61 = vadd.f32 %v4210_v10, %v4209_v21  ;;  %v8736_v21 = vsub.f32 %v8526_v57, %v8617_v17 }
 0x6be   : > { %v5187_v60 = vpop.f32.mrb[8].mxu1  ;;  %v8712_v32 = vadd.f32 %v5298_v27, %v3385_v0  ;;  %v4212_v24 = vsel %vm4054_vm1, %v4169_v56, 0.0 }
 0x6bf   : > { %v5188_v25 = vpop.f32.mrb[9].mxu1  ;;  %v4172_v57 = vmul.f32 %v8736_v21, %v8736_v21 }
 0x6c0   : > { %v5189_v31 = vadd.f32 %v5188_v25, %v5187_v60  ;;  %v5305_v14 = vpop.f32.mrb[40].mxu0  ;;  %v5190_v26 = vpop.f32.mrb[10].mxu1 }
 0x6c1   : > { %v5306_v38 = vpop.f32.mrb[41].mxu0  ;;  %v5191_v5 = vpop.f32.mrb[11].mxu1 }
 0x6c2   : > { %v3390_v20 = vadd.f32 %v5189_v31, %v8692_v16  ;;  %v5307_v45 = vadd.f32 %v5306_v38, %v5305_v14  ;;  %v5192_v51 = vadd.f32 %v5191_v5, %v5190_v26  ;;  %v5308_v27 = vpop.f32.mrb[42].mxu0  ;;  %v4213_v31 = vadd.f32 %v4212_v24, %v4211_v61 }
 0x6c3   : > { %v5309_v36 = vpop.f32.mrb[43].mxu0  ;;  %v4171_v38 = vmul.f32 %v8726_v54, %v8726_v54 }
 0x6c4   : > { %v5310_v15 = vadd.f32 %v5309_v36, %v5308_v27  ;;  %v8722_v55 = vadd.f32 %v5301_v41, %v3390_v20  ;;  %v3393_v20 = vadd.f32 %v5192_v51, %v8692_v16  ;;  %v4215_v10 = vadd.f32 %v4214_v4, %v4213_v31 }
 0x6c6   : > { %v5193_v33 = vpop.f32.mrb[12].mxu1 }
 0x6c7   : > { %v5194_v0 = vpop.f32.mrb[13].mxu1 }
 0x6c8   : > { %v5195_v44 = vadd.f32 %v5194_v0, %v5193_v33  ;;  %v5311_v60 = vpop.f32.mrb[44].mxu0  ;;  %v5196_v29 = vpop.f32.mrb[14].mxu1  ;;  %v4216_v33 = vsel %vm4054_vm1, %v4171_v38, 0.0 }
 0x6c9   : > { %v5312_v9 = vpop.f32.mrb[45].mxu0  ;;  %v5197_v25 = vpop.f32.mrb[15].mxu1 }
 0x6ca   : > { %v5313_v41 = vadd.f32 %v5312_v9, %v5311_v60  ;;  %v5198_v14 = vadd.f32 %v5197_v25, %v5196_v29  ;;  %v5314_v26 = vpop.f32.mrb[46].mxu0  ;;  %v3398_v27 = vadd.f32 %v5195_v44, %v8692_v16  ;;  %v4217_v44 = vadd.f32 %v4216_v33, %v4215_v10 }
 0x6cb   : > { %v5315_v5 = vpop.f32.mrb[47].mxu0  ;;  %v8748_v25 = vadd.f32 %v5304_v63, %v3393_v20  ;;  %v4218_v63 = vsel %vm4054_vm1, %v4172_v57, 0.0 }
 0x6cc   : > { %v5316_v56 = vadd.f32 %v5315_v5, %v5314_v26  ;;  %v3401_v36 = vadd.f32 %v5198_v14, %v8692_v16  ;;  %v8750_v31 = vadd.f32 %v5307_v45, %v3398_v27  ;;  %v4219_v33 = vadd.f32 %v4218_v63, %v4217_v44 }
 0x6ce   : > { %v5199_v61 = vpop.f32.mrb[16].mxu1  ;;  %v8753_v52 = vadd.f32 %v5310_v15, %v3401_v36  ;;  %v8769_v36 = vsub.f32 %v8543_v42, %v8617_v17  ;;  %v8777_v42 = vsub.f32 %v8548_v18, %v8617_v17 }
 0x6cf   : > { %v5200_v24 = vpop.f32.mrb[17].mxu1 }
 0x6d0   : > { %v5201_v0 = vadd.f32 %v5200_v24, %v5199_v61  ;;  %v5317_v60 = vpop.f32.mrb[48].mxu0  ;;  %v5202_v29 = vpop.f32.mrb[18].mxu1  ;;  %v8757_v61 = vsub.f32 %v8536_v30, %v8617_v17  ;;  %v4173_v24 = vmul.f32 %v8744_v23, %v8744_v23  ;;  %9723 = vst [vmem:[#allocation34_spill] sm:$0xff] %v8769_v36  ;;  %9724 = vst [vmem:[#allocation35_spill] sm:$0xff] %v8777_v42 }
 0x6d1   : > { %v5318_v51 = vpop.f32.mrb[49].mxu0  ;;  %v5203_v9 = vpop.f32.mrb[19].mxu1  ;;  %v4175_v63 = vmul.f32 %v8769_v36, %v8769_v36  ;;  %v4176_v18 = vmul.f32 %v8777_v42, %v8777_v42 }
 0x6d2   : > { %v3406_v14 = vadd.f32 %v5201_v0, %v8692_v16  ;;  %v5319_v26 = vadd.f32 %v5318_v51, %v5317_v60  ;;  %v5204_v38 = vadd.f32 %v5203_v9, %v5202_v29  ;;  %v5320_v4 = vpop.f32.mrb[50].mxu0  ;;  %9722 = vst [vmem:[#allocation33_spill] sm:$0xff] %v8757_v61  ;;  %v4174_v30 = vmul.f32 %v8757_v61, %v8757_v61 }
 0x6d3   : > { %v5321_v5 = vpop.f32.mrb[51].mxu0  ;;  %v4220_v60 = vsel %vm4054_vm1, %v4173_v24, 0.0 }
 0x6d4   : > { %v3409_v45 = vadd.f32 %v5204_v38, %v8692_v16  ;;  %v5322_v20 = vadd.f32 %v5321_v5, %v5320_v4  ;;  %v8763_v27 = vadd.f32 %v5313_v41, %v3406_v14  ;;  %v4221_v4 = vadd.f32 %v4220_v60, %v4219_v33 }
 0x6d5   : > { %v4222_v24 = vsel %vm4054_vm1, %v4174_v30, 0.0  ;;  %v8789_v60 = vsub.f32 %v8553_v40, %v8617_v17  ;;  %v8797_v40 = vsub.f32 %v8558_v19, %v8617_v17 }
 0x6d6   : > { %v5205_v10 = vpop.f32.mrb[20].mxu1  ;;  %v8765_v0 = vadd.f32 %v5316_v56, %v3409_v45 }
 0x6d7   : > { %v5206_v15 = vpop.f32.mrb[21].mxu1  ;;  %9725 = vst [vmem:[#allocation36_spill] sm:$0xff] %v8789_v60  ;;  %9726 = vst [vmem:[#allocation37_spill] sm:$0xff] %v8797_v40  ;;  %v4177_v61 = vmul.f32 %v8789_v60, %v8789_v60  ;;  %v4178_v19 = vmul.f32 %v8797_v40, %v8797_v40 }
 0x6d8   : > { %v5207_v57 = vadd.f32 %v5206_v15, %v5205_v10  ;;  %v5323_v29 = vpop.f32.mrb[52].mxu0  ;;  %v5208_v51 = vpop.f32.mrb[22].mxu1 }
 0x6d9   : > { %v5324_v9 = vpop.f32.mrb[53].mxu0  ;;  %v5209_v41 = vpop.f32.mrb[23].mxu1 }
 0x6da   : > { %v3414_v14 = vadd.f32 %v5207_v57, %v8692_v16  ;;  %v5325_v44 = vadd.f32 %v5324_v9, %v5323_v29  ;;  %v5210_v56 = vadd.f32 %v5209_v41, %v5208_v51  ;;  %v5326_v38 = vpop.f32.mrb[54].mxu0  ;;  %v4223_v29 = vadd.f32 %v4222_v24, %v4221_v4 }
 0x6db   : > { %v5327_v5 = vpop.f32.mrb[55].mxu0  ;;  %v4224_v9 = vsel %vm4054_vm1, %v4175_v63, 0.0  ;;  %v4226_v63 = vsel %vm4054_vm1, %v4176_v18, 0.0 }
 0x6dc   : > { %v3417_v45 = vadd.f32 %v5210_v56, %v8692_v16  ;;  %v5328_v10 = vadd.f32 %v5327_v5, %v5326_v38  ;;  %v8783_v15 = vadd.f32 %v5319_v26, %v3414_v14  ;;  %v4225_v24 = vadd.f32 %v4224_v9, %v4223_v29 }
 0x6dd   : > { %v8809_v9 = vsub.f32 %v8565_v13, %v8617_v17  ;;  %v8817_v13 = vsub.f32 %v8570_v8, %v8617_v17 }
 0x6de   : > { %v5211_v57 = vpop.f32.mrb[24].mxu1  ;;  %v8785_v51 = vadd.f32 %v5322_v20, %v3417_v45 }
 0x6df   : > { %v5212_v33 = vpop.f32.mrb[25].mxu1  ;;  %9727 = vst [vmem:[#allocation38_spill] sm:$0xff] %v8809_v9  ;;  %9728 = vst [vmem:[#allocation39_spill] sm:$0xff] %v8817_v13  ;;  %v4179_v40 = vmul.f32 %v8809_v9, %v8809_v9  ;;  %v4180_v8 = vmul.f32 %v8817_v13, %v8817_v13 }
 0x6e0   : > { %v5213_v30 = vadd.f32 %v5212_v33, %v5211_v57  ;;  %v5329_v41 = vpop.f32.mrb[56].mxu0  ;;  %v5214_v56 = vpop.f32.mrb[26].mxu1 }
 0x6e1   : > { %v5330_v38 = vpop.f32.mrb[57].mxu0  ;;  %v5215_v26 = vpop.f32.mrb[27].mxu1 }
 0x6e2   : > { %v3422_v14 = vadd.f32 %v5213_v30, %v8692_v16  ;;  %v5331_v4 = vadd.f32 %v5330_v38, %v5329_v41  ;;  %v5216_v20 = vadd.f32 %v5215_v26, %v5214_v56  ;;  %v5332_v5 = vpop.f32.mrb[58].mxu0  ;;  %v4227_v41 = vadd.f32 %v4226_v63, %v4225_v24 }
 0x6e3   : > { %v5333_v45 = vpop.f32.mrb[59].mxu0  ;;  %v4228_v38 = vsel %vm4054_vm1, %v4177_v61, 0.0  ;;  %v4230_v61 = vsel %vm4054_vm1, %v4178_v19, 0.0 }
 0x6e4   : > { %v3425_v57 = vadd.f32 %v5216_v20, %v8692_v16  ;;  %v5334_v33 = vadd.f32 %v5333_v45, %v5332_v5  ;;  %v8803_v42 = vadd.f32 %v5325_v44, %v3422_v14  ;;  %v4229_v63 = vadd.f32 %v4228_v38, %v4227_v41 }
 0x6e5   : > { %v8829_v38 = vsub.f32 %v8575_v6, %v8617_v17  ;;  %v8837_v6 = vsub.f32 %v8580_v62, %v8617_v17 }
 0x6e6   : > { %v5217_v30 = vpop.f32.mrb[28].mxu1  ;;  %v8805_v56 = vadd.f32 %v5328_v10, %v3425_v57 }
 0x6e7   : > { %v5218_v29 = vpop.f32.mrb[29].mxu1  ;;  %9729 = vst [vmem:[#allocation40_spill] sm:$0xff] %v8829_v38  ;;  %9730 = vst [vmem:[#allocation41_spill] sm:$0xff] %v8837_v6  ;;  %v4181_v13 = vmul.f32 %v8829_v38, %v8829_v38  ;;  %v4182_v62 = vmul.f32 %v8837_v6, %v8837_v6 }
 0x6e8   : > { %v5219_v18 = vadd.f32 %v5218_v29, %v5217_v30  ;;  %v5335_v26 = vpop.f32.mrb[60].mxu0  ;;  %v5220_v20 = vpop.f32.mrb[30].mxu1 }
 0x6e9   : > { %v5336_v5 = vpop.f32.mrb[61].mxu0  ;;  %v5221_v44 = vpop.f32.mrb[31].mxu1 }
 0x6ea   : > { %v3430_v14 = vadd.f32 %v5219_v18, %v8692_v16  ;;  %v5337_v24 = vadd.f32 %v5336_v5, %v5335_v26  ;;  %v5222_v10 = vadd.f32 %v5221_v44, %v5220_v20  ;;  %v5338_v45 = vpop.f32.mrb[62].mxu0  ;;  %v4231_v26 = vadd.f32 %v4230_v61, %v4229_v63 }
 0x6eb   : > { %v5339_v57 = vpop.f32.mrb[63].mxu0  ;;  %v4232_v5 = vsel %vm4054_vm1, %v4179_v40, 0.0  ;;  %v4234_v40 = vsel %vm4054_vm1, %v4180_v8, 0.0 }
 0x6ec   : > { %v3433_v30 = vadd.f32 %v5222_v10, %v8692_v16  ;;  %v5340_v29 = vadd.f32 %v5339_v57, %v5338_v45  ;;  %v8823_v60 = vadd.f32 %v5331_v4, %v3430_v14  ;;  %v4233_v61 = vadd.f32 %v4232_v5, %v4231_v26 }
 0x6ed   : > { %v8849_v5 = vsub.f32 %v8587_v47, %v8617_v17  ;;  %v8857_v47 = vsub.f32 %v8592_v59, %v8617_v17 }
 0x6ee   : > { %v5223_v18 = vpop.f32.mrb[32].mxu1  ;;  %v8825_v20 = vadd.f32 %v5334_v33, %v3433_v30 }
 0x6ef   : > { %v5224_v41 = vpop.f32.mrb[33].mxu1  ;;  %9731 = vst [vmem:[#allocation42_spill] sm:$0xff] %v8849_v5  ;;  %9732 = vst [vmem:[#allocation43_spill] sm:$0xff] %v8857_v47  ;;  %v4183_v6 = vmul.f32 %v8849_v5, %v8849_v5  ;;  %v4184_v59 = vmul.f32 %v8857_v47, %v8857_v47 }
 0x6f0   : > { %v5225_v19 = vadd.f32 %v5224_v41, %v5223_v18  ;;  %v5341_v44 = vpop.f32.mrb[64].mxu0  ;;  %v5226_v10 = vpop.f32.mrb[34].mxu1 }
 0x6f1   : > { %v5342_v45 = vpop.f32.mrb[65].mxu0  ;;  %v5227_v4 = vpop.f32.mrb[35].mxu1 }
 0x6f2   : > { %v3438_v14 = vadd.f32 %v5225_v19, %v8692_v16  ;;  %v5343_v63 = vadd.f32 %v5342_v45, %v5341_v44  ;;  %v5228_v33 = vadd.f32 %v5227_v4, %v5226_v10  ;;  %v5344_v57 = vpop.f32.mrb[66].mxu0  ;;  %v4235_v44 = vadd.f32 %v4234_v40, %v4233_v61 }
 0x6f3   : > { %v5345_v30 = vpop.f32.mrb[67].mxu0  ;;  %v4236_v45 = vsel %vm4054_vm1, %v4181_v13, 0.0  ;;  %v4238_v13 = vsel %vm4054_vm1, %v4182_v62, 0.0 }
 0x6f4   : > { %v3441_v18 = vadd.f32 %v5228_v33, %v8692_v16  ;;  %v5346_v41 = vadd.f32 %v5345_v30, %v5344_v57  ;;  %v8843_v9 = vadd.f32 %v5337_v24, %v3438_v14  ;;  %v4237_v40 = vadd.f32 %v4236_v45, %v4235_v44 }
 0x6f5   : > { %v8869_v45 = vsub.f32 %v8597_v2, %v8617_v17  ;;  %v8877_v2 = vsub.f32 %v8602_v53, %v8617_v17 }
 0x6f6   : > { %v5229_v19 = vpop.f32.mrb[36].mxu1  ;;  %v8845_v10 = vadd.f32 %v5340_v29, %v3441_v18 }
 0x6f7   : > { %v5230_v26 = vpop.f32.mrb[37].mxu1  ;;  %9733 = vst [vmem:[#allocation44_spill] sm:$0xff] %v8869_v45  ;;  %9734 = vst [vmem:[#allocation45_spill] sm:$0xff] %v8877_v2  ;;  %v4185_v47 = vmul.f32 %v8869_v45, %v8869_v45  ;;  %v4186_v53 = vmul.f32 %v8877_v2, %v8877_v2 }
 0x6f8   : > { %v5231_v8 = vadd.f32 %v5230_v26, %v5229_v19  ;;  %v5347_v4 = vpop.f32.mrb[68].mxu0  ;;  %v5232_v33 = vpop.f32.mrb[38].mxu1 }
 0x6f9   : > { %v5348_v57 = vpop.f32.mrb[69].mxu0  ;;  %v5233_v24 = vpop.f32.mrb[39].mxu1 }
 0x6fa   : > { %v3446_v14 = vadd.f32 %v5231_v8, %v8692_v16  ;;  %v5349_v61 = vadd.f32 %v5348_v57, %v5347_v4  ;;  %v5234_v29 = vadd.f32 %v5233_v24, %v5232_v33  ;;  %v5350_v30 = vpop.f32.mrb[70].mxu0  ;;  %v4239_v4 = vadd.f32 %v4238_v13, %v4237_v40 }
 0x6fb   : > { %v5351_v18 = vpop.f32.mrb[71].mxu0  ;;  %v4240_v57 = vsel %vm4054_vm1, %v4183_v6, 0.0  ;;  %v4242_v6 = vsel %vm4054_vm1, %v4184_v59, 0.0 }
 0x6fc   : > { %v3449_v19 = vadd.f32 %v5234_v29, %v8692_v16  ;;  %v5352_v26 = vadd.f32 %v5351_v18, %v5350_v30  ;;  %v8863_v38 = vadd.f32 %v5343_v63, %v3446_v14  ;;  %v4241_v13 = vadd.f32 %v4240_v57, %v4239_v4 }
 0x6fd   : > { %v8889_v57 = vsub.f32 %v8608_v48, %v8617_v17  ;;  %v8897_v48 = vsub.f32 %v8613_v34, %v8617_v17 }
 0x6fe   : > { %v5235_v8 = vpop.f32.mrb[40].mxu1  ;;  %v8865_v33 = vadd.f32 %v5346_v41, %v3449_v19 }
 0x6ff   : > { %v5236_v44 = vpop.f32.mrb[41].mxu1  ;;  %9735 = vst [vmem:[#allocation46_spill] sm:$0xff] %v8889_v57  ;;  %9736 = vst [vmem:[#allocation47_spill] sm:$0xff] %v8897_v48  ;;  %v4187_v2 = vmul.f32 %v8889_v57, %v8889_v57 }
 0x700   : > { %v5237_v62 = vadd.f32 %v5236_v44, %v5235_v8  ;;  %v5353_v24 = vpop.f32.mrb[72].mxu0  ;;  %v5238_v29 = vpop.f32.mrb[42].mxu1 }
 0x701   : > { %v5354_v30 = vpop.f32.mrb[73].mxu0  ;;  %v5239_v63 = vpop.f32.mrb[43].mxu1 }
 0x702   : > { %v3454_v14 = vadd.f32 %v5237_v62, %v8692_v16  ;;  %v5355_v40 = vadd.f32 %v5354_v30, %v5353_v24  ;;  %v5240_v41 = vadd.f32 %v5239_v63, %v5238_v29  ;;  %v5356_v18 = vpop.f32.mrb[74].mxu0  ;;  %v4243_v24 = vadd.f32 %v4242_v6, %v4241_v13 }
 0x703   : > { %v5357_v19 = vpop.f32.mrb[75].mxu0  ;;  %v4244_v30 = vsel %vm4054_vm1, %v4185_v47, 0.0  ;;  %v4246_v47 = vsel %vm4054_vm1, %v4186_v53, 0.0 }
 0x704   : > { %v3457_v8 = vadd.f32 %v5240_v41, %v8692_v16  ;;  %v5358_v44 = vadd.f32 %v5357_v19, %v5356_v18  ;;  %v8883_v5 = vadd.f32 %v5349_v61, %v3454_v14  ;;  %v4245_v6 = vadd.f32 %v4244_v30, %v4243_v24 }
 0x705   : > { %v4188_v24 = vmul.f32 %v8897_v48, %v8897_v48  ;;  %v4248_v30 = vsel %vm4054_vm1, %v4187_v2, 0.0 }
 0x706   : > { %v5241_v62 = vpop.f32.mrb[44].mxu1  ;;  %v8885_v29 = vadd.f32 %v5352_v26, %v3457_v8  ;;  %v4247_v23 = vadd.f32 %v4246_v47, %v4245_v6 }
 0x707   : > { %v5242_v4 = vpop.f32.mrb[45].mxu1  ;;  %v4250_v47 = vsel %vm4054_vm1, %v4188_v24, 0.0 }
 0x708   : > { %v5243_v59 = vadd.f32 %v5242_v4, %v5241_v62  ;;  %v5359_v63 = vpop.f32.mrb[76].mxu0  ;;  %v5244_v41 = vpop.f32.mrb[46].mxu1 }
 0x709   : > { %v5360_v18 = vpop.f32.mrb[77].mxu0  ;;  %v5245_v61 = vpop.f32.mrb[47].mxu1 }
 0x70a   : > { %v3462_v14 = vadd.f32 %v5243_v59, %v8692_v16  ;;  %v5361_v13 = vadd.f32 %v5360_v18, %v5359_v63  ;;  %v5246_v26 = vadd.f32 %v5245_v61, %v5244_v41  ;;  %v5362_v19 = vpop.f32.mrb[78].mxu0 }
 0x70b   : > { %v5363_v8 = vpop.f32.mrb[79].mxu0 }
 0x70c   : > { %v3465_v62 = vadd.f32 %v5246_v26, %v8692_v16  ;;  %v5364_v4 = vadd.f32 %v5363_v8, %v5362_v19  ;;  %v8903_v59 = vadd.f32 %v5355_v40, %v3462_v14  ;;  %v4249_v40 = vadd.f32 %v4248_v30, %v4247_v23 }
 0x70e   : > { %v5247_v45 = vpop.f32.mrb[48].mxu1  ;;  %v8908_v34 = vadd.f32 %v5358_v44, %v3465_v62 }
 0x70f   : > { %v5248_v63 = vpop.f32.mrb[49].mxu1 }
 0x710   : > { %9737 = vst [vmem:[#allocation48_spill] sm:$0xff] %v8908_v34  ;;  %v5249_v17 = vadd.f32 %v5248_v63, %v5247_v45  ;;  %v5365_v41 = vpop.f32.mrb[80].mxu0  ;;  %v5250_v18 = vpop.f32.mrb[50].mxu1  ;;  %v4251_v45 = vadd.f32 %v4250_v47, %v4249_v40 }
 0x711   : > { %v5366_v61 = vpop.f32.mrb[81].mxu0  ;;  %v5251_v53 = vpop.f32.mrb[51].mxu1 }
 0x712   : > { %v3470_v26 = vadd.f32 %v5249_v17, %v8692_v16  ;;  %v5367_v19 = vadd.f32 %v5366_v61, %v5365_v41  ;;  %v5252_v8 = vadd.f32 %v5251_v53, %v5250_v18  ;;  %v5368_v6 = vpop.f32.mrb[82].mxu0  ;;  %v4252_v53 = vrot.slane %v4251_v45, 4 }
 0x713   : > { %v5369_v14 = vpop.f32.mrb[83].mxu0 }
 0x714   : > { %v3473_v48 = vadd.f32 %v5252_v8, %v8692_v16  ;;  %v5370_v57 = vadd.f32 %v5369_v14, %v5368_v6  ;;  %v8913_v2 = vadd.f32 %v5361_v13, %v3470_v26 }
 0x716   : > { %v5253_v44 = vpop.f32.mrb[52].mxu1  ;;  %v8915_v62 = vadd.f32 %v5364_v4, %v3473_v48  ;;  %v4253_v4 = vadd.f32 %v4252_v53, %v4251_v45 }
 0x717   : > { %v5254_v63 = vpop.f32.mrb[53].mxu1 }
 0x718   : > { %9738 = vst [vmem:[#allocation49_spill] sm:$0xff] %v8915_v62  ;;  %v5255_v36 = vadd.f32 %v5254_v63, %v5253_v44  ;;  %v5371_v3 = vpop.f32.mrb[84].mxu0  ;;  %v5256_v17 = vpop.f32.mrb[54].mxu1  ;;  %v4254_v62 = vrot.slane %v4253_v4, 2 }
 0x719   : > { %v5372_v41 = vpop.f32.mrb[85].mxu0  ;;  %v5257_v18 = vpop.f32.mrb[55].mxu1 }
 0x71a   : > { %v3478_v23 = vadd.f32 %v5255_v36, %v8692_v16  ;;  %v5373_v30 = vadd.f32 %v5372_v41, %v5371_v3  ;;  %v5258_v61 = vadd.f32 %v5257_v18, %v5256_v17  ;;  %v5374_v24 = vpop.f32.mrb[86].mxu0  ;;  %v4255_v45 = vadd.f32 %v4254_v62, %v4253_v4 }
 0x71b   : > { %v5375_v8 = vpop.f32.mrb[87].mxu0 }
 0x71c   : > { %v3481_v13 = vadd.f32 %v5258_v61, %v8692_v16  ;;  %v5376_v26 = vadd.f32 %v5375_v8, %v5374_v24  ;;  %v8919_v6 = vadd.f32 %v5367_v19, %v3478_v23 }
 0x71e   : > { %9739 = vst [vmem:[#allocation50_spill] sm:$0xff] %v8919_v6  ;;  %v5259_v48 = vpop.f32.mrb[56].mxu1  ;;  %v8921_v40 = vadd.f32 %v5370_v57, %v3481_v13  ;;  %v4256_v6 = vrot.slane %v4255_v45, 1 }
 0x71f   : > { %v5260_v14 = vpop.f32.mrb[57].mxu1 }
 0x720   : > { %9740 = vst [vmem:[#allocation51_spill] sm:$0xff] %v8921_v40  ;;  %v5261_v47 = vadd.f32 %v5260_v14, %v5259_v48  ;;  %v5377_v44 = vpop.f32.mrb[88].mxu0  ;;  %v5262_v63 = vpop.f32.mrb[58].mxu1 }
 0x721   : > { %v5378_v34 = vpop.f32.mrb[89].mxu0  ;;  %v5263_v36 = vpop.f32.mrb[59].mxu1 }
 0x722   : > { %v3486_v3 = vadd.f32 %v5261_v47, %v8692_v16  ;;  %v5379_v17 = vadd.f32 %v5378_v34, %v5377_v44  ;;  %v5264_v41 = vadd.f32 %v5263_v36, %v5262_v63  ;;  %v5380_v18 = vpop.f32.mrb[90].mxu0 }
 0x723   : > { %v5381_v61 = vpop.f32.mrb[91].mxu0 }
 0x724   : > { %v3489_v19 = vadd.f32 %v5264_v41, %v8692_v16  ;;  %v5382_v23 = vadd.f32 %v5381_v61, %v5380_v18  ;;  %v8925_v24 = vadd.f32 %v5373_v30, %v3486_v3 }
 0x726   : > { %v5265_v57 = vpop.f32.mrb[60].mxu1  ;;  %v8927_v53 = vadd.f32 %v5376_v26, %v3489_v19  ;;  %v4257_v26 = vadd.f32 %v4256_v6, %v4255_v45 }
 0x727   : > { %v5266_v8 = vpop.f32.mrb[61].mxu1 }
 0x728   : > { %v5267_v13 = vadd.f32 %v5266_v8, %v5265_v57  ;;  %v5383_v48 = vpop.f32.mrb[92].mxu0  ;;  %v5268_v14 = vpop.f32.mrb[62].mxu1 }
 0x729   : > { %v5384_v40 = vpop.f32.mrb[93].mxu0  ;;  %v5269_v47 = vpop.f32.mrb[63].mxu1 }
 0x72a   : > { %v3494_v34 = vadd.f32 %v5267_v13, %v8692_v16  ;;  %v5385_v44 = vadd.f32 %v5384_v40, %v5383_v48  ;;  %v5270_v63 = vadd.f32 %v5269_v47, %v5268_v14  ;;  %v5386_v36 = vpop.f32.mrb[94].mxu0  ;;  %v4258_v47 = vmul.f32 0.00390625, %v4257_v26 }
 0x72b   : > { %v5387_v41 = vpop.f32.mrb[95].mxu0 }
 0x72c   : > { %v3497_v30 = vadd.f32 %v5270_v63, %v8692_v16  ;;  %v5388_v3 = vadd.f32 %v5387_v41, %v5386_v36  ;;  %v8931_v18 = vadd.f32 %v5379_v17, %v3494_v34 }
 0x72e   : > { %v5271_v62 = vpop.f32.mrb[64].mxu1  ;;  %v8933_v4 = vadd.f32 %v5382_v23, %v3497_v30 }
 0x72f   : > { %v5272_v61 = vpop.f32.mrb[65].mxu1 }
 0x730   : > { %v5273_v19 = vadd.f32 %v5272_v61, %v5271_v62  ;;  %v5481_v57 = vpop.f32.mrb[96].mxu0  ;;  %v5274_v8 = vpop.f32.mrb[66].mxu1  ;;  %v4259_v62 = vadd.f32 1e-05, %v4258_v47 }
 0x731   : > { %v8936_v13 = vadd.f32 %v5481_v57, %v8722_v55  ;;  %v3703_v40 = vpop.f32.mrb[97].mxu0  ;;  %v5275_v48 = vpop.f32.mrb[67].mxu1 }
 0x732   : > { %v3502_v14 = vadd.f32 %v5273_v19, %v8692_v16  ;;  %v8940_v63 = vadd.f32 %v3703_v40, %v8707_v7  ;;  %v5276_v17 = vadd.f32 %v5275_v48, %v5274_v8  ;;  %v5482_v34 = vpop.f32.mrb[98].mxu0 }
 0x733   : > { %v5092_v6 = vmul.f32 -1.442695, %v8936_v13  ;;  %v8944_v23 = vadd.f32 %v5482_v34, %v8748_v25  ;;  %v3706_v45 = vpop.f32.mrb[99].mxu0 }
 0x734   : > { %v5090_v36 = vmul.f32 -1.442695, %v8940_v63  ;;  %v3505_v55 = vadd.f32 %v5276_v17, %v8692_v16  ;;  %v8949_v41 = vadd.f32 %v3706_v45, %v8712_v32  ;;  %v8951_v30 = vadd.f32 %v5385_v44, %v3502_v14 }
 0x735   : > { %5718 = vpow2.f32 %v5092_v6  ;;  %v5093_v7 = vmul.f32 -1.442695, %v8944_v23 }
 0x736   : > { %5720 = vpow2.f32 %v5090_v36  ;;  %v5091_v26 = vmul.f32 -1.442695, %v8949_v41  ;;  %v5489_v61 = vpop.f32.mrb[68].mxu1  ;;  %v8955_v25 = vadd.f32 %v5388_v3, %v3505_v55 }
 0x737   : > { %5722 = vpow2.f32 %v5093_v7  ;;  %v3744_v19 = vadd.f32 %v5489_v61, %v8803_v42  ;;  %v3735_v57 = vpop.f32.mrb[69].mxu1 }
 0x738   : > { %5724 = vpow2.f32 %v5091_v26  ;;  %v5485_v16 = vpop.f32.mrb[100].mxu0  ;;  %v3736_v32 = vadd.f32 %v3735_v57, %v8783_v15  ;;  %v5490_v44 = vpop.f32.mrb[70].mxu1 }
 0x739   : > { %v5100_v8 = vmul.f32 -1.442695, %v3744_v19  ;;  %v8960_v40 = vadd.f32 %v5485_v16, %v8763_v27  ;;  %v3719_v48 = vpop.f32.mrb[101].mxu0  ;;  %v3747_v14 = vadd.f32 %v5490_v44, %v8805_v56  ;;  %v3738_v47 = vpop.f32.mrb[71].mxu1  ;;  %4441 = vrot.lane.b32.xlu0 %v3744_v19, %s6251_s9  ;;  %5726 = vrsqrt.f32 %v4259_v62 }
 0x73a   : > { %v5098_v3 = vmul.f32 -1.442695, %v3736_v32  ;;  %v8965_v42 = vadd.f32 %v3719_v48, %v8750_v31  ;;  %v5486_v17 = vpop.f32.mrb[102].mxu0  ;;  %v3739_v15 = vadd.f32 %v3738_v47, %v8785_v51 }
 0x73b   : > { %5728 = vpow2.f32 %v5100_v8  ;;  %v5096_v34 = vmul.f32 -1.442695, %v8960_v40  ;;  %v5101_v27 = vmul.f32 -1.442695, %v3747_v14  ;;  %v8970_v6 = vadd.f32 %v5486_v17, %v8765_v0  ;;  %v3722_v56 = vpop.f32.mrb[103].mxu0  ;;  %4443 = vrot.lane.b32.xlu1 %v3747_v14, %s6251_s9 }
 0x73c   : > { %5730 = vpow2.f32 %v5098_v3  ;;  %v5094_v45 = vmul.f32 -1.442695, %v8965_v42  ;;  %v8975_v36 = vadd.f32 %v3722_v56, %v8753_v52  ;;  %v5099_v51 = vmul.f32 -1.442695, %v3739_v15 }
 0x73d   : > { %5732 = vpow2.f32 %v5096_v34  ;;  %v5097_v31 = vmul.f32 -1.442695, %v8970_v6  ;;  %4437 = vrot.lane.b32.xlu0 %v3736_v32, %s6251_s9 }
 0x73e   : > { %5734 = vpow2.f32 %v5094_v45  ;;  %v5493_v55 = vpop.f32.mrb[72].mxu1  ;;  %v5095_v48 = vmul.f32 -1.442695, %v8975_v36 }
 0x73f   : > { %v5719_v7 = vpop.eup %5718  ;;  %5736 = vpow2.f32 %v5101_v27  ;;  %v3760_v0 = vadd.f32 %v5493_v55, %v8843_v9  ;;  %v3751_v62 = vpop.f32.mrb[73].mxu1  ;;  %4439 = vrot.lane.b32.xlu1 %v3739_v15, %s6251_s9 }
 0x740   : > { %v5721_v26 = vpop.eup %5720  ;;  %v3928_v61 = vadd.f32 1.0, %v5719_v7  ;;  %5738 = vpow2.f32 %v5097_v31  ;;  %v8982_v52 = vadd.f32 %v3751_v62, %v8823_v60  ;;  %v5494_v19 = vpop.f32.mrb[74].mxu1 }
 0x741   : > { %v5723_v57 = vpop.eup %5722  ;;  %v3926_v16 = vadd.f32 1.0, %v5721_v26  ;;  %5740 = vpow2.f32 %v5099_v51  ;;  %v3763_v32 = vadd.f32 %v5494_v19, %v8845_v10  ;;  %v3754_v44 = vpop.f32.mrb[75].mxu1  ;;  %4425 = vrot.lane.b32.xlu0 %v8936_v13, %s6251_s9  ;;  %v5104_v47 = vmul.f32 -1.442695, %v3760_v0 }
 0x742   : > { %v5725_v9 = vpop.eup %5724  ;;  %5742 = vrcp.f32 %v3928_v61  ;;  %v3929_v8 = vadd.f32 1.0, %v5723_v57  ;;  %v8989_v14 = vadd.f32 %v3754_v44, %v8825_v20 }
 0x743   : > { %5744 = vrcp.f32 %v3926_v16  ;;  %v3927_v60 = vadd.f32 1.0, %v5725_v9  ;;  %4427 = vrot.lane.b32.xlu1 %v8944_v23, %s6251_s9  ;;  %v8993_v3 = vpop.eup %5726 }
 0x744   : > { %5746 = vrcp.f32 %v3929_v8  ;;  %v4263_v55 = vmul.f32 %v8993_v3, %v8629_v49  ;;  %v4261_v26 = vmul.f32 %v8993_v3, %v8621_v58  ;;  %v4264_v49 = vmul.f32 %v8993_v3, %v8637_v11 }
 0x745   : > { %v5729_v10 = vpop.eup %5728  ;;  %5748 = vrcp.f32 %v3927_v60  ;;  %4421 = vrot.lane.b32.xlu0 %v8940_v63, %s6251_s9  ;;  %v4271_v58 = vmul.f32 %v8993_v3, %v8687_v12  ;;  %v9026_v11 = vmul.f32 %v8993_v3, %v8659_v43  ;;  %v5105_v8 = vmul.f32 -1.442695, %v3763_v32 }
 0x746   : > { %v5731_v13 = vpop.eup %5730  ;;  %v3936_v17 = vadd.f32 1.0, %v5729_v10  ;;  %5750 = vpow2.f32 %v5095_v48  ;;  %v5497_v15 = vpop.f32.mrb[76].mxu1  ;;  %v9034_v12 = vmul.f32 %v8993_v3, %v8645_v46 }
 0x747   : > { %v5733_v20 = vpop.eup %5732  ;;  %v3934_v34 = vadd.f32 1.0, %v5731_v13  ;;  %5752 = vpow2.f32 %v5104_v47  ;;  %v8998_v27 = vadd.f32 %v5497_v15, %v8883_v5  ;;  %v3767_v56 = vpop.f32.mrb[77].mxu1  ;;  %4423 = vrot.lane.b32.xlu1 %v8949_v41, %s6251_s9  ;;  %v9038_v47 = vmul.f32 %v8993_v3, %v8696_v1 }
 0x748   : > { %v5735_v23 = vpop.eup %5734  ;;  %5754 = vrcp.f32 %v3936_v17  ;;  %v3932_v45 = vadd.f32 1.0, %v5733_v20  ;;  %v9003_v31 = vadd.f32 %v3767_v56, %v8863_v38  ;;  %v5498_v63 = vpop.f32.mrb[78].mxu1  ;;  %v9057_v56 = vmul.f32 %v8993_v3, %v8666_v22 }
 0x749   : > { %v5737_v51 = vpop.eup %5736  ;;  %5756 = vrcp.f32 %v3934_v34  ;;  %v3930_v7 = vadd.f32 1.0, %v5735_v23  ;;  %v9008_v5 = vadd.f32 %v5498_v63, %v8885_v29  ;;  %v3770_v62 = vpop.f32.mrb[79].mxu1  ;;  %4449 = vrot.lane.b32.xlu0 %v3760_v0, %s6251_s9  ;;  %v4262_v29 = vmul.f32 %v8993_v3, %v8625_v28 }
 0x74a   : > { %v5739_v41 = vpop.eup %5738  ;;  %5758 = vrcp.f32 %v3932_v45  ;;  %v3937_v38 = vadd.f32 1.0, %v5737_v51  ;;  %v9014_v61 = vadd.f32 %v3770_v62, %v8865_v33  ;;  %v5102_v33 = vmul.f32 -1.442695, %v8982_v52 }
 0x74b   : > { %v5741_v19 = vpop.eup %5740  ;;  %5760 = vrcp.f32 %v3930_v7  ;;  %v3933_v57 = vadd.f32 1.0, %v5739_v41  ;;  %4451 = vrot.lane.b32.xlu1 %v3763_v32, %s6251_s9  ;;  %v4269_v28 = vmul.f32 %v8993_v3, %v8673_v35  ;;  %v9061_v23 = vmul.f32 %v8993_v3, %v8680_v39 }
 0x74c   : > { %v5743_v0 = vpop.eup %5742  ;;  %5762 = vrcp.f32 %v3937_v38  ;;  %v3935_v16 = vadd.f32 1.0, %v5741_v19  ;;  %v9071_v22 = vmul.f32 %v8993_v3, %v8652_v37 }
 0x74d   : > { %v5745_v44 = vpop.eup %5744  ;;  %v4295_v9 = vadd.f32 1.0, %v5743_v0  ;;  %4445 = vrot.lane.b32.xlu0 %v8982_v52, %s6251_s9  ;;  %5764 = vrcp.f32 %v3933_v57 }
 0x74e   : > { %v5747_v48 = vpop.eup %5746  ;;  %v4293_v60 = vadd.f32 1.0, %v5745_v44  ;;  %v5501_v43 = vpop.f32.mrb[80].mxu1  ;;  %5766 = vrcp.f32 %v3935_v16 }
 0x74f   : > { %v5749_v10 = vpop.eup %5748  ;;  %v4327_v13 = vmul.f32 %v4295_v9, %v4263_v55  ;;  %v4296_v35 = vadd.f32 1.0, %v5747_v48  ;;  %v9041_v32 = vadd.f32 %v5501_v43, %v8913_v2  ;;  %v3783_v52 = vpop.f32.mrb[81].mxu1  ;;  %4447 = vrot.lane.b32.xlu1 %v8989_v14, %s6251_s9  ;;  %5768 = vpow2.f32 %v5102_v33 }
 0x750   : > { %v5751_v46 = vpop.eup %5750  ;;  %v4325_v17 = vmul.f32 %v4293_v60, %v4261_v26  ;;  %v4294_v15 = vadd.f32 1.0, %v5749_v10  ;;  %v9046_v1 = vadd.f32 %v3783_v52, %v8903_v59  ;;  %v9048_v20 = vpop.f32.mrb[82].mxu1  ;;  %5770 = vpow2.f32 %v5105_v8 }
 0x751   : > { %v5753_v34 = vpop.eup %5752  ;;  %4359 = vst.msk [vmem:[%s9051_s27 + $0x10] sm:$0xff] %vm4054_vm1, %v4327_v13  ;;  %v4328_v2 = vmul.f32 %v4296_v35, %v4264_v49  ;;  %v9063_v59 = vpop.f32.mrb[83].mxu1  ;;  %4433 = vrot.lane.b32.xlu0 %v8960_v40, %s6251_s9  ;;  %v3931_v55 = vadd.f32 1.0, %v5751_v46  ;;  %v4552_v39 = vsel %vm4054_vm1, %v4327_v13, 0.0  ;;  %v4622_v62 = vmul.f32 %v4327_v13, %v4327_v13 }
 0x752   : > { %v5755_v45 = vpop.eup %5754  ;;  %4357 = vst.msk [vmem:[%s9051_s27] sm:$0xff] %vm4054_vm1, %v4325_v17  ;;  %v4620_v63 = vmul.f32 %v4325_v17, %v4325_v17  ;;  %v4326_v51 = vmul.f32 %v4294_v15, %v4262_v29  ;;  %v4549_v41 = vsel %vm4054_vm1, %v4325_v17, 0.0  ;;  %v9097_v10 = vmul.f32 %v8993_v3, %v8726_v54 }
 0x753   : > { %v5757_v7 = vpop.eup %5756  ;;  %4360 = vst.msk [vmem:[%s9051_s27 + $0x18] sm:$0xff] %vm4054_vm1, %v4328_v2  ;;  %v4303_v40 = vadd.f32 1.0, %v5755_v45  ;;  %4435 = vrot.lane.b32.xlu1 %v8970_v6, %s6251_s9  ;;  %v4623_v38 = vmul.f32 %v4328_v2, %v4328_v2  ;;  %5772 = vrcp.f32 %v3931_v55  ;;  %v4655_v13 = vsel %vm4054_vm1, %v4622_v62, 0.0 }
 0x754   : > { %v5759_v26 = vpop.eup %5758  ;;  %4358 = vst.msk [vmem:[%s9051_s27 + $0x8] sm:$0xff] %vm4054_vm1, %v4326_v51  ;;  %v4550_v19 = vsel %vm4054_vm1, %v4326_v51, 0.0  ;;  %v4621_v37 = vmul.f32 %v4326_v51, %v4326_v51  ;;  %v4301_v49 = vadd.f32 1.0, %v5757_v7  ;;  %v4652_v57 = vsel %vm4054_vm1, %v4620_v63, 0.0 }
 0x755   : > { %v5761_v29 = vpop.eup %5760  ;;  %v4551_v0 = vadd.f32 %v4550_v19, %v4549_v41  ;;  %v9083_v16 = vmul.f32 %v4303_v40, %v4271_v58  ;;  %v4299_v33 = vadd.f32 1.0, %v5759_v26  ;;  %4429 = vrot.lane.b32.xlu0 %v8965_v42, %s6251_s9  ;;  %v3940_v58 = vadd.f32 1.0, %v5753_v34 }
 0x756   : > { %v5763_v6 = vpop.eup %5762  ;;  %v4653_v44 = vsel %vm4054_vm1, %v4621_v37, 0.0  ;;  %v9088_v9 = vmul.f32 %v4301_v49, %v4269_v28  ;;  %v4297_v8 = vadd.f32 1.0, %v5761_v29  ;;  %v9090_v48 = vpop.f32.mrb[84].mxu1  ;;  %v4554_v35 = vsel %vm4054_vm1, %v4328_v2, 0.0 }
 0x757   : > { %v4553_v60 = vadd.f32 %v4552_v39, %v4551_v0  ;;  %v4654_v43 = vadd.f32 %v4653_v44, %v4652_v57  ;;  %4367 = vst.msk [vmem:[%s9051_s27 + $0x50] sm:$0xff] %vm4054_vm1, %v9083_v16  ;;  %v9099_v42 = vpop.f32.mrb[85].mxu1  ;;  %4431 = vrot.lane.b32.xlu1 %v8975_v36, %s6251_s9  ;;  %v5765_v28 = vpop.eup %5764  ;;  %v4331_v52 = vmul.f32 %v4299_v33, %v9026_v11  ;;  %v4304_v36 = vadd.f32 1.0, %v5763_v6 }
 0x758   : > { %4365 = vst.msk [vmem:[%s9051_s27 + $0x40] sm:$0xff] %vm4054_vm1, %v9088_v9  ;;  %v4329_v54 = vmul.f32 %v4297_v8, %v9034_v12  ;;  %v9110_v46 = vpop.f32.mrb[86].mxu1  ;;  %v5767_v17 = vpop.eup %5766  ;;  %v9114_v45 = vmul.f32 %v8993_v3, %v8705_v50  ;;  %v4657_v2 = vsel %vm4054_vm1, %v4623_v38, 0.0  ;;  %v9128_v51 = vmul.f32 %v8993_v3, %v8736_v21 }
 0x759   : > { %v4656_v15 = vadd.f32 %v4655_v13, %v4654_v43  ;;  %v4555_v34 = vadd.f32 %v4554_v35, %v4553_v60  ;;  %v9116_v63 = vpop.f32.mrb[87].mxu1  ;;  %4457 = vrot.lane.b32.xlu0 %v8998_v27, %s6251_s9  ;;  %v5769_v11 = vpop.eup %5768  ;;  %4363 = vst.msk [vmem:[%s9051_s27 + $0x30] sm:$0xff] %vm4054_vm1, %v4331_v52  ;;  %v5103_v50 = vmul.f32 -1.442695, %v8989_v14  ;;  %v9132_v41 = vmul.f32 %v4304_v36, %v9038_v47 }
 0x75a   : > { %4361 = vst.msk [vmem:[%s9051_s27 + $0x20] sm:$0xff] %vm4054_vm1, %v4329_v54  ;;  %v4556_v12 = vsel %vm4054_vm1, %v4329_v54, 0.0  ;;  %v5771_v55 = vpop.eup %5770  ;;  %v4624_v39 = vmul.f32 %v4329_v54, %v4329_v54  ;;  %v4626_v40 = vmul.f32 %v4331_v52, %v4331_v52  ;;  %v4300_v26 = vadd.f32 1.0, %v5765_v28  ;;  %v9742_v28 = vld [vmem:[#allocation48_spill] sm:$0xff] }
 0x75b   : > { %v4557_v7 = vadd.f32 %v4556_v12, %v4555_v34  ;;  %v4658_v62 = vadd.f32 %v4657_v2, %v4656_v15  ;;  %4459 = vrot.lane.b32.xlu1 %v9008_v5, %s6251_s9  ;;  %v4302_v38 = vadd.f32 1.0, %v5767_v17  ;;  %5774 = vrcp.f32 %v3940_v58  ;;  %4368 = vst.msk [vmem:[%s9051_s27 + $0x58] sm:$0xff] %vm4054_vm1, %v9132_v41  ;;  %v9744_v2 = vld [vmem:[#allocation51_spill] sm:$0xff] }
 0x75c   : > { %v4659_v19 = vsel %vm4054_vm1, %v4624_v39, 0.0  ;;  %v3938_v21 = vadd.f32 1.0, %v5769_v11  ;;  %v5108_v14 = vmul.f32 -1.442695, %v8998_v27  ;;  %v5106_v37 = vmul.f32 -1.442695, %v9003_v31 }
 0x75d   : > { %4453 = vrot.lane.b32.xlu0 %v9003_v31, %s6251_s9  ;;  %v4660_v47 = vadd.f32 %v4659_v19, %v4658_v62  ;;  %v4332_v49 = vmul.f32 %v4300_v26, %v9057_v56  ;;  %v9146_v29 = vmul.f32 %v4302_v38, %v9061_v23  ;;  %v3941_v57 = vadd.f32 1.0, %v5771_v55  ;;  %v5773_v44 = vpop.eup %5772 }
 0x75e   : > { %v5509_v0 = vpop.f32.mrb[88].mxu1  ;;  %v9150_v33 = vsel %vm4054_vm1, %v9083_v16, 0.0  ;;  %5776 = vrcp.f32 %v3938_v21  ;;  %v5109_v27 = vmul.f32 -1.442695, %v9008_v5  ;;  %v5107_v6 = vmul.f32 -1.442695, %v9014_v61 }
 0x75f   : > { %v3815_v31 = vpop.f32.mrb[89].mxu1  ;;  %4455 = vrot.lane.b32.xlu1 %v9014_v61, %s6251_s9  ;;  %v4560_v56 = vsel %vm4054_vm1, %v4331_v52, 0.0  ;;  %v4663_v23 = vsel %vm4054_vm1, %v4626_v40, 0.0  ;;  %v9160_v8 = vmul.f32 %v9088_v9, %v9088_v9  ;;  %4364 = vst.msk [vmem:[%s9051_s27 + $0x38] sm:$0xff] %vm4054_vm1, %v4332_v49  ;;  %4366 = vst.msk [vmem:[%s9051_s27 + $0x48] sm:$0xff] %vm4054_vm1, %v9146_v29  ;;  %v4298_v43 = vadd.f32 1.0, %v5773_v44 }
 0x760   : > { %v5112_v5 = vmul.f32 -1.442695, %v9041_v32  ;;  %v5510_v60 = vpop.f32.mrb[90].mxu1  ;;  %5778 = vrcp.f32 %v3941_v57  ;;  %v9741_v61 = vld [vmem:[#allocation49_spill] sm:$0xff]  ;;  %v3787_v13 = vadd.f32 %v9063_v59, %v9742_v28  ;;  %v4562_v52 = vsel %vm4054_vm1, %v4332_v49, 0.0 }
 0x761   : > { %v3795_v58 = vadd.f32 %v9048_v20, %v9741_v61  ;;  %v9172_v35 = vpop.f32.mrb[91].mxu1  ;;  %4465 = vrot.lane.b32.xlu0 %v9041_v32, %s6251_s9  ;;  %5780 = vpow2.f32 %v5103_v50  ;;  %v5110_v54 = vmul.f32 -1.442695, %v9046_v1  ;;  %v3808_v17 = vadd.f32 %v9090_v48, %v8925_v24  ;;  %v9743_v32 = vld [vmem:[#allocation50_spill] sm:$0xff] }
 0x762   : > { %v4627_v15 = vmul.f32 %v4332_v49, %v4332_v49  ;;  %v4629_v20 = vmul.f32 %v9146_v29, %v9146_v29  ;;  %v4330_v59 = vmul.f32 %v4298_v43, %v9071_v22  ;;  %5782 = vpow2.f32 %v5108_v14 }
 0x763   : > { %4467 = vrot.lane.b32.xlu1 %v3795_v58, %s6251_s9  ;;  %5784 = vpow2.f32 %v5106_v37  ;;  %v5113_v34 = vmul.f32 -1.442695, %v3795_v58  ;;  %v3800_v36 = vadd.f32 %v9099_v42, %v9743_v32  ;;  %v9188_v11 = vadd.f32 %v9110_v46, %v8927_v53 }
 0x764   : > { %4362 = vst.msk [vmem:[%s9051_s27 + $0x28] sm:$0xff] %vm4054_vm1, %v4330_v59  ;;  %v4558_v24 = vsel %vm4054_vm1, %v4330_v59, 0.0  ;;  %v4625_v48 = vmul.f32 %v4330_v59, %v4330_v59  ;;  %5786 = vpow2.f32 %v5109_v27  ;;  %v9195_v22 = vadd.f32 %v9116_v63, %v9744_v2 }
 0x765   : > { %4461 = vrot.lane.b32.xlu0 %v9046_v1, %s6251_s9  ;;  %v5775_v12 = vpop.eup %5774  ;;  %v4559_v50 = vadd.f32 %v4558_v24, %v4557_v7  ;;  %5788 = vpow2.f32 %v5107_v6  ;;  %v5111_v42 = vmul.f32 -1.442695, %v3787_v13  ;;  %v5116_v55 = vmul.f32 -1.442695, %v3808_v17 }
 0x766   : > { %v4661_v53 = vsel %vm4054_vm1, %v4625_v48, 0.0  ;;  %v4307_v46 = vadd.f32 1.0, %v5775_v12  ;;  %5790 = vpow2.f32 %v5112_v5  ;;  %v5114_v39 = vmul.f32 -1.442695, %v3800_v36 }
 0x767   : > { %4463 = vrot.lane.b32.xlu1 %v3787_v13, %s6251_s9  ;;  %v4561_v62 = vadd.f32 %v4560_v56, %v4559_v50  ;;  %v4662_v40 = vadd.f32 %v4661_v53, %v4660_v47  ;;  %5792 = vpow2.f32 %v5110_v54  ;;  %v9202_v63 = vadd.f32 %v5509_v0, %v8951_v30 }
 0x768   : > { %v5777_v1 = vpop.eup %5776  ;;  %v9205_v7 = vmul.f32 %v4307_v46, %v9097_v10  ;;  %5794 = vpow2.f32 %v5113_v34  ;;  %v9208_v26 = vadd.f32 %v3815_v31, %v8931_v18  ;;  %v9211_v38 = vadd.f32 %v5510_v60, %v8955_v25 }
 0x769   : > { %4473 = vrot.lane.b32.xlu0 %v3808_v17, %s6251_s9  ;;  %v4563_v19 = vadd.f32 %v4562_v52, %v4561_v62  ;;  %v4664_v21 = vadd.f32 %v4663_v23, %v4662_v40  ;;  %v4305_v14 = vadd.f32 1.0, %v5777_v1  ;;  %5796 = vpow2.f32 %v5111_v42  ;;  %v9745_v40 = vld [vmem:[#allocation31_spill] sm:$0xff] }
 0x76a   : > { %v5779_v37 = vpop.eup %5778  ;;  %v4630_v30 = vmul.f32 %v9083_v16, %v9083_v16  ;;  %v4564_v10 = vsel %vm4054_vm1, %v9088_v9, 0.0  ;;  %v4665_v47 = vsel %vm4054_vm1, %v4627_v15, 0.0  ;;  %4371 = vst.msk [vmem:[%s9051_s27 + $0x70] sm:$0xff] %vm4054_vm1, %v9205_v7  ;;  %5798 = vpow2.f32 %v5116_v55 }
 0x76b   : > { %4475 = vrot.lane.b32.xlu1 %v9188_v11, %s6251_s9  ;;  %v5781_v18 = vpop.eup %5780  ;;  %v4565_v25 = vadd.f32 %v4564_v10, %v4563_v19  ;;  %v4666_v49 = vadd.f32 %v4665_v47, %v4664_v21  ;;  %v4337_v57 = vmul.f32 %v4305_v14, %v9114_v45  ;;  %v4308_v0 = vadd.f32 1.0, %v5779_v37  ;;  %v9746_v19 = vld [vmem:[#allocation34_spill] sm:$0xff]  ;;  %v9747_v14 = vld [vmem:[#allocation32_spill] sm:$0xff]  ;;  %v9749_v10 = vld [vmem:[#allocation33_spill] sm:$0xff] }
 0x76c   : > { %v5783_v16 = vpop.eup %5782  ;;  %v4667_v9 = vsel %vm4054_vm1, %v9160_v8, 0.0  ;;  %v4566_v27 = vsel %vm4054_vm1, %v9146_v29, 0.0  ;;  %v3939_v6 = vadd.f32 1.0, %v5781_v18  ;;  %5800 = vpow2.f32 %v5114_v39  ;;  %v9750_v18 = vld [vmem:[#allocation38_spill] sm:$0xff] }
 0x76d   : > { %4469 = vrot.lane.b32.xlu0 %v3800_v36, %s6251_s9  ;;  %v5785_v31 = vpop.eup %5784  ;;  %v4631_v44 = vmul.f32 %v9132_v41, %v9132_v41  ;;  %v4669_v56 = vsel %vm4054_vm1, %v4629_v20, 0.0  ;;  %v4668_v23 = vadd.f32 %v4667_v9, %v4666_v49  ;;  %4369 = vst.msk [vmem:[%s9051_s27 + $0x60] sm:$0xff] %vm4054_vm1, %v4337_v57  ;;  %v4567_v45 = vadd.f32 %v4566_v27, %v4565_v25  ;;  %v9752_v9 = vld [vmem:[#allocation39_spill] sm:$0xff] }
 0x76e   : > { %v5787_v5 = vpop.eup %5786  ;;  %v9236_v8 = vmul.f32 %v4308_v0, %v9128_v51  ;;  %5802 = vrcp.f32 %v3939_v6  ;;  %v3944_v29 = vadd.f32 1.0, %v5783_v16  ;;  %v3942_v60 = vadd.f32 1.0, %v5785_v31  ;;  %v9751_v0 = vld [vmem:[#allocation36_spill] sm:$0xff]  ;;  %v9753_v6 = vld [vmem:[#allocation37_spill] sm:$0xff] }
 0x76f   : > { %4471 = vrot.lane.b32.xlu1 %v9195_v22, %s6251_s9  ;;  %v5789_v43 = vpop.eup %5788  ;;  %v4671_v61 = vsel %vm4054_vm1, %v4630_v30, 0.0  ;;  %v4569_v58 = vadd.f32 %v9150_v33, %v4567_v45  ;;  %v4670_v28 = vadd.f32 %v4669_v56, %v4668_v23  ;;  %v3945_v13 = vadd.f32 1.0, %v5787_v5  ;;  %v9754_v23 = vld [vmem:[#allocation42_spill] sm:$0xff] }
 0x770   : > { %v5791_v52 = vpop.eup %5790  ;;  %v4570_v54 = vsel %vm4054_vm1, %v9132_v41, 0.0  ;;  %v4632_v17 = vmul.f32 %v4337_v57, %v4337_v57  ;;  %4372 = vst.msk [vmem:[%s9051_s27 + $0x78] sm:$0xff] %vm4054_vm1, %v9236_v8  ;;  %5804 = vrcp.f32 %v3944_v29  ;;  %v3943_v51 = vadd.f32 1.0, %v5789_v43 }
 0x771   : > { %4477 = vrot.lane.b32.xlu0 %v9208_v26, %s6251_s9  ;;  %v5793_v15 = vpop.eup %5792  ;;  %v4571_v20 = vadd.f32 %v4570_v54, %v4569_v58  ;;  %v4672_v59 = vadd.f32 %v4671_v61, %v4670_v28  ;;  %5806 = vrcp.f32 %v3942_v60  ;;  %v3948_v33 = vadd.f32 1.0, %v5791_v52 }
 0x772   : > { %v5795_v34 = vpop.eup %5794  ;;  %v4673_v32 = vsel %vm4054_vm1, %v4631_v44, 0.0  ;;  %v4572_v36 = vsel %vm4054_vm1, %v4337_v57, 0.0  ;;  %5808 = vrcp.f32 %v3945_v13  ;;  %v3946_v41 = vadd.f32 1.0, %v5793_v15 }
 0x773   : > { %v5797_v24 = vpop.eup %5796  ;;  %v4573_v48 = vadd.f32 %v4572_v36, %v4571_v20  ;;  %v4674_v2 = vadd.f32 %v4673_v32, %v4672_v59  ;;  %5810 = vrcp.f32 %v3943_v51  ;;  %v3949_v12 = vadd.f32 1.0, %v5795_v34 }
 0x774   : > { %v5799_v50 = vpop.eup %5798  ;;  %v4675_v42 = vsel %vm4054_vm1, %v4632_v17, 0.0  ;;  %5812 = vrcp.f32 %v3948_v33  ;;  %v3947_v55 = vadd.f32 1.0, %v5797_v24  ;;  %v9254_v53 = vadd.f32 %v9172_v35, %v8933_v4  ;;  %v9748_v35 = vld [vmem:[#allocation35_spill] sm:$0xff] }
 0x775   : > { %4481 = vrot.lane.b32.xlu0 %v9202_v63, %s6251_s9  ;;  %v4676_v46 = vadd.f32 %v4675_v42, %v4674_v2  ;;  %5814 = vrcp.f32 %v3946_v41  ;;  %v3952_v39 = vadd.f32 1.0, %v5799_v50  ;;  %v4274_v1 = vmul.f32 %v8993_v3, %v9745_v40 }
 0x776   : > { %v5801_v62 = vpop.eup %5800  ;;  %5816 = vrcp.f32 %v3949_v12  ;;  %4479 = vrot.lane.b32.xlu1 %v9254_v53, %s6251_s9  ;;  %v4279_v21 = vmul.f32 %v8993_v3, %v9746_v19  ;;  %v4277_v4 = vmul.f32 %v8993_v3, %v9747_v14  ;;  %v4280_v37 = vmul.f32 %v8993_v3, %v9748_v35 }
 0x777   : > { %5818 = vrcp.f32 %v3947_v55  ;;  %v4278_v47 = vmul.f32 %v8993_v3, %v9749_v10  ;;  %v9272_v25 = vmul.f32 %v8993_v3, %v9750_v18  ;;  %v3950_v49 = vadd.f32 1.0, %v5801_v62 }
 0x778   : > { %v5803_v30 = vpop.eup %5802  ;;  %5820 = vrcp.f32 %v3952_v39  ;;  %v9276_v16 = vmul.f32 %v8993_v3, %v9751_v0  ;;  %v9280_v27 = vmul.f32 %v8993_v3, %v9752_v9  ;;  %v9284_v31 = vmul.f32 %v8993_v3, %v9753_v6 }
 0x779   : > { %v4306_v57 = vadd.f32 1.0, %v5803_v30  ;;  %v4576_v56 = vsel %vm4054_vm1, %v9205_v7, 0.0  ;;  %v9290_v45 = vmul.f32 %v8993_v3, %v9754_v23  ;;  %v5117_v5 = vmul.f32 -1.442695, %v9188_v11 }
 0x77a   : > { %v5805_v44 = vpop.eup %5804  ;;  %v5115_v29 = vmul.f32 -1.442695, %v9195_v22  ;;  %4483 = vrot.lane.b32.xlu1 %v9211_v38, %s6251_s9  ;;  %v4634_v43 = vmul.f32 %v9205_v7, %v9205_v7  ;;  %v5120_v28 = vmul.f32 -1.442695, %v9202_v63  ;;  %v4635_v52 = vmul.f32 %v9236_v8, %v9236_v8 }
 0x77b   : > { %v5807_v60 = vpop.eup %5806  ;;  %v4338_v61 = vmul.f32 %v4306_v57, %v4274_v1  ;;  %v4311_v58 = vadd.f32 1.0, %v5805_v44  ;;  %5822 = vrcp.f32 %v3950_v49  ;;  %v5118_v11 = vmul.f32 -1.442695, %v9208_v26  ;;  %v9755_v44 = vld [vmem:[#allocation40_spill] sm:$0xff] }
 0x77c   : > { %v5809_v13 = vpop.eup %5808  ;;  %v4309_v54 = vadd.f32 1.0, %v5807_v60  ;;  %5824 = vpow2.f32 %v5117_v5  ;;  %v4679_v32 = vsel %vm4054_vm1, %v4634_v43, 0.0  ;;  %v4578_v50 = vsel %vm4054_vm1, %v9236_v8, 0.0 }
 0x77d   : > { %v5811_v22 = vpop.eup %5810  ;;  %4370 = vst.msk [vmem:[%s9051_s27 + $0x68] sm:$0xff] %vm4054_vm1, %v4338_v61  ;;  %v4574_v17 = vsel %vm4054_vm1, %v4338_v61, 0.0  ;;  %v4633_v51 = vmul.f32 %v4338_v61, %v4338_v61  ;;  %v4343_v7 = vmul.f32 %v4311_v58, %v4279_v21  ;;  %v4312_v15 = vadd.f32 1.0, %v5809_v13 }
 0x77e   : > { %v5813_v20 = vpop.eup %5812  ;;  %v4575_v63 = vadd.f32 %v4574_v17, %v4573_v48  ;;  %v4341_v59 = vmul.f32 %v4309_v54, %v4277_v4  ;;  %v4310_v33 = vadd.f32 1.0, %v5811_v22  ;;  %5826 = vpow2.f32 %v5115_v29 }
 0x77f   : > { %v5815_v34 = vpop.eup %5814  ;;  %v4677_v26 = vsel %vm4054_vm1, %v4633_v51, 0.0  ;;  %4375 = vst.msk [vmem:[%s9051_s27 + $0x90] sm:$0xff] %vm4054_vm1, %v4343_v7  ;;  %v4344_v36 = vmul.f32 %v4312_v15, %v4280_v37  ;;  %5828 = vpow2.f32 %v5120_v28  ;;  %v4681_v42 = vsel %vm4054_vm1, %v4635_v52, 0.0 }
 0x780   : > { %v5817_v41 = vpop.eup %5816  ;;  %v4577_v24 = vadd.f32 %v4576_v56, %v4575_v63  ;;  %v4678_v2 = vadd.f32 %v4677_v26, %v4676_v46  ;;  %4373 = vst.msk [vmem:[%s9051_s27 + $0x80] sm:$0xff] %vm4054_vm1, %v4341_v59  ;;  %v4636_v48 = vmul.f32 %v4341_v59, %v4341_v59  ;;  %v4342_v55 = vmul.f32 %v4310_v33, %v4278_v47 }
 0x781   : > { %v5819_v12 = vpop.eup %5818  ;;  %4376 = vst.msk [vmem:[%s9051_s27 + $0x98] sm:$0xff] %vm4054_vm1, %v4344_v36  ;;  %5830 = vpow2.f32 %v5118_v11  ;;  %v4638_v40 = vmul.f32 %v4343_v7, %v4343_v7  ;;  %v4315_v46 = vadd.f32 1.0, %v5813_v20  ;;  %v4580_v19 = vsel %vm4054_vm1, %v4341_v59, 0.0 }
 0x782   : > { %v5821_v39 = vpop.eup %5820  ;;  %v4680_v62 = vadd.f32 %v4679_v32, %v4678_v2  ;;  %v4579_v1 = vadd.f32 %v4578_v50, %v4577_v24  ;;  %v4683_v21 = vsel %vm4054_vm1, %v4636_v48, 0.0  ;;  %4374 = vst.msk [vmem:[%s9051_s27 + $0x88] sm:$0xff] %vm4054_vm1, %v4342_v55  ;;  %v4637_v14 = vmul.f32 %v4342_v55, %v4342_v55 }
 0x783   : > { %v4313_v8 = vadd.f32 1.0, %v5815_v34  ;;  %v4347_v37 = vmul.f32 %v4315_v46, %v9272_v25  ;;  %v4316_v30 = vadd.f32 1.0, %v5817_v41  ;;  %v4582_v10 = vsel %vm4054_vm1, %v4342_v55, 0.0 }
 0x784   : > { %v4581_v4 = vadd.f32 %v4580_v19, %v4579_v1  ;;  %v4682_v35 = vadd.f32 %v4681_v42, %v4680_v62  ;;  %v4314_v18 = vadd.f32 1.0, %v5819_v12  ;;  %v4319_v49 = vadd.f32 1.0, %v5821_v39 }
 0x785   : > { %v4345_v47 = vmul.f32 %v4313_v8, %v9276_v16  ;;  %v5823_v57 = vpop.eup %5822  ;;  %v4639_v9 = vmul.f32 %v4344_v36, %v4344_v36  ;;  %4379 = vst.msk [vmem:[%s9051_s27 + $0xb0] sm:$0xff] %vm4054_vm1, %v4347_v37  ;;  %v4285_v56 = vmul.f32 %v8993_v3, %v9755_v44  ;;  %v4584_v25 = vsel %vm4054_vm1, %v4343_v7, 0.0  ;;  %v9759_v44 = vld [vmem:[#allocation44_spill] sm:$0xff] }
 0x786   : > { %v4684_v0 = vadd.f32 %v4683_v21, %v4682_v35  ;;  %v4583_v6 = vadd.f32 %v4582_v10, %v4581_v4  ;;  %v4685_v23 = vsel %vm4054_vm1, %v4637_v14, 0.0  ;;  %v4348_v16 = vmul.f32 %v4316_v30, %v9280_v27  ;;  %v5825_v29 = vpop.eup %5824  ;;  %v9756_v35 = vld [vmem:[#allocation43_spill] sm:$0xff]  ;;  %v9757_v10 = vld [vmem:[#allocation41_spill] sm:$0xff] }
 0x787   : > { %4377 = vst.msk [vmem:[%s9051_s27 + $0xa0] sm:$0xff] %vm4054_vm1, %v4345_v47  ;;  %v4346_v5 = vmul.f32 %v4314_v18, %v9284_v31  ;;  %v4640_v61 = vmul.f32 %v4345_v47, %v4345_v47  ;;  %v9334_v58 = vmul.f32 %v4319_v49, %v9290_v45  ;;  %v4687_v13 = vsel %vm4054_vm1, %v4638_v40, 0.0 }
 0x788   : > { %v4585_v60 = vadd.f32 %v4584_v25, %v4583_v6  ;;  %v4686_v43 = vadd.f32 %v4685_v23, %v4684_v0  ;;  %v5827_v28 = vpop.eup %5826  ;;  %v4586_v52 = vsel %vm4054_vm1, %v4344_v36, 0.0  ;;  %4380 = vst.msk [vmem:[%s9051_s27 + $0xb8] sm:$0xff] %vm4054_vm1, %v4348_v16  ;;  %v5121_v27 = vmul.f32 -1.442695, %v9211_v38 }
 0x789   : > { %4378 = vst.msk [vmem:[%s9051_s27 + $0xa8] sm:$0xff] %vm4054_vm1, %v4346_v5  ;;  %v5119_v31 = vmul.f32 -1.442695, %v9254_v53  ;;  %v5829_v54 = vpop.eup %5828  ;;  %v4689_v11 = vsel %vm4054_vm1, %v4639_v9, 0.0  ;;  %v4642_v17 = vmul.f32 %v4347_v37, %v4347_v37  ;;  %4383 = vst.msk [vmem:[%s9051_s27 + $0xd0] sm:$0xff] %vm4054_vm1, %v9334_v58  ;;  %v4588_v7 = vsel %vm4054_vm1, %v4345_v47, 0.0 }
 0x78a   : > { %v4688_v22 = vadd.f32 %v4687_v13, %v4686_v43  ;;  %v4587_v45 = vadd.f32 %v4586_v52, %v4585_v60  ;;  %v4641_v15 = vmul.f32 %v4346_v5, %v4346_v5  ;;  %v4317_v20 = vadd.f32 1.0, %v5823_v57  ;;  %v9758_v57 = vld [vmem:[#allocation46_spill] sm:$0xff] }
 0x78b   : > { %v5831_v51 = vpop.eup %5830  ;;  %v3953_v63 = vadd.f32 1.0, %v5825_v29  ;;  %v4691_v53 = vsel %vm4054_vm1, %v4640_v61, 0.0  ;;  %v3951_v33 = vadd.f32 1.0, %v5827_v28  ;;  %v4590_v34 = vsel %vm4054_vm1, %v4346_v5, 0.0 }
 0x78c   : > { %v4589_v59 = vadd.f32 %v4588_v7, %v4587_v45  ;;  %v4690_v38 = vadd.f32 %v4689_v11, %v4688_v22  ;;  %v4349_v32 = vmul.f32 %v4317_v20, %v4285_v56  ;;  %v3956_v26 = vadd.f32 1.0, %v5829_v54 }
 0x78d   : > { %5832 = vrcp.f32 %v3953_v63  ;;  %v3954_v24 = vadd.f32 1.0, %v5831_v51  ;;  %v4592_v2 = vsel %vm4054_vm1, %v4347_v37, 0.0  ;;  %v4643_v48 = vmul.f32 %v4348_v16, %v4348_v16 }
 0x78e   : > { %v4692_v36 = vadd.f32 %v4691_v53, %v4690_v38  ;;  %v4591_v41 = vadd.f32 %v4590_v34, %v4589_v59  ;;  %5834 = vrcp.f32 %v3951_v33  ;;  %v4693_v12 = vsel %vm4054_vm1, %v4641_v15, 0.0  ;;  %4381 = vst.msk [vmem:[%s9051_s27 + $0xc0] sm:$0xff] %vm4054_vm1, %v4349_v32 }
 0x78f   : > { %5836 = vrcp.f32 %v3956_v26  ;;  %v4695_v55 = vsel %vm4054_vm1, %v4642_v17, 0.0  ;;  %v4594_v39 = vsel %vm4054_vm1, %v4348_v16, 0.0  ;;  %v4644_v62 = vmul.f32 %v4349_v32, %v4349_v32 }
 0x790   : > { %v4593_v50 = vadd.f32 %v4592_v2, %v4591_v41  ;;  %v4694_v42 = vadd.f32 %v4693_v12, %v4692_v36  ;;  %5838 = vrcp.f32 %v3954_v24  ;;  %v4697_v46 = vsel %vm4054_vm1, %v4643_v48, 0.0  ;;  %v9760_v36 = vld [vmem:[#allocation47_spill] sm:$0xff]  ;;  %v9761_v2 = vld [vmem:[#allocation45_spill] sm:$0xff] }
 0x791   : > { %5840 = vpow2.f32 %v5121_v27  ;;  %v4596_v19 = vsel %vm4054_vm1, %v4349_v32, 0.0  ;;  %v4699_v8 = vsel %vm4054_vm1, %v4644_v62, 0.0  ;;  %v4288_v37 = vmul.f32 %v8993_v3, %v9756_v35 }
 0x792   : > { %v4696_v40 = vadd.f32 %v4695_v55, %v4694_v42  ;;  %v4595_v1 = vadd.f32 %v4594_v39, %v4593_v50  ;;  %5842 = vpow2.f32 %v5119_v31  ;;  %v4286_v47 = vmul.f32 %v8993_v3, %v9757_v10 }
 0x793   : > { %v4291_v0 = vmul.f32 %v8993_v3, %v9758_v57  ;;  %v4289_v56 = vmul.f32 %v8993_v3, %v9759_v44  ;;  %v4646_v61 = vmul.f32 %v9334_v58, %v9334_v58  ;;  %v4600_v22 = vsel %vm4054_vm1, %v9334_v58, 0.0 }
 0x794   : > { %v4597_v21 = vadd.f32 %v4596_v19, %v4595_v1  ;;  %v4698_v14 = vadd.f32 %v4697_v46, %v4696_v40  ;;  %v4292_v41 = vmul.f32 %v8993_v3, %v9760_v36  ;;  %v4290_v48 = vmul.f32 %v8993_v3, %v9761_v2 }
 0x795   : > { %v4703_v15 = vsel %vm4054_vm1, %v4646_v61, 0.0 }
 0x796   : > { %v4700_v4 = vadd.f32 %v4699_v8, %v4698_v14 }
 0x797   : > { %v5833_v30 = vpop.eup %5832 }
 0x798   : > { %v5835_v18 = vpop.eup %5834  ;;  %v4320_v49 = vadd.f32 1.0, %v5833_v30 }
 0x799   : > { %v5837_v9 = vpop.eup %5836  ;;  %v4318_v6 = vadd.f32 1.0, %v5835_v18 }
 0x79a   : > { %v5839_v25 = vpop.eup %5838  ;;  %v4352_v23 = vmul.f32 %v4320_v49, %v4288_v37  ;;  %v4323_v16 = vadd.f32 1.0, %v5837_v9 }
 0x79b   : > { %v5841_v5 = vpop.eup %5840  ;;  %v4350_v29 = vmul.f32 %v4318_v6, %v4286_v47  ;;  %v4321_v60 = vadd.f32 1.0, %v5839_v25 }
 0x79c   : > { %v5843_v43 = vpop.eup %5842  ;;  %4384 = vst.msk [vmem:[%s9051_s27 + $0xd8] sm:$0xff] %vm4054_vm1, %v4352_v23  ;;  %v9372_v28 = vmul.f32 %v4323_v16, %v4291_v0  ;;  %v3957_v13 = vadd.f32 1.0, %v5841_v5  ;;  %v4647_v17 = vmul.f32 %v4352_v23, %v4352_v23  ;;  %v4602_v20 = vsel %vm4054_vm1, %v4352_v23, 0.0 }
 0x79d   : > { %4382 = vst.msk [vmem:[%s9051_s27 + $0xc8] sm:$0xff] %vm4054_vm1, %v4350_v29  ;;  %v4598_v52 = vsel %vm4054_vm1, %v4350_v29, 0.0  ;;  %v4645_v27 = vmul.f32 %v4350_v29, %v4350_v29  ;;  %v4353_v31 = vmul.f32 %v4321_v60, %v4289_v56  ;;  %v3955_v54 = vadd.f32 1.0, %v5843_v43 }
 0x79e   : > { %v4599_v11 = vadd.f32 %v4598_v52, %v4597_v21  ;;  %4387 = vst.msk [vmem:[%s9051_s27 + $0xf0] sm:$0xff] %vm4054_vm1, %v9372_v28  ;;  %5844 = vrcp.f32 %v3957_v13  ;;  %v4705_v58 = vsel %vm4054_vm1, %v4647_v17, 0.0  ;;  %v4650_v1 = vmul.f32 %v9372_v28, %v9372_v28 }
 0x79f   : > { %v4701_v45 = vsel %vm4054_vm1, %v4645_v27, 0.0  ;;  %4385 = vst.msk [vmem:[%s9051_s27 + $0xe0] sm:$0xff] %vm4054_vm1, %v4353_v31  ;;  %5846 = vrcp.f32 %v3955_v54  ;;  %v4648_v63 = vmul.f32 %v4353_v31, %v4353_v31  ;;  %v4604_v53 = vsel %vm4054_vm1, %v4353_v31, 0.0 }
 0x7a0   : > { %v4601_v51 = vadd.f32 %v4600_v22, %v4599_v11  ;;  %v4702_v7 = vadd.f32 %v4701_v45, %v4700_v4 }
 0x7a1   : > { %v4707_v32 = vsel %vm4054_vm1, %v4648_v63, 0.0 }
 0x7a2   : > { %v4704_v59 = vadd.f32 %v4703_v15, %v4702_v7  ;;  %v4603_v38 = vadd.f32 %v4602_v20, %v4601_v51 }
 0x7a4   : > { %v4605_v33 = vadd.f32 %v4604_v53, %v4603_v38  ;;  %v4706_v34 = vadd.f32 %v4705_v58, %v4704_v59 }
 0x7a6   : > { %v4708_v26 = vadd.f32 %v4707_v32, %v4706_v34 }
 0x7a8   : > { %v5845_v24 = vpop.eup %5844 }
 0x7a9   : > { %v5847_v12 = vpop.eup %5846  ;;  %v4324_v50 = vadd.f32 1.0, %v5845_v24 }
 0x7aa   : > { %v4322_v55 = vadd.f32 1.0, %v5847_v12 }
 0x7ab   : > { %v4442_v42 = vpop.permute.xlu0 %4441  ;;  %v4356_v39 = vmul.f32 %v4324_v50, %v4292_v41 }
 0x7ac   : > { %4527 = vst.msk [vmem:[%s9397_s5 + $0x50] sm:$0xff] %vm4054_vm1, %v4442_v42  ;;  %v4354_v40 = vmul.f32 %v4322_v55, %v4290_v48 }
 0x7ad   : > { %v4444_v62 = vpop.permute.xlu1 %4443  ;;  %4388 = vst.msk [vmem:[%s9051_s27 + $0xf8] sm:$0xff] %vm4054_vm1, %v4356_v39 }
 0x7ae   : > { %4528 = vst.msk [vmem:[%s9397_s5 + $0x58] sm:$0xff] %vm4054_vm1, %v4444_v62  ;;  %4386 = vst.msk [vmem:[%s9051_s27 + $0xe8] sm:$0xff] %vm4054_vm1, %v4354_v40  ;;  %v4606_v46 = vsel %vm4054_vm1, %v4354_v40, 0.0  ;;  %v4649_v19 = vmul.f32 %v4354_v40, %v4354_v40 }
 0x7af   : > { %v4438_v3 = vpop.permute.xlu0 %4437  ;;  %v4607_v21 = vadd.f32 %v4606_v46, %v4605_v33 }
 0x7b0   : > { %4525 = vst.msk [vmem:[%s9397_s5 + $0x40] sm:$0xff] %vm4054_vm1, %v4438_v3 }
 0x7b1   : > { %v4440_v14 = vpop.permute.xlu1 %4439 }
 0x7b2   : > { %6092 = shalt.err (!%p6089_p3)
}
 0x7b3   : > { %s6093_s24 = scalar_lea.hbm %s9408_s21, 4096  ;;  %s6097_s9 = scalar_lea.hbm %s9615_s8, 8192 }
 0x7b4   : > { %p6094_p12 = scmp.ne.s32.totalorder %s9408_s21, %s6093_s24  ;;  %p6098_p0 = scmp.lt.u32.totalorder %s9408_s21, %s9615_s8 }
 0x7b5   : > { %p6099_p6 = scmp.lt.u32.totalorder %s6097_s9, %s6093_s24  ;;  %p6101_p4 = scmp.lt.u32.totalorder %s6093_s24, %s9408_s21 }
 0x7b6   : > { %p6095_p1 = pnand %p6094_p12, %p9762_p10 }
 0x7b7   : > { %p6100_p2 = por %p6099_p6, %p6098_p0 }
 0x7b8   : > { %p6096_p13 = pneg %p6095_p1 }
 0x7b9   : > { %p6102_p5 = por %p6101_p4, %p6100_p2 }
 0x7bb   : > { %p6103_p7 = pnand %p6102_p5, %p6096_p13 }
 0x7bd   : > { %6106 = shalt.err (!%p6103_p7)
}
 0x7be   : > { %s6253_s12 = smov 128   ;;  %v4608_v8 = vsel %vm4054_vm1, %v9372_v28, 0.0  ;;  %v4651_v4 = vmul.f32 %v4356_v39, %v4356_v39  ;;  %v4709_v35 = vsel %vm4054_vm1, %v4649_v19, 0.0  ;;  %4526 = vst.msk [vmem:[%s9397_s5 + $0x48] sm:$0xff] %vm4054_vm1, %v4440_v14  ;;  %v4426_v10 = vpop.permute.xlu0 %4425  ;;  %v4711_v47 = vsel %vm4054_vm1, %v4650_v1, 0.0  ;;  %v4428_v0 = vpop.permute.xlu1 %4427  ;;  %s9763_s17 = sld [smem:[#allocation58_spill]] }
 0x7bf   : > { %5563 = dma.vmem_to_hbm [thread:$0]  (%p9762_p10), %s9410_s2, 4096, %s9408_s21, %s4723_s3, %s6253_s12, %s6253_s12, %s6241_s29   ;;  %v4609_v37 = vadd.f32 %v4608_v8, %v4607_v21  ;;  %v4710_v30 = vadd.f32 %v4709_v35, %v4708_v26  ;;  %v4610_v18 = vsel %vm4054_vm1, %v4356_v39, 0.0  ;;  %vm4618_vm4 = vcmask 57344  }
 0x7c0   : > { %4519 = vst.msk [vmem:[%s9397_s5 + $0x10] sm:$0xff] %vm4054_vm1, %v4426_v10  ;;  %v4713_v9 = vsel %vm4054_vm1, %v4651_v4, 0.0  ;;  %4520 = vst.msk [vmem:[%s9397_s5 + $0x18] sm:$0xff] %vm4054_vm1, %v4428_v0  ;;  %s5012_s2 = sshll.u32 %s6635_s6, 1  ;;  %s4762_s21 = sshll.u32 %s9397_s5, 4  ;;  %s9525_s21 = int_to_ptr.vmem [resolvable:$true] %s4762_s21 }
 0x7c1   : > { %v4611_v49 = vadd.f32 %v4610_v18, %v4609_v37  ;;  %v4712_v57 = vadd.f32 %v4711_v47, %v4710_v30  ;;  %s9473_s6 = scalar_lea.vmem [#allocation22], %s5012_s2  ;;  %s5129_s3 = sshll.u32 %s6332_s19, 5 }
 0x7c2   : > { %v4422_v56 = vpop.permute.xlu0 %4421  ;;  %v4424_v16 = vpop.permute.xlu1 %4423  ;;  %s4778_s22 = sshll.u32 %s9473_s6, 4  ;;  %s9764_s9 = sld [smem:[#allocation59_spill]]  ;;  %s9532_s22 = int_to_ptr.vmem [resolvable:$true] %s4778_s22 }
 0x7c3   : > { %v4612_v6 = vrot.slane %v4611_v49, 4  ;;  %v4714_v44 = vadd.f32 %v4713_v9, %v4712_v57  ;;  %4517 = vst.msk [vmem:[%s9397_s5] sm:$0xff] %vm4054_vm1, %v4422_v56  ;;  %4518 = vst.msk [vmem:[%s9397_s5 + $0x8] sm:$0xff] %vm4054_vm1, %v4424_v16  ;;  %s9538_s20 = scalar_lea.sflag [#allocation21], %s437_s0  ;;  %s6254_s2 = smov [#allocation20]  }
 0x7c4   : > { %s9523_s24 = scalar_lea.hbm %s9763_s17, %s5133_s23  ;;  %s6107_s23 = scalar_lea.vmem %s9525_s21, 4096 }
 0x7c5   : > { %v4613_v25 = vadd.f32 %v4612_v6, %v4611_v49  ;;  %v4715_v23 = vrot.slane %v4714_v44, 4  ;;  %p6108_p9 = scmp.ne.s32.totalorder %s9525_s21, %s6107_s23 }
 0x7c6   : > { %v4450_v5 = vpop.permute.xlu0 %4449  ;;  %v4452_v43 = vpop.permute.xlu1 %4451 }
 0x7c7   : > { %v4614_v29 = vrot.slane %v4613_v25, 2  ;;  %v4716_v60 = vadd.f32 %v4715_v23, %v4714_v44  ;;  %4531 = vst.msk [vmem:[%s9397_s5 + $0x70] sm:$0xff] %vm4054_vm1, %v4450_v5  ;;  %4532 = vst.msk [vmem:[%s9397_s5 + $0x78] sm:$0xff] %vm4054_vm1, %v4452_v43  ;;  %p6109_p8 = pnand %p6108_p9, %p9762_p10 }
 0x7c8   : > { %s9530_s27 = scalar_lea.hbm %s9764_s9, %s5129_s3 }
 0x7c9   : > { %v4615_v61 = vadd.f32 %v4614_v29, %v4613_v25  ;;  %v4717_v28 = vrot.slane %v4716_v60, 2  ;;  %p6110_p11 = pneg %p6109_p8 }
 0x7ca   : > { %v4446_v13 = vpop.permute.xlu0 %4445  ;;  %v4448_v31 = vpop.permute.xlu1 %4447 }
 0x7cb   : > { %v4616_v52 = vrot.slane %v4615_v61, 1  ;;  %v4718_v27 = vadd.f32 %v4717_v28, %v4716_v60  ;;  %4529 = vst.msk [vmem:[%s9397_s5 + $0x60] sm:$0xff] %vm4054_vm1, %v4446_v13  ;;  %4530 = vst.msk [vmem:[%s9397_s5 + $0x68] sm:$0xff] %vm4054_vm1, %v4448_v31 }
 0x7cd   : > { %v4617_v54 = vadd.f32 %v4616_v52, %v4615_v61  ;;  %v4719_v11 = vrot.slane %v4718_v27, 1 }
 0x7ce   : > { %v4434_v22 = vpop.permute.xlu0 %4433  ;;  %v4436_v45 = vpop.permute.xlu1 %4435 }
 0x7cf   : > { %4619 = vst.msk [vmem:[%s9473_s6] sm:$0x1] %vm4618_vm4, %v4617_v54  ;;  %v4720_v17 = vadd.f32 %v4719_v11, %v4718_v27 }
 0x7d0   : > { %4523 = vst.msk [vmem:[%s9397_s5 + $0x30] sm:$0xff] %vm4054_vm1, %v4434_v22  ;;  %4524 = vst.msk [vmem:[%s9397_s5 + $0x38] sm:$0xff] %vm4054_vm1, %v4436_v45 }
 0x7d1   : > { %4721 = vst.msk [vmem:[%s9473_s6 + $0x1] sm:$0x1] %vm4618_vm4, %v4720_v17  ;;  %s6111_s6 = sshll.u32 %s6254_s2, 4  ;;  %s6112_s6 = int_to_ptr.vmem [resolvable:$false] %s6111_s6 }
 0x7d2   : > { %v4430_v51 = vpop.permute.xlu0 %4429  ;;  %v4432_v7 = vpop.permute.xlu1 %4431  ;;  %s6113_s25 = scalar_lea.vmem %s6112_s6, 8192  ;;  %p6114_p3 = scmp.lt.s32.totalorder %s9525_s21, %s6112_s6 }
 0x7d3   : > { %4521 = vst.msk [vmem:[%s9397_s5 + $0x20] sm:$0xff] %vm4054_vm1, %v4430_v51  ;;  %4522 = vst.msk [vmem:[%s9397_s5 + $0x28] sm:$0xff] %vm4054_vm1, %v4432_v7  ;;  %p6115_p12 = scmp.lt.s32.totalorder %s6113_s25, %s6107_s23 }
 0x7d5   : > { %p6116_p1 = por %p6115_p12, %p6114_p3 }
 0x7d6   : > { %v4458_v15 = vpop.permute.xlu0 %4457  ;;  %v4460_v20 = vpop.permute.xlu1 %4459 }
 0x7d7   : > { %4535 = vst.msk [vmem:[%s9397_s5 + $0x90] sm:$0xff] %vm4054_vm1, %v4458_v15  ;;  %4536 = vst.msk [vmem:[%s9397_s5 + $0x98] sm:$0xff] %vm4054_vm1, %v4460_v20  ;;  %p6117_p13 = pnand %p6116_p1, %p6110_p11 }
 0x7da   : > { %v4454_v63 = vpop.permute.xlu0 %4453  ;;  %v4456_v59 = vpop.permute.xlu1 %4455 }
 0x7db   : > { %4533 = vst.msk [vmem:[%s9397_s5 + $0x80] sm:$0xff] %vm4054_vm1, %v4454_v63  ;;  %4534 = vst.msk [vmem:[%s9397_s5 + $0x88] sm:$0xff] %vm4054_vm1, %v4456_v59 }
 0x7de   : > { %v4466_v38 = vpop.permute.xlu0 %4465  ;;  %v4468_v58 = vpop.permute.xlu1 %4467 }
 0x7df   : > { %4539 = vst.msk [vmem:[%s9397_s5 + $0xb0] sm:$0xff] %vm4054_vm1, %v4466_v38  ;;  %4540 = vst.msk [vmem:[%s9397_s5 + $0xb8] sm:$0xff] %vm4054_vm1, %v4468_v58 }
 0x7e2   : > { %v4462_v53 = vpop.permute.xlu0 %4461  ;;  %v4464_v33 = vpop.permute.xlu1 %4463 }
 0x7e3   : > { %4537 = vst.msk [vmem:[%s9397_s5 + $0xa0] sm:$0xff] %vm4054_vm1, %v4462_v53  ;;  %4538 = vst.msk [vmem:[%s9397_s5 + $0xa8] sm:$0xff] %vm4054_vm1, %v4464_v33 }
 0x7e6   : > { %v4474_v34 = vpop.permute.xlu0 %4473  ;;  %v4476_v32 = vpop.permute.xlu1 %4475 }
 0x7e7   : > { %4543 = vst.msk [vmem:[%s9397_s5 + $0xd0] sm:$0xff] %vm4054_vm1, %v4474_v34  ;;  %4544 = vst.msk [vmem:[%s9397_s5 + $0xd8] sm:$0xff] %vm4054_vm1, %v4476_v32 }
 0x7ea   : > { %v4470_v26 = vpop.permute.xlu0 %4469  ;;  %v4472_v36 = vpop.permute.xlu1 %4471 }
 0x7eb   : > { %4541 = vst.msk [vmem:[%s9397_s5 + $0xc0] sm:$0xff] %vm4054_vm1, %v4470_v26  ;;  %4542 = vst.msk [vmem:[%s9397_s5 + $0xc8] sm:$0xff] %vm4054_vm1, %v4472_v36 }
 0x7ee   : > { %v4478_v41 = vpop.permute.xlu0 %4477  ;;  %v4480_v2 = vpop.permute.xlu1 %4479 }
 0x7ef   : > { %4545 = vst.msk [vmem:[%s9397_s5 + $0xe0] sm:$0xff] %vm4054_vm1, %v4478_v41  ;;  %4546 = vst.msk [vmem:[%s9397_s5 + $0xe8] sm:$0xff] %vm4054_vm1, %v4480_v2 }
 0x7f2   : > { %v4482_v24 = vpop.permute.xlu0 %4481  ;;  %v4484_v48 = vpop.permute.xlu1 %4483 }
 0x7f3   : > { %4547 = vst.msk [vmem:[%s9397_s5 + $0xf0] sm:$0xff] %vm4054_vm1, %v4482_v24  ;;  %4548 = vst.msk [vmem:[%s9397_s5 + $0xf8] sm:$0xff] %vm4054_vm1, %v4484_v48 }
 0x7f4   : > { %6120 = shalt.err (!%p6117_p13)
}
 0x7f5   : > { %s6121_s19 = scalar_lea.hbm %s9523_s24, 4096  ;;  %s6125_s3 = scalar_lea.hbm %s9763_s17, 8192 }
 0x7f6   : > { %p6122_p0 = scmp.ne.s32.totalorder %s9523_s24, %s6121_s19  ;;  %p6126_p4 = scmp.lt.u32.totalorder %s9523_s24, %s9763_s17 }
 0x7f7   : > { %p6127_p5 = scmp.lt.u32.totalorder %s6125_s3, %s6121_s19  ;;  %p6129_p9 = scmp.lt.u32.totalorder %s6121_s19, %s9523_s24 }
 0x7f8   : > { %p6123_p6 = pnand %p6122_p0, %p9762_p10 }
 0x7f9   : > { %p6128_p7 = por %p6127_p5, %p6126_p4 }
 0x7fa   : > { %p6124_p2 = pneg %p6123_p6 }
 0x7fb   : > { %p6130_p8 = por %p6129_p9, %p6128_p7 }
 0x7fd   : > { %p6131_p11 = pnand %p6130_p8, %p6124_p2 }
 0x7ff   : > { %6134 = shalt.err (!%p6131_p11)
}
 0x800   : > { %5564 = dma.vmem_to_hbm [thread:$0]  (%p9762_p10), %s9525_s21, 4096, %s9523_s24, %s9538_s20, %s6253_s12, %s6253_s12, %s6241_s29  }
 0x801   : > { %s6135_s30 = scalar_lea.vmem %s9532_s22, 32  ;;  %s6255_s23 = smov [#allocation22]  }
 0x802   : > { %p6136_p3 = scmp.ne.s32.totalorder %s9532_s22, %s6135_s30  ;;  %s6139_s2 = sshll.u32 %s6255_s23, 4  ;;  %s6140_s2 = int_to_ptr.vmem [resolvable:$false] %s6139_s2 }
 0x803   : > { %s6141_s6 = scalar_lea.vmem %s6140_s2, 64  ;;  %p6142_p13 = scmp.lt.s32.totalorder %s9532_s22, %s6140_s2 }
 0x804   : > { %p6137_p12 = pnand %p6136_p3, %p9762_p10  ;;  %p6143_p0 = scmp.lt.s32.totalorder %s6141_s6, %s6135_s30 }
 0x806   : > { %p6138_p1 = pneg %p6137_p12  ;;  %p6144_p6 = por %p6143_p0, %p6142_p13 }
 0x808   : > { %p6145_p2 = pnand %p6144_p6, %p6138_p1 }
 0x80a   : > { %6148 = shalt.err (!%p6145_p2)
}
 0x80b   : > { %s6149_s29 = scalar_lea.hbm %s9530_s27, 32  ;;  %s6153_s24 = scalar_lea.hbm %s9764_s9, 64 }
 0x80c   : > { %p6150_p4 = scmp.ne.s32.totalorder %s9530_s27, %s6149_s29  ;;  %p6154_p9 = scmp.lt.u32.totalorder %s9530_s27, %s9764_s9 }
 0x80d   : > { %p6155_p8 = scmp.lt.u32.totalorder %s6153_s24, %s6149_s29  ;;  %p6157_p3 = scmp.lt.u32.totalorder %s6149_s29, %s9530_s27 }
 0x80e   : > { %p6151_p5 = pnand %p6150_p4, %p9762_p10 }
 0x80f   : > { %p6156_p11 = por %p6155_p8, %p6154_p9 }
 0x810   : > { %p6152_p7 = pneg %p6151_p5 }
 0x811   : > { %p6158_p12 = por %p6157_p3, %p6156_p11 }
 0x813   : > { %p6159_p1 = pnand %p6158_p12, %p6152_p7 }
 0x815   : > { %6162 = shalt.err (!%p6159_p1)
}
 0x816   : > { %5565 = dma.vmem_to_hbm [thread:$0]  (%p9762_p10), %s9532_s22, 32, %s9530_s27, %s9538_s20  }
 0x817 PF: > { %s4790_s0 = sand.u32 1, %s6213_s13   ;;  %p9765_p13 = scmp.ne.s32.totalorder %s9687_s28, 0 }
 0x818   : > { %p9766_p0 = scmp.ge.s32.totalorder %s6225_s16, 2  ;;  %s4791_s5 = scalar_lea.sflag [#allocation7], %s4790_s0 }
 0x81a   : > { %p5596_p6 = pnand %p9766_p0, %p9765_p13 }
 0x81c   : > { %6204 = dma.done.wait (!%p5596_p6), %s4791_s5, 4096  }
 0x81d   : > { %6206 = vsyncadd (!%p5596_p6), %s4791_s5, 4294963200  ;;  %s9767_s3 = sadd.s32 4294967294, %s6225_s16  }
 0x81e   : > { %s4799_s26 = sand.u32 1, %s9767_s3  }
 0x81f   : > { %s4800_s4 = scalar_lea.sflag [#allocation21], %s4799_s26 }
 0x820   : > { %6208 = dma.done.wait (!%p5596_p6), %s4800_s4, 4128  }
 0x821   : > { %6210 = vsyncadd (!%p5596_p6), %s4800_s4, 4294963168  ;;  %p33_p10 = scmp.ge.s32.totalorder %s6505_s11, 4   ;;  %s9768_s13 = smov %s6217_s14 }
 0x822   : > { %s9769_s14 = smov %s6221_s15  ;;  %s9770_s15 = smov %s6516_s18 }
 0x823   : > { %s9771_s16 = smov %s6505_s11  ;;  %35 = sbr.rel (!%p33_p10) target bundleno = 21 (0x15), region = 168 }
 0x82a   :  { %4814 = vsyncpa [#allocation6], 1 }
 0x82b   :  { %4816 = vsyncpa [#allocation6 + $0x1], 1 }
 0x82c   :  { %4817 = vsyncpa [#allocation9], 1 }
 0x82d   :  { %4819 = vsyncpa [#allocation9 + $0x1], 1 }
 0x82e   :  { %4820 = vsyncpa [#allocation12], 1 }
 0x82f   :  { %4821 = vsyncpa [#allocation15], 1 }
 0x830   :  { %4822 = vsyncpa [#allocation18], 1 }
 0x831   :  { %4823 = vsyncpa [#allocation7], 1 }
 0x832   :  { %4825 = vsyncpa [#allocation7 + $0x1], 1 }
 0x833   :  { %4826 = vsyncpa [#allocation21], 1 }
 0x834   :  { %4828 = vsyncpa [#allocation21 + $0x1], 1 }

</bundles_post_ra>
